<compile_context>
chip_gen: v7x
topology: tpu7x:2x2x1
jax: 0.10.0
libtpu: 0.0.40
codegen_flags: <defaults>
</compile_context>

<pallas_src>
import math

import jax
import jax.numpy as jnp
from jax.experimental import pallas as pl
from jax.experimental.pallas import tpu as pltpu

EPS = 1e-5    # torch.nn.BatchNorm1d default eps
LANE = 128    # TPU lane width; channels padded to a multiple of this
SUBL = 16     # bf16 sublane packing; L padded to a multiple of this


def _round_up(x, m):
    return ((x + m - 1) // m) * m


def _make_kernel(N, L, Lp, Cin_p, Cout_p):
    inv_cnt = 1.0 / float(N * L)

    def bn(h, gamma, beta, mask):
        # Training-mode BatchNorm1d: per-channel batch mean / biased variance
        # over the N*L real positions, two-pass variance, f32 math.
        hm = h if mask is None else h * mask
        s1 = jnp.sum(jnp.sum(hm, axis=1, keepdims=True), axis=0, keepdims=True)
        m = s1 * inv_cnt
        d = h - m
        dm = d if mask is None else d * mask
        s2 = jnp.sum(jnp.sum(dm * dm, axis=1, keepdims=True), axis=0,
                     keepdims=True)
        v = s2 * inv_cnt
        scale = gamma.reshape(1, 1, -1) * jax.lax.rsqrt(v + EPS)
        return d * scale + beta.reshape(1, 1, -1)

    def kernel(x_ref, w1_ref, wr_ref, wd_ref, g_ref, be_ref, gd_ref, bed_ref,
               out_ref, padh_ref, res_ref):

        def conv5(src_ref, wget, cin):
            # Conv1d(k=5, pad=2), bias dropped (cancelled by training-mode BN):
            # 5 accumulated (N*Lp, cin) @ (cin, Cout_p) bf16 matmuls with f32
            # accumulation; windows read directly from the halo-padded ref
            # (no im2col temporary, no concat).
            acc = None
            for k in range(5):
                win = src_ref[:, k:k + Lp, :].reshape(N * Lp, cin)
                t = jnp.dot(win, wget(k), preferred_element_type=jnp.float32)
                acc = t if acc is None else acc + t
            return acc.reshape(N, Lp, Cout_p)

        # Row mask for BN stats / stored activations when L was padded to Lp.
        if Lp != L:
            row = jax.lax.broadcasted_iota(jnp.int32, (1, Lp, 1), 1)
            mask = (row < L).astype(jnp.float32)
        else:
            mask = None

        # Zero only the 2-row halos of the activation scratch; the interior is
        # fully overwritten every layer (mask keeps padded tail rows at zero).
        padh_ref[:, 0:2, :] = jnp.zeros((N, 2, Cout_p), padh_ref.dtype)
        padh_ref[:, Lp + 2:Lp + 4, :] = jnp.zeros((N, 2, Cout_p),
                                                  padh_ref.dtype)

        # Downsample branch first (depends only on x): its MXU matmul hides
        # under the BN/ReLU work of conv1 instead of serializing at the tail.
        xin = x_ref[:, 2:2 + Lp, :].reshape(N * Lp, Cin_p)
        res = jnp.dot(xin, wd_ref[...],
                      preferred_element_type=jnp.float32
                      ).reshape(N, Lp, Cout_p)
        res_ref[...] = bn(res, gd_ref[0:1, :], bed_ref[0:1, :], mask)

        def norm_store(h, layer, relu):
            # Fused BN (+ReLU) + bf16 cast + store straight into the padded
            # activation buffer (no f32 round-trip through a scratch).
            h = bn(h, g_ref[layer:layer + 1, :], be_ref[layer:layer + 1, :],
                   mask)
            if relu:
                h = jnp.maximum(h, 0.0)
            if mask is not None:
                h = h * mask
            padh_ref[:, 2:2 + Lp, :] = h.astype(padh_ref.dtype)

        # conv1 -> bn1 -> relu
        norm_store(conv5(x_ref, lambda k: w1_ref[k], Cin_p), 0, relu=True)

        # conv2..conv6 -> bn2..bn6 (ReLU on conv2..conv5 only), fully unrolled.
        for i in range(5):
            h = conv5(padh_ref, lambda k, i=i: wr_ref[5 * i + k], Cout_p)
            norm_store(h, i + 1, relu=(i < 4))

        # conv7 -> bn7 (no relu), residual add, final ReLU.
        h = conv5(padh_ref, lambda k: wr_ref[25 + k], Cout_p)
        h = bn(h, g_ref[6:7, :], be_ref[6:7, :], mask)
        out_ref[...] = jnp.maximum(h + res_ref[...], 0.0).astype(out_ref.dtype)

    return kernel


def resnet_layer_pallas(x_ncl, p):
    """x_ncl: (N, C_in, L) like PyTorch; returns (N, C_out, L) float32."""
    N, Cin, L = x_ncl.shape
    Cout = p["w1"].shape[-1]
    Cin_p = _round_up(Cin, LANE)
    Cout_p = _round_up(Cout, LANE)
    Lp = _round_up(L, SUBL)
    dci, dco = Cin_p - Cin, Cout_p - Cout

    # NCL -> NLC so channels sit on the 128-lane axis; pad channels for
    # lane-dense matmuls and pre-bake the conv halo (+ L padding) so the
    # kernel needs no input copy / halo zeroing. bf16 operands feed the MXU;
    # zero-padded weight rows/cols keep padded channels at exactly zero.
    x = jnp.transpose(x_ncl, (0, 2, 1)).astype(jnp.float32)
    x = jnp.pad(x, ((0, 0), (2, 2 + Lp - L), (0, dci))).astype(jnp.bfloat16)

    w1 = jnp.pad(p["w1"], ((0, 0), (0, dci), (0, dco))).astype(jnp.bfloat16)
    wr = jnp.pad(p["wr"], ((0, 0), (0, 0), (0, dco), (0, dco))
                 ).astype(jnp.bfloat16).reshape(6 * 5, Cout_p, Cout_p)
    wd = jnp.pad(p["wd"], ((0, dci), (0, dco))).astype(jnp.bfloat16)
    g = jnp.pad(p["g"], ((0, 0), (0, dco)), constant_values=1.0
                ).astype(jnp.float32)
    be = jnp.pad(p["be"], ((0, 0), (0, dco))).astype(jnp.float32)
    gd = jnp.pad(p["gd"], ((0, 0), (0, dco)), constant_values=1.0
                 ).astype(jnp.float32)
    bed = jnp.pad(p["bed"], ((0, 0), (0, dco))).astype(jnp.float32)

    inputs = (x, w1, wr, wd, g, be, gd, bed)
    scratch = [
        pltpu.VMEM((N, Lp + 4, Cout_p), jnp.bfloat16),  # padded activations
        pltpu.VMEM((N, Lp, Cout_p), jnp.float32),       # downsample residual
    ]

    # Generation-aware VMEM budget sized from the real in-kernel footprint
    # (resident inputs/output/scratch plus the transient f32 matmul / BN
    # temporaries of one layer).
    in_bytes = sum(int(a.size) * a.dtype.itemsize for a in inputs)
    out_bytes = N * Lp * Cout_p * 4
    scratch_bytes = N * (Lp + 4) * Cout_p * 2 + N * Lp * Cout_p * 4
    tmp_bytes = 6 * N * Lp * Cout_p * 4 + N * Lp * max(Cin_p, Cout_p) * 2
    footprint = in_bytes + out_bytes + scratch_bytes + tmp_bytes
    try:
        phys = int(pltpu.get_tpu_info().vmem_capacity_bytes)
    except Exception:  # conservative fallback if hw query is unavailable
        phys = 128 << 20
    budget = min(phys - (8 << 20), 100 << 20)   # leave Mosaic scratch headroom
    vmem_limit = int(min(budget, max(32 << 20, footprint)))

    kernel = _make_kernel(N, L, Lp, Cin_p, Cout_p)
    out_nlc = pl.pallas_call(
        kernel,
        out_shape=jax.ShapeDtypeStruct((N, Lp, Cout_p), jnp.float32),
        in_specs=[pl.BlockSpec(memory_space=pltpu.MemorySpace.VMEM)]
        * len(inputs),
        out_specs=pl.BlockSpec(memory_space=pltpu.MemorySpace.VMEM),
        scratch_shapes=scratch,
        compiler_params=pltpu.CompilerParams(vmem_limit_bytes=vmem_limit),
    )(*inputs)
    return jnp.transpose(out_nlc[:, :L, :Cout], (0, 2, 1))


def resnet_layer_ref(x_ncl, p):
    """Pure-JAX f32 reference of the same forward (with conv biases)."""
    x = jnp.transpose(x_ncl, (0, 2, 1))
    L = x.shape[1]

    def conv5(h, w, b):
        hp = jnp.pad(h, ((0, 0), (2, 2), (0, 0)))
        acc = sum(jnp.einsum("nlc,cd->nld", hp[:, k:k + L, :], w[k])
                  for k in range(5))
        return acc + b.reshape(1, 1, -1)

    def bn(h, gamma, beta):
        m = jnp.mean(h, axis=(0, 1), keepdims=True)
        v = jnp.mean((h - m) ** 2, axis=(0, 1), keepdims=True)
        return (gamma.reshape(1, 1, -1) * (h - m) * jax.lax.rsqrt(v + EPS)
                + beta.reshape(1, 1, -1))

    out = jax.nn.relu(bn(conv5(x, p["w1"], p["b1"][0]), p["g"][0], p["be"][0]))
    for i in range(6):
        out = bn(conv5(out, p["wr"][i], p["br"][i]), p["g"][i + 1],
                 p["be"][i + 1])
        if i < 4:
            out = jax.nn.relu(out)
    res = jnp.einsum("nlc,cd->nld", x, p["wd"]) + p["bd"][0].reshape(1, 1, -1)
    res = bn(res, p["gd"][0], p["bed"][0])
    return jnp.transpose(jax.nn.relu(out + res), (0, 2, 1))


def init_params(key, cin, cout):
    """Deterministic synthetic parameters matching the module's __init__."""
    ks = jax.random.split(key, 10)

    def u(k, shape, scale):
        return scale * jax.random.uniform(k, shape, jnp.float32, -1.0, 1.0)

    s1 = 1.0 / math.sqrt(cin * 5)    # conv1: Conv1d(in, out, 5)
    sr = 1.0 / math.sqrt(cout * 5)   # conv2..7: Conv1d(out, out, 5)
    sd = 1.0 / math.sqrt(cin * 1)    # downsample: Conv1d(in, out, 1)
    return {
        "w1": u(ks[0], (5, cin, cout), s1),        # (K, Cin, Cout)
        "b1": u(ks[1], (1, cout), s1),
        "wr": u(ks[2], (6, 5, cout, cout), sr),    # convs 2..7 stacked
        "br": u(ks[3], (6, cout), sr),
        "g": 1.0 + 0.1 * u(ks[4], (7, cout), 1.0),  # bn1..bn7 gamma
        "be": 0.1 * u(ks[5], (7, cout), 1.0),       # bn1..bn7 beta
        "wd": u(ks[6], (cin, cout), sd),            # downsample 1x1 conv
        "bd": u(ks[7], (1, cout), sd),
        "gd": 1.0 + 0.1 * u(ks[8], (1, cout), 1.0),
        "bed": 0.1 * u(ks[9], (1, cout), 1.0),
    }


if __name__ == "__main__":
    key = jax.random.PRNGKey(0)
    kx, kp = jax.random.split(key)
    N, Cin, Cout, L = 2, 4, 8, 16
    x = jax.random.normal(kx, (N, Cin, L), jnp.float32)  # PyTorch NCL layout
    params = init_params(kp, Cin, Cout)

    y = jax.block_until_ready(resnet_layer_pallas(x, params))
    y_ref = resnet_layer_ref(x, params)

    assert y.shape == (N, Cout, L), y.shape
    # bf16 MXU operands (f32 accumulation) -> loosened tolerance vs f32 ref.
    assert jnp.allclose(y, y_ref, atol=5e-2, rtol=5e-2), \
        float(jnp.max(jnp.abs(y - y_ref)))
    print("KERNEL_OK")
</pallas_src>

<mosaic_0001>
module attributes {stable_mosaic.version = 11 : i64} {
  func.func @kernel(%arg0: memref<2x20x128xbf16, #tpu.memory_space<vmem>>, %arg1: memref<5x128x128xbf16, #tpu.memory_space<vmem>>, %arg2: memref<30x128x128xbf16, #tpu.memory_space<vmem>>, %arg3: memref<128x128xbf16, #tpu.memory_space<vmem>>, %arg4: memref<7x128xf32, #tpu.memory_space<vmem>>, %arg5: memref<7x128xf32, #tpu.memory_space<vmem>>, %arg6: memref<1x128xf32, #tpu.memory_space<vmem>>, %arg7: memref<1x128xf32, #tpu.memory_space<vmem>>, %arg8: memref<2x16x128xf32, #tpu.memory_space<vmem>>, %arg9: memref<2x20x128xbf16, #tpu.memory_space<vmem>>, %arg10: memref<2x16x128xf32, #tpu.memory_space<vmem>>) attributes {dimension_semantics = [], scalar_prefetch = 0 : i64, scratch_operands = 2 : i64, tpu.core_type = #tpu.core_type<tc>} {
    %cst = arith.constant 0.000000e+00 : bf16
    %0 = vector.broadcast %cst : bf16 to vector<2x2x128xbf16>
    %c0 = arith.constant 0 : index
    %c0_0 = arith.constant 0 : index
    %c0_1 = arith.constant 0 : index
    %1 = vector.load %arg9[%c0, %c0_0, %c0_1] : memref<2x20x128xbf16, #tpu.memory_space<vmem>>, vector<2x2x128xbf16>
    tpu.vector_store %arg9[%c0, %c0_0, %c0_1], %0 {strides = array<i32>} : memref<2x20x128xbf16, #tpu.memory_space<vmem>>, vector<2x2x128xbf16>,
    %cst_2 = arith.constant 0.000000e+00 : bf16
    %2 = vector.broadcast %cst_2 : bf16 to vector<2x2x128xbf16>
    %c0_3 = arith.constant 0 : index
    %c18 = arith.constant 18 : index
    %c0_4 = arith.constant 0 : index
    %3 = vector.load %arg9[%c0_3, %c18, %c0_4] : memref<2x20x128xbf16, #tpu.memory_space<vmem>>, vector<2x2x128xbf16>
    tpu.vector_store %arg9[%c0_3, %c18, %c0_4], %2 {strides = array<i32>} : memref<2x20x128xbf16, #tpu.memory_space<vmem>>, vector<2x2x128xbf16>,
    %c0_5 = arith.constant 0 : index
    %c2 = arith.constant 2 : index
    %c0_6 = arith.constant 0 : index
    %4 = vector.load %arg0[%c0_5, %c2, %c0_6] : memref<2x20x128xbf16, #tpu.memory_space<vmem>>, vector<2x16x128xbf16>
    %5 = vector.shape_cast %4 : vector<2x16x128xbf16> to vector<32x128xbf16>
    %c0_7 = arith.constant 0 : index
    %c0_8 = arith.constant 0 : index
    %6 = vector.load %arg3[%c0_7, %c0_8] : memref<128x128xbf16, #tpu.memory_space<vmem>>, vector<128x128xbf16>
    %cst_9 = arith.constant dense<0.000000e+00> : vector<32x128xf32>
    %7 = tpu.matmul %5, %6, %cst_9 {dimension_numbers = #tpu.dot_dimension_numbers<[1], [0], [0], [1], [0, 0, 1, 1], [], []>} : vector<32x128xbf16>, vector<128x128xbf16>, vector<32x128xf32> -> vector<32x128xf32>
    %8 = vector.shape_cast %7 : vector<32x128xf32> to vector<2x16x128xf32>
    %c0_10 = arith.constant 0 : index
    %c0_11 = arith.constant 0 : index
    %9 = vector.load %arg6[%c0_10, %c0_11] : memref<1x128xf32, #tpu.memory_space<vmem>>, vector<1x128xf32>
    %c0_12 = arith.constant 0 : index
    %c0_13 = arith.constant 0 : index
    %10 = vector.load %arg7[%c0_12, %c0_13] : memref<1x128xf32, #tpu.memory_space<vmem>>, vector<1x128xf32>
    %cst_14 = arith.constant dense<0.000000e+00> : vector<2x128xf32>
    %11 = vector.multi_reduction <add>, %8, %cst_14 [1] : vector<2x16x128xf32> to vector<2x128xf32>
    %12 = vector.shape_cast %11 : vector<2x128xf32> to vector<2x1x128xf32>
    %cst_15 = arith.constant dense<0.000000e+00> : vector<1x128xf32>
    %13 = vector.multi_reduction <add>, %12, %cst_15 [0] : vector<2x1x128xf32> to vector<1x128xf32>
    %14 = vector.shape_cast %13 : vector<1x128xf32> to vector<1x1x128xf32>
    %cst_16 = arith.constant 3.125000e-02 : f32
    %15 = vector.broadcast %cst_16 : f32 to vector<1x1x128xf32>
    %16 = arith.mulf %14, %15 : vector<1x1x128xf32>
    %17 = vector.broadcast %16 : vector<1x1x128xf32> to vector<2x16x128xf32>
    %18 = arith.subf %8, %17 : vector<2x16x128xf32>
    %19 = arith.mulf %18, %18 : vector<2x16x128xf32>
    %cst_17 = arith.constant dense<0.000000e+00> : vector<2x128xf32>
    %20 = vector.multi_reduction <add>, %19, %cst_17 [1] : vector<2x16x128xf32> to vector<2x128xf32>
    %21 = vector.shape_cast %20 : vector<2x128xf32> to vector<2x1x128xf32>
    %cst_18 = arith.constant dense<0.000000e+00> : vector<1x128xf32>
    %22 = vector.multi_reduction <add>, %21, %cst_18 [0] : vector<2x1x128xf32> to vector<1x128xf32>
    %23 = vector.shape_cast %22 : vector<1x128xf32> to vector<1x1x128xf32>
    %cst_19 = arith.constant 3.125000e-02 : f32
    %24 = vector.broadcast %cst_19 : f32 to vector<1x1x128xf32>
    %25 = arith.mulf %23, %24 : vector<1x1x128xf32>
    %26 = vector.shape_cast %9 : vector<1x128xf32> to vector<1x1x128xf32>
    %cst_20 = arith.constant 9.99999974E-6 : f32
    %27 = vector.broadcast %cst_20 : f32 to vector<1x1x128xf32>
    %28 = arith.addf %25, %27 : vector<1x1x128xf32>
    %29 = math.rsqrt %28 : vector<1x1x128xf32>
    %30 = arith.mulf %26, %29 : vector<1x1x128xf32>
    %31 = vector.broadcast %30 : vector<1x1x128xf32> to vector<2x16x128xf32>
    %32 = arith.mulf %18, %31 : vector<2x16x128xf32>
    %33 = vector.shape_cast %10 : vector<1x128xf32> to vector<1x1x128xf32>
    %34 = vector.broadcast %33 : vector<1x1x128xf32> to vector<2x16x128xf32>
    %35 = arith.addf %32, %34 : vector<2x16x128xf32>
    %c0_21 = arith.constant 0 : index
    %c0_22 = arith.constant 0 : index
    %c0_23 = arith.constant 0 : index
    %36 = vector.load %arg10[%c0_21, %c0_22, %c0_23] : memref<2x16x128xf32, #tpu.memory_space<vmem>>, vector<2x16x128xf32>
    tpu.vector_store %arg10[%c0_21, %c0_22, %c0_23], %35 {strides = array<i32>} : memref<2x16x128xf32, #tpu.memory_space<vmem>>, vector<2x16x128xf32>,
    %c0_24 = arith.constant 0 : index
    %c0_25 = arith.constant 0 : index
    %c0_26 = arith.constant 0 : index
    %37 = vector.load %arg0[%c0_24, %c0_25, %c0_26] : memref<2x20x128xbf16, #tpu.memory_space<vmem>>, vector<2x16x128xbf16>
    %38 = vector.shape_cast %37 : vector<2x16x128xbf16> to vector<32x128xbf16>
    %c0_27 = arith.constant 0 : index
    %c0_28 = arith.constant 0 : index
    %c0_29 = arith.constant 0 : index
    %39 = vector.load %arg1[%c0_27, %c0_28, %c0_29] : memref<5x128x128xbf16, #tpu.memory_space<vmem>>, vector<1x128x128xbf16>
    %40 = vector.shape_cast %39 : vector<1x128x128xbf16> to vector<128x128xbf16>
    %cst_30 = arith.constant dense<0.000000e+00> : vector<32x128xf32>
    %41 = tpu.matmul %38, %40, %cst_30 {dimension_numbers = #tpu.dot_dimension_numbers<[1], [0], [0], [1], [0, 0, 1, 1], [], []>} : vector<32x128xbf16>, vector<128x128xbf16>, vector<32x128xf32> -> vector<32x128xf32>
    %c0_31 = arith.constant 0 : index
    %c1 = arith.constant 1 : index
    %c0_32 = arith.constant 0 : index
    %42 = vector.load %arg0[%c0_31, %c1, %c0_32] : memref<2x20x128xbf16, #tpu.memory_space<vmem>>, vector<2x16x128xbf16>
    %43 = vector.shape_cast %42 : vector<2x16x128xbf16> to vector<32x128xbf16>
    %c1_33 = arith.constant 1 : index
    %c0_34 = arith.constant 0 : index
    %c0_35 = arith.constant 0 : index
    %44 = vector.load %arg1[%c1_33, %c0_34, %c0_35] : memref<5x128x128xbf16, #tpu.memory_space<vmem>>, vector<1x128x128xbf16>
    %45 = vector.shape_cast %44 : vector<1x128x128xbf16> to vector<128x128xbf16>
    %cst_36 = arith.constant dense<0.000000e+00> : vector<32x128xf32>
    %46 = tpu.matmul %43, %45, %cst_36 {dimension_numbers = #tpu.dot_dimension_numbers<[1], [0], [0], [1], [0, 0, 1, 1], [], []>} : vector<32x128xbf16>, vector<128x128xbf16>, vector<32x128xf32> -> vector<32x128xf32>
    %47 = arith.addf %41, %46 : vector<32x128xf32>
    %c0_37 = arith.constant 0 : index
    %c2_38 = arith.constant 2 : index
    %c0_39 = arith.constant 0 : index
    %48 = vector.load %arg0[%c0_37, %c2_38, %c0_39] : memref<2x20x128xbf16, #tpu.memory_space<vmem>>, vector<2x16x128xbf16>
    %49 = vector.shape_cast %48 : vector<2x16x128xbf16> to vector<32x128xbf16>
    %c2_40 = arith.constant 2 : index
    %c0_41 = arith.constant 0 : index
    %c0_42 = arith.constant 0 : index
    %50 = vector.load %arg1[%c2_40, %c0_41, %c0_42] : memref<5x128x128xbf16, #tpu.memory_space<vmem>>, vector<1x128x128xbf16>
    %51 = vector.shape_cast %50 : vector<1x128x128xbf16> to vector<128x128xbf16>
    %cst_43 = arith.constant dense<0.000000e+00> : vector<32x128xf32>
    %52 = tpu.matmul %49, %51, %cst_43 {dimension_numbers = #tpu.dot_dimension_numbers<[1], [0], [0], [1], [0, 0, 1, 1], [], []>} : vector<32x128xbf16>, vector<128x128xbf16>, vector<32x128xf32> -> vector<32x128xf32>
    %53 = arith.addf %47, %52 : vector<32x128xf32>
    %c0_44 = arith.constant 0 : index
    %c3 = arith.constant 3 : index
    %c0_45 = arith.constant 0 : index
    %54 = vector.load %arg0[%c0_44, %c3, %c0_45] : memref<2x20x128xbf16, #tpu.memory_space<vmem>>, vector<2x16x128xbf16>
    %55 = vector.shape_cast %54 : vector<2x16x128xbf16> to vector<32x128xbf16>
    %c3_46 = arith.constant 3 : index
    %c0_47 = arith.constant 0 : index
    %c0_48 = arith.constant 0 : index
    %56 = vector.load %arg1[%c3_46, %c0_47, %c0_48] : memref<5x128x128xbf16, #tpu.memory_space<vmem>>, vector<1x128x128xbf16>
    %57 = vector.shape_cast %56 : vector<1x128x128xbf16> to vector<128x128xbf16>
    %cst_49 = arith.constant dense<0.000000e+00> : vector<32x128xf32>
    %58 = tpu.matmul %55, %57, %cst_49 {dimension_numbers = #tpu.dot_dimension_numbers<[1], [0], [0], [1], [0, 0, 1, 1], [], []>} : vector<32x128xbf16>, vector<128x128xbf16>, vector<32x128xf32> -> vector<32x128xf32>
    %59 = arith.addf %53, %58 : vector<32x128xf32>
    %c0_50 = arith.constant 0 : index
    %c4 = arith.constant 4 : index
    %c0_51 = arith.constant 0 : index
    %60 = vector.load %arg0[%c0_50, %c4, %c0_51] : memref<2x20x128xbf16, #tpu.memory_space<vmem>>, vector<2x16x128xbf16>
    %61 = vector.shape_cast %60 : vector<2x16x128xbf16> to vector<32x128xbf16>
    %c4_52 = arith.constant 4 : index
    %c0_53 = arith.constant 0 : index
    %c0_54 = arith.constant 0 : index
    %62 = vector.load %arg1[%c4_52, %c0_53, %c0_54] : memref<5x128x128xbf16, #tpu.memory_space<vmem>>, vector<1x128x128xbf16>
    %63 = vector.shape_cast %62 : vector<1x128x128xbf16> to vector<128x128xbf16>
    %cst_55 = arith.constant dense<0.000000e+00> : vector<32x128xf32>
    %64 = tpu.matmul %61, %63, %cst_55 {dimension_numbers = #tpu.dot_dimension_numbers<[1], [0], [0], [1], [0, 0, 1, 1], [], []>} : vector<32x128xbf16>, vector<128x128xbf16>, vector<32x128xf32> -> vector<32x128xf32>
    %65 = arith.addf %59, %64 : vector<32x128xf32>
    %66 = vector.shape_cast %65 : vector<32x128xf32> to vector<2x16x128xf32>
    %c0_56 = arith.constant 0 : index
    %c0_57 = arith.constant 0 : index
    %67 = vector.load %arg4[%c0_56, %c0_57] : memref<7x128xf32, #tpu.memory_space<vmem>>, vector<1x128xf32>
    %c0_58 = arith.constant 0 : index
    %c0_59 = arith.constant 0 : index
    %68 = vector.load %arg5[%c0_58, %c0_59] : memref<7x128xf32, #tpu.memory_space<vmem>>, vector<1x128xf32>
    %cst_60 = arith.constant dense<0.000000e+00> : vector<2x128xf32>
    %69 = vector.multi_reduction <add>, %66, %cst_60 [1] : vector<2x16x128xf32> to vector<2x128xf32>
    %70 = vector.shape_cast %69 : vector<2x128xf32> to vector<2x1x128xf32>
    %cst_61 = arith.constant dense<0.000000e+00> : vector<1x128xf32>
    %71 = vector.multi_reduction <add>, %70, %cst_61 [0] : vector<2x1x128xf32> to vector<1x128xf32>
    %72 = vector.shape_cast %71 : vector<1x128xf32> to vector<1x1x128xf32>
    %cst_62 = arith.constant 3.125000e-02 : f32
    %73 = vector.broadcast %cst_62 : f32 to vector<1x1x128xf32>
    %74 = arith.mulf %72, %73 : vector<1x1x128xf32>
    %75 = vector.broadcast %74 : vector<1x1x128xf32> to vector<2x16x128xf32>
    %76 = arith.subf %66, %75 : vector<2x16x128xf32>
    %77 = arith.mulf %76, %76 : vector<2x16x128xf32>
    %cst_63 = arith.constant dense<0.000000e+00> : vector<2x128xf32>
    %78 = vector.multi_reduction <add>, %77, %cst_63 [1] : vector<2x16x128xf32> to vector<2x128xf32>
    %79 = vector.shape_cast %78 : vector<2x128xf32> to vector<2x1x128xf32>
    %cst_64 = arith.constant dense<0.000000e+00> : vector<1x128xf32>
    %80 = vector.multi_reduction <add>, %79, %cst_64 [0] : vector<2x1x128xf32> to vector<1x128xf32>
    %81 = vector.shape_cast %80 : vector<1x128xf32> to vector<1x1x128xf32>
    %cst_65 = arith.constant 3.125000e-02 : f32
    %82 = vector.broadcast %cst_65 : f32 to vector<1x1x128xf32>
    %83 = arith.mulf %81, %82 : vector<1x1x128xf32>
    %84 = vector.shape_cast %67 : vector<1x128xf32> to vector<1x1x128xf32>
    %cst_66 = arith.constant 9.99999974E-6 : f32
    %85 = vector.broadcast %cst_66 : f32 to vector<1x1x128xf32>
    %86 = arith.addf %83, %85 : vector<1x1x128xf32>
    %87 = math.rsqrt %86 : vector<1x1x128xf32>
    %88 = arith.mulf %84, %87 : vector<1x1x128xf32>
    %89 = vector.broadcast %88 : vector<1x1x128xf32> to vector<2x16x128xf32>
    %90 = arith.mulf %76, %89 : vector<2x16x128xf32>
    %91 = vector.shape_cast %68 : vector<1x128xf32> to vector<1x1x128xf32>
    %92 = vector.broadcast %91 : vector<1x1x128xf32> to vector<2x16x128xf32>
    %93 = arith.addf %90, %92 : vector<2x16x128xf32>
    %cst_67 = arith.constant 0.000000e+00 : f32
    %94 = vector.broadcast %cst_67 : f32 to vector<2x16x128xf32>
    %95 = arith.maximumf %93, %94 : vector<2x16x128xf32>
    %96 = arith.truncf %95 : vector<2x16x128xf32> to vector<2x16x128xbf16>
    %c0_68 = arith.constant 0 : index
    %c2_69 = arith.constant 2 : index
    %c0_70 = arith.constant 0 : index
    %97 = vector.load %arg9[%c0_68, %c2_69, %c0_70] : memref<2x20x128xbf16, #tpu.memory_space<vmem>>, vector<2x16x128xbf16>
    tpu.vector_store %arg9[%c0_68, %c2_69, %c0_70], %96 {strides = array<i32>} : memref<2x20x128xbf16, #tpu.memory_space<vmem>>, vector<2x16x128xbf16>,
    %c0_71 = arith.constant 0 : index
    %c0_72 = arith.constant 0 : index
    %c0_73 = arith.constant 0 : index
    %98 = vector.load %arg9[%c0_71, %c0_72, %c0_73] : memref<2x20x128xbf16, #tpu.memory_space<vmem>>, vector<2x16x128xbf16>
    %99 = vector.shape_cast %98 : vector<2x16x128xbf16> to vector<32x128xbf16>
    %c0_74 = arith.constant 0 : index
    %c0_75 = arith.constant 0 : index
    %c0_76 = arith.constant 0 : index
    %100 = vector.load %arg2[%c0_74, %c0_75, %c0_76] : memref<30x128x128xbf16, #tpu.memory_space<vmem>>, vector<1x128x128xbf16>
    %101 = vector.shape_cast %100 : vector<1x128x128xbf16> to vector<128x128xbf16>
    %cst_77 = arith.constant dense<0.000000e+00> : vector<32x128xf32>
    %102 = tpu.matmul %99, %101, %cst_77 {dimension_numbers = #tpu.dot_dimension_numbers<[1], [0], [0], [1], [0, 0, 1, 1], [], []>} : vector<32x128xbf16>, vector<128x128xbf16>, vector<32x128xf32> -> vector<32x128xf32>
    %c0_78 = arith.constant 0 : index
    %c1_79 = arith.constant 1 : index
    %c0_80 = arith.constant 0 : index
    %103 = vector.load %arg9[%c0_78, %c1_79, %c0_80] : memref<2x20x128xbf16, #tpu.memory_space<vmem>>, vector<2x16x128xbf16>
    %104 = vector.shape_cast %103 : vector<2x16x128xbf16> to vector<32x128xbf16>
    %c1_81 = arith.constant 1 : index
    %c0_82 = arith.constant 0 : index
    %c0_83 = arith.constant 0 : index
    %105 = vector.load %arg2[%c1_81, %c0_82, %c0_83] : memref<30x128x128xbf16, #tpu.memory_space<vmem>>, vector<1x128x128xbf16>
    %106 = vector.shape_cast %105 : vector<1x128x128xbf16> to vector<128x128xbf16>
    %cst_84 = arith.constant dense<0.000000e+00> : vector<32x128xf32>
    %107 = tpu.matmul %104, %106, %cst_84 {dimension_numbers = #tpu.dot_dimension_numbers<[1], [0], [0], [1], [0, 0, 1, 1], [], []>} : vector<32x128xbf16>, vector<128x128xbf16>, vector<32x128xf32> -> vector<32x128xf32>
    %108 = arith.addf %102, %107 : vector<32x128xf32>
    %c0_85 = arith.constant 0 : index
    %c2_86 = arith.constant 2 : index
    %c0_87 = arith.constant 0 : index
    %109 = vector.load %arg9[%c0_85, %c2_86, %c0_87] : memref<2x20x128xbf16, #tpu.memory_space<vmem>>, vector<2x16x128xbf16>
    %110 = vector.shape_cast %109 : vector<2x16x128xbf16> to vector<32x128xbf16>
    %c2_88 = arith.constant 2 : index
    %c0_89 = arith.constant 0 : index
    %c0_90 = arith.constant 0 : index
    %111 = vector.load %arg2[%c2_88, %c0_89, %c0_90] : memref<30x128x128xbf16, #tpu.memory_space<vmem>>, vector<1x128x128xbf16>
    %112 = vector.shape_cast %111 : vector<1x128x128xbf16> to vector<128x128xbf16>
    %cst_91 = arith.constant dense<0.000000e+00> : vector<32x128xf32>
    %113 = tpu.matmul %110, %112, %cst_91 {dimension_numbers = #tpu.dot_dimension_numbers<[1], [0], [0], [1], [0, 0, 1, 1], [], []>} : vector<32x128xbf16>, vector<128x128xbf16>, vector<32x128xf32> -> vector<32x128xf32>
    %114 = arith.addf %108, %113 : vector<32x128xf32>
    %c0_92 = arith.constant 0 : index
    %c3_93 = arith.constant 3 : index
    %c0_94 = arith.constant 0 : index
    %115 = vector.load %arg9[%c0_92, %c3_93, %c0_94] : memref<2x20x128xbf16, #tpu.memory_space<vmem>>, vector<2x16x128xbf16>
    %116 = vector.shape_cast %115 : vector<2x16x128xbf16> to vector<32x128xbf16>
    %c3_95 = arith.constant 3 : index
    %c0_96 = arith.constant 0 : index
    %c0_97 = arith.constant 0 : index
    %117 = vector.load %arg2[%c3_95, %c0_96, %c0_97] : memref<30x128x128xbf16, #tpu.memory_space<vmem>>, vector<1x128x128xbf16>
    %118 = vector.shape_cast %117 : vector<1x128x128xbf16> to vector<128x128xbf16>
    %cst_98 = arith.constant dense<0.000000e+00> : vector<32x128xf32>
    %119 = tpu.matmul %116, %118, %cst_98 {dimension_numbers = #tpu.dot_dimension_numbers<[1], [0], [0], [1], [0, 0, 1, 1], [], []>} : vector<32x128xbf16>, vector<128x128xbf16>, vector<32x128xf32> -> vector<32x128xf32>
    %120 = arith.addf %114, %119 : vector<32x128xf32>
    %c0_99 = arith.constant 0 : index
    %c4_100 = arith.constant 4 : index
    %c0_101 = arith.constant 0 : index
    %121 = vector.load %arg9[%c0_99, %c4_100, %c0_101] : memref<2x20x128xbf16, #tpu.memory_space<vmem>>, vector<2x16x128xbf16>
    %122 = vector.shape_cast %121 : vector<2x16x128xbf16> to vector<32x128xbf16>
    %c4_102 = arith.constant 4 : index
    %c0_103 = arith.constant 0 : index
    %c0_104 = arith.constant 0 : index
    %123 = vector.load %arg2[%c4_102, %c0_103, %c0_104] : memref<30x128x128xbf16, #tpu.memory_space<vmem>>, vector<1x128x128xbf16>
    %124 = vector.shape_cast %123 : vector<1x128x128xbf16> to vector<128x128xbf16>
    %cst_105 = arith.constant dense<0.000000e+00> : vector<32x128xf32>
    %125 = tpu.matmul %122, %124, %cst_105 {dimension_numbers = #tpu.dot_dimension_numbers<[1], [0], [0], [1], [0, 0, 1, 1], [], []>} : vector<32x128xbf16>, vector<128x128xbf16>, vector<32x128xf32> -> vector<32x128xf32>
    %126 = arith.addf %120, %125 : vector<32x128xf32>
    %127 = vector.shape_cast %126 : vector<32x128xf32> to vector<2x16x128xf32>
    %c1_106 = arith.constant 1 : index
    %c0_107 = arith.constant 0 : index
    %128 = vector.load %arg4[%c1_106, %c0_107] : memref<7x128xf32, #tpu.memory_space<vmem>>, vector<1x128xf32>
    %c1_108 = arith.constant 1 : index
    %c0_109 = arith.constant 0 : index
    %129 = vector.load %arg5[%c1_108, %c0_109] : memref<7x128xf32, #tpu.memory_space<vmem>>, vector<1x128xf32>
    %cst_110 = arith.constant dense<0.000000e+00> : vector<2x128xf32>
    %130 = vector.multi_reduction <add>, %127, %cst_110 [1] : vector<2x16x128xf32> to vector<2x128xf32>
    %131 = vector.shape_cast %130 : vector<2x128xf32> to vector<2x1x128xf32>
    %cst_111 = arith.constant dense<0.000000e+00> : vector<1x128xf32>
    %132 = vector.multi_reduction <add>, %131, %cst_111 [0] : vector<2x1x128xf32> to vector<1x128xf32>
    %133 = vector.shape_cast %132 : vector<1x128xf32> to vector<1x1x128xf32>
    %cst_112 = arith.constant 3.125000e-02 : f32
    %134 = vector.broadcast %cst_112 : f32 to vector<1x1x128xf32>
    %135 = arith.mulf %133, %134 : vector<1x1x128xf32>
    %136 = vector.broadcast %135 : vector<1x1x128xf32> to vector<2x16x128xf32>
    %137 = arith.subf %127, %136 : vector<2x16x128xf32>
    %138 = arith.mulf %137, %137 : vector<2x16x128xf32>
    %cst_113 = arith.constant dense<0.000000e+00> : vector<2x128xf32>
    %139 = vector.multi_reduction <add>, %138, %cst_113 [1] : vector<2x16x128xf32> to vector<2x128xf32>
    %140 = vector.shape_cast %139 : vector<2x128xf32> to vector<2x1x128xf32>
    %cst_114 = arith.constant dense<0.000000e+00> : vector<1x128xf32>
    %141 = vector.multi_reduction <add>, %140, %cst_114 [0] : vector<2x1x128xf32> to vector<1x128xf32>
    %142 = vector.shape_cast %141 : vector<1x128xf32> to vector<1x1x128xf32>
    %cst_115 = arith.constant 3.125000e-02 : f32
    %143 = vector.broadcast %cst_115 : f32 to vector<1x1x128xf32>
    %144 = arith.mulf %142, %143 : vector<1x1x128xf32>
    %145 = vector.shape_cast %128 : vector<1x128xf32> to vector<1x1x128xf32>
    %cst_116 = arith.constant 9.99999974E-6 : f32
    %146 = vector.broadcast %cst_116 : f32 to vector<1x1x128xf32>
    %147 = arith.addf %144, %146 : vector<1x1x128xf32>
    %148 = math.rsqrt %147 : vector<1x1x128xf32>
    %149 = arith.mulf %145, %148 : vector<1x1x128xf32>
    %150 = vector.broadcast %149 : vector<1x1x128xf32> to vector<2x16x128xf32>
    %151 = arith.mulf %137, %150 : vector<2x16x128xf32>
    %152 = vector.shape_cast %129 : vector<1x128xf32> to vector<1x1x128xf32>
    %153 = vector.broadcast %152 : vector<1x1x128xf32> to vector<2x16x128xf32>
    %154 = arith.addf %151, %153 : vector<2x16x128xf32>
    %cst_117 = arith.constant 0.000000e+00 : f32
    %155 = vector.broadcast %cst_117 : f32 to vector<2x16x128xf32>
    %156 = arith.maximumf %154, %155 : vector<2x16x128xf32>
    %157 = arith.truncf %156 : vector<2x16x128xf32> to vector<2x16x128xbf16>
    %c0_118 = arith.constant 0 : index
    %c2_119 = arith.constant 2 : index
    %c0_120 = arith.constant 0 : index
    %158 = vector.load %arg9[%c0_118, %c2_119, %c0_120] : memref<2x20x128xbf16, #tpu.memory_space<vmem>>, vector<2x16x128xbf16>
    tpu.vector_store %arg9[%c0_118, %c2_119, %c0_120], %157 {strides = array<i32>} : memref<2x20x128xbf16, #tpu.memory_space<vmem>>, vector<2x16x128xbf16>,
    %c0_121 = arith.constant 0 : index
    %c0_122 = arith.constant 0 : index
    %c0_123 = arith.constant 0 : index
    %159 = vector.load %arg9[%c0_121, %c0_122, %c0_123] : memref<2x20x128xbf16, #tpu.memory_space<vmem>>, vector<2x16x128xbf16>
    %160 = vector.shape_cast %159 : vector<2x16x128xbf16> to vector<32x128xbf16>
    %c5 = arith.constant 5 : index
    %c0_124 = arith.constant 0 : index
    %c0_125 = arith.constant 0 : index
    %161 = vector.load %arg2[%c5, %c0_124, %c0_125] : memref<30x128x128xbf16, #tpu.memory_space<vmem>>, vector<1x128x128xbf16>
    %162 = vector.shape_cast %161 : vector<1x128x128xbf16> to vector<128x128xbf16>
    %cst_126 = arith.constant dense<0.000000e+00> : vector<32x128xf32>
    %163 = tpu.matmul %160, %162, %cst_126 {dimension_numbers = #tpu.dot_dimension_numbers<[1], [0], [0], [1], [0, 0, 1, 1], [], []>} : vector<32x128xbf16>, vector<128x128xbf16>, vector<32x128xf32> -> vector<32x128xf32>
    %c0_127 = arith.constant 0 : index
    %c1_128 = arith.constant 1 : index
    %c0_129 = arith.constant 0 : index
    %164 = vector.load %arg9[%c0_127, %c1_128, %c0_129] : memref<2x20x128xbf16, #tpu.memory_space<vmem>>, vector<2x16x128xbf16>
    %165 = vector.shape_cast %164 : vector<2x16x128xbf16> to vector<32x128xbf16>
    %c6 = arith.constant 6 : index
    %c0_130 = arith.constant 0 : index
    %c0_131 = arith.constant 0 : index
    %166 = vector.load %arg2[%c6, %c0_130, %c0_131] : memref<30x128x128xbf16, #tpu.memory_space<vmem>>, vector<1x128x128xbf16>
    %167 = vector.shape_cast %166 : vector<1x128x128xbf16> to vector<128x128xbf16>
    %cst_132 = arith.constant dense<0.000000e+00> : vector<32x128xf32>
    %168 = tpu.matmul %165, %167, %cst_132 {dimension_numbers = #tpu.dot_dimension_numbers<[1], [0], [0], [1], [0, 0, 1, 1], [], []>} : vector<32x128xbf16>, vector<128x128xbf16>, vector<32x128xf32> -> vector<32x128xf32>
    %169 = arith.addf %163, %168 : vector<32x128xf32>
    %c0_133 = arith.constant 0 : index
    %c2_134 = arith.constant 2 : index
    %c0_135 = arith.constant 0 : index
    %170 = vector.load %arg9[%c0_133, %c2_134, %c0_135] : memref<2x20x128xbf16, #tpu.memory_space<vmem>>, vector<2x16x128xbf16>
    %171 = vector.shape_cast %170 : vector<2x16x128xbf16> to vector<32x128xbf16>
    %c7 = arith.constant 7 : index
    %c0_136 = arith.constant 0 : index
    %c0_137 = arith.constant 0 : index
    %172 = vector.load %arg2[%c7, %c0_136, %c0_137] : memref<30x128x128xbf16, #tpu.memory_space<vmem>>, vector<1x128x128xbf16>
    %173 = vector.shape_cast %172 : vector<1x128x128xbf16> to vector<128x128xbf16>
    %cst_138 = arith.constant dense<0.000000e+00> : vector<32x128xf32>
    %174 = tpu.matmul %171, %173, %cst_138 {dimension_numbers = #tpu.dot_dimension_numbers<[1], [0], [0], [1], [0, 0, 1, 1], [], []>} : vector<32x128xbf16>, vector<128x128xbf16>, vector<32x128xf32> -> vector<32x128xf32>
    %175 = arith.addf %169, %174 : vector<32x128xf32>
    %c0_139 = arith.constant 0 : index
    %c3_140 = arith.constant 3 : index
    %c0_141 = arith.constant 0 : index
    %176 = vector.load %arg9[%c0_139, %c3_140, %c0_141] : memref<2x20x128xbf16, #tpu.memory_space<vmem>>, vector<2x16x128xbf16>
    %177 = vector.shape_cast %176 : vector<2x16x128xbf16> to vector<32x128xbf16>
    %c8 = arith.constant 8 : index
    %c0_142 = arith.constant 0 : index
    %c0_143 = arith.constant 0 : index
    %178 = vector.load %arg2[%c8, %c0_142, %c0_143] : memref<30x128x128xbf16, #tpu.memory_space<vmem>>, vector<1x128x128xbf16>
    %179 = vector.shape_cast %178 : vector<1x128x128xbf16> to vector<128x128xbf16>
    %cst_144 = arith.constant dense<0.000000e+00> : vector<32x128xf32>
    %180 = tpu.matmul %177, %179, %cst_144 {dimension_numbers = #tpu.dot_dimension_numbers<[1], [0], [0], [1], [0, 0, 1, 1], [], []>} : vector<32x128xbf16>, vector<128x128xbf16>, vector<32x128xf32> -> vector<32x128xf32>
    %181 = arith.addf %175, %180 : vector<32x128xf32>
    %c0_145 = arith.constant 0 : index
    %c4_146 = arith.constant 4 : index
    %c0_147 = arith.constant 0 : index
    %182 = vector.load %arg9[%c0_145, %c4_146, %c0_147] : memref<2x20x128xbf16, #tpu.memory_space<vmem>>, vector<2x16x128xbf16>
    %183 = vector.shape_cast %182 : vector<2x16x128xbf16> to vector<32x128xbf16>
    %c9 = arith.constant 9 : index
    %c0_148 = arith.constant 0 : index
    %c0_149 = arith.constant 0 : index
    %184 = vector.load %arg2[%c9, %c0_148, %c0_149] : memref<30x128x128xbf16, #tpu.memory_space<vmem>>, vector<1x128x128xbf16>
    %185 = vector.shape_cast %184 : vector<1x128x128xbf16> to vector<128x128xbf16>
    %cst_150 = arith.constant dense<0.000000e+00> : vector<32x128xf32>
    %186 = tpu.matmul %183, %185, %cst_150 {dimension_numbers = #tpu.dot_dimension_numbers<[1], [0], [0], [1], [0, 0, 1, 1], [], []>} : vector<32x128xbf16>, vector<128x128xbf16>, vector<32x128xf32> -> vector<32x128xf32>
    %187 = arith.addf %181, %186 : vector<32x128xf32>
    %188 = vector.shape_cast %187 : vector<32x128xf32> to vector<2x16x128xf32>
    %c2_151 = arith.constant 2 : index
    %c0_152 = arith.constant 0 : index
    %189 = vector.load %arg4[%c2_151, %c0_152] : memref<7x128xf32, #tpu.memory_space<vmem>>, vector<1x128xf32>
    %c2_153 = arith.constant 2 : index
    %c0_154 = arith.constant 0 : index
    %190 = vector.load %arg5[%c2_153, %c0_154] : memref<7x128xf32, #tpu.memory_space<vmem>>, vector<1x128xf32>
    %cst_155 = arith.constant dense<0.000000e+00> : vector<2x128xf32>
    %191 = vector.multi_reduction <add>, %188, %cst_155 [1] : vector<2x16x128xf32> to vector<2x128xf32>
    %192 = vector.shape_cast %191 : vector<2x128xf32> to vector<2x1x128xf32>
    %cst_156 = arith.constant dense<0.000000e+00> : vector<1x128xf32>
    %193 = vector.multi_reduction <add>, %192, %cst_156 [0] : vector<2x1x128xf32> to vector<1x128xf32>
    %194 = vector.shape_cast %193 : vector<1x128xf32> to vector<1x1x128xf32>
    %cst_157 = arith.constant 3.125000e-02 : f32
    %195 = vector.broadcast %cst_157 : f32 to vector<1x1x128xf32>
    %196 = arith.mulf %194, %195 : vector<1x1x128xf32>
    %197 = vector.broadcast %196 : vector<1x1x128xf32> to vector<2x16x128xf32>
    %198 = arith.subf %188, %197 : vector<2x16x128xf32>
    %199 = arith.mulf %198, %198 : vector<2x16x128xf32>
    %cst_158 = arith.constant dense<0.000000e+00> : vector<2x128xf32>
    %200 = vector.multi_reduction <add>, %199, %cst_158 [1] : vector<2x16x128xf32> to vector<2x128xf32>
    %201 = vector.shape_cast %200 : vector<2x128xf32> to vector<2x1x128xf32>
    %cst_159 = arith.constant dense<0.000000e+00> : vector<1x128xf32>
    %202 = vector.multi_reduction <add>, %201, %cst_159 [0] : vector<2x1x128xf32> to vector<1x128xf32>
    %203 = vector.shape_cast %202 : vector<1x128xf32> to vector<1x1x128xf32>
    %cst_160 = arith.constant 3.125000e-02 : f32
    %204 = vector.broadcast %cst_160 : f32 to vector<1x1x128xf32>
    %205 = arith.mulf %203, %204 : vector<1x1x128xf32>
    %206 = vector.shape_cast %189 : vector<1x128xf32> to vector<1x1x128xf32>
    %cst_161 = arith.constant 9.99999974E-6 : f32
    %207 = vector.broadcast %cst_161 : f32 to vector<1x1x128xf32>
    %208 = arith.addf %205, %207 : vector<1x1x128xf32>
    %209 = math.rsqrt %208 : vector<1x1x128xf32>
    %210 = arith.mulf %206, %209 : vector<1x1x128xf32>
    %211 = vector.broadcast %210 : vector<1x1x128xf32> to vector<2x16x128xf32>
    %212 = arith.mulf %198, %211 : vector<2x16x128xf32>
    %213 = vector.shape_cast %190 : vector<1x128xf32> to vector<1x1x128xf32>
    %214 = vector.broadcast %213 : vector<1x1x128xf32> to vector<2x16x128xf32>
    %215 = arith.addf %212, %214 : vector<2x16x128xf32>
    %cst_162 = arith.constant 0.000000e+00 : f32
    %216 = vector.broadcast %cst_162 : f32 to vector<2x16x128xf32>
    %217 = arith.maximumf %215, %216 : vector<2x16x128xf32>
    %218 = arith.truncf %217 : vector<2x16x128xf32> to vector<2x16x128xbf16>
    %c0_163 = arith.constant 0 : index
    %c2_164 = arith.constant 2 : index
    %c0_165 = arith.constant 0 : index
    %219 = vector.load %arg9[%c0_163, %c2_164, %c0_165] : memref<2x20x128xbf16, #tpu.memory_space<vmem>>, vector<2x16x128xbf16>
    tpu.vector_store %arg9[%c0_163, %c2_164, %c0_165], %218 {strides = array<i32>} : memref<2x20x128xbf16, #tpu.memory_space<vmem>>, vector<2x16x128xbf16>,
    %c0_166 = arith.constant 0 : index
    %c0_167 = arith.constant 0 : index
    %c0_168 = arith.constant 0 : index
    %220 = vector.load %arg9[%c0_166, %c0_167, %c0_168] : memref<2x20x128xbf16, #tpu.memory_space<vmem>>, vector<2x16x128xbf16>
    %221 = vector.shape_cast %220 : vector<2x16x128xbf16> to vector<32x128xbf16>
    %c10 = arith.constant 10 : index
    %c0_169 = arith.constant 0 : index
    %c0_170 = arith.constant 0 : index
    %222 = vector.load %arg2[%c10, %c0_169, %c0_170] : memref<30x128x128xbf16, #tpu.memory_space<vmem>>, vector<1x128x128xbf16>
    %223 = vector.shape_cast %222 : vector<1x128x128xbf16> to vector<128x128xbf16>
    %cst_171 = arith.constant dense<0.000000e+00> : vector<32x128xf32>
    %224 = tpu.matmul %221, %223, %cst_171 {dimension_numbers = #tpu.dot_dimension_numbers<[1], [0], [0], [1], [0, 0, 1, 1], [], []>} : vector<32x128xbf16>, vector<128x128xbf16>, vector<32x128xf32> -> vector<32x128xf32>
    %c0_172 = arith.constant 0 : index
    %c1_173 = arith.constant 1 : index
    %c0_174 = arith.constant 0 : index
    %225 = vector.load %arg9[%c0_172, %c1_173, %c0_174] : memref<2x20x128xbf16, #tpu.memory_space<vmem>>, vector<2x16x128xbf16>
    %226 = vector.shape_cast %225 : vector<2x16x128xbf16> to vector<32x128xbf16>
    %c11 = arith.constant 11 : index
    %c0_175 = arith.constant 0 : index
    %c0_176 = arith.constant 0 : index
    %227 = vector.load %arg2[%c11, %c0_175, %c0_176] : memref<30x128x128xbf16, #tpu.memory_space<vmem>>, vector<1x128x128xbf16>
    %228 = vector.shape_cast %227 : vector<1x128x128xbf16> to vector<128x128xbf16>
    %cst_177 = arith.constant dense<0.000000e+00> : vector<32x128xf32>
    %229 = tpu.matmul %226, %228, %cst_177 {dimension_numbers = #tpu.dot_dimension_numbers<[1], [0], [0], [1], [0, 0, 1, 1], [], []>} : vector<32x128xbf16>, vector<128x128xbf16>, vector<32x128xf32> -> vector<32x128xf32>
    %230 = arith.addf %224, %229 : vector<32x128xf32>
    %c0_178 = arith.constant 0 : index
    %c2_179 = arith.constant 2 : index
    %c0_180 = arith.constant 0 : index
    %231 = vector.load %arg9[%c0_178, %c2_179, %c0_180] : memref<2x20x128xbf16, #tpu.memory_space<vmem>>, vector<2x16x128xbf16>
    %232 = vector.shape_cast %231 : vector<2x16x128xbf16> to vector<32x128xbf16>
    %c12 = arith.constant 12 : index
    %c0_181 = arith.constant 0 : index
    %c0_182 = arith.constant 0 : index
    %233 = vector.load %arg2[%c12, %c0_181, %c0_182] : memref<30x128x128xbf16, #tpu.memory_space<vmem>>, vector<1x128x128xbf16>
    %234 = vector.shape_cast %233 : vector<1x128x128xbf16> to vector<128x128xbf16>
    %cst_183 = arith.constant dense<0.000000e+00> : vector<32x128xf32>
    %235 = tpu.matmul %232, %234, %cst_183 {dimension_numbers = #tpu.dot_dimension_numbers<[1], [0], [0], [1], [0, 0, 1, 1], [], []>} : vector<32x128xbf16>, vector<128x128xbf16>, vector<32x128xf32> -> vector<32x128xf32>
    %236 = arith.addf %230, %235 : vector<32x128xf32>
    %c0_184 = arith.constant 0 : index
    %c3_185 = arith.constant 3 : index
    %c0_186 = arith.constant 0 : index
    %237 = vector.load %arg9[%c0_184, %c3_185, %c0_186] : memref<2x20x128xbf16, #tpu.memory_space<vmem>>, vector<2x16x128xbf16>
    %238 = vector.shape_cast %237 : vector<2x16x128xbf16> to vector<32x128xbf16>
    %c13 = arith.constant 13 : index
    %c0_187 = arith.constant 0 : index
    %c0_188 = arith.constant 0 : index
    %239 = vector.load %arg2[%c13, %c0_187, %c0_188] : memref<30x128x128xbf16, #tpu.memory_space<vmem>>, vector<1x128x128xbf16>
    %240 = vector.shape_cast %239 : vector<1x128x128xbf16> to vector<128x128xbf16>
    %cst_189 = arith.constant dense<0.000000e+00> : vector<32x128xf32>
    %241 = tpu.matmul %238, %240, %cst_189 {dimension_numbers = #tpu.dot_dimension_numbers<[1], [0], [0], [1], [0, 0, 1, 1], [], []>} : vector<32x128xbf16>, vector<128x128xbf16>, vector<32x128xf32> -> vector<32x128xf32>
    %242 = arith.addf %236, %241 : vector<32x128xf32>
    %c0_190 = arith.constant 0 : index
    %c4_191 = arith.constant 4 : index
    %c0_192 = arith.constant 0 : index
    %243 = vector.load %arg9[%c0_190, %c4_191, %c0_192] : memref<2x20x128xbf16, #tpu.memory_space<vmem>>, vector<2x16x128xbf16>
    %244 = vector.shape_cast %243 : vector<2x16x128xbf16> to vector<32x128xbf16>
    %c14 = arith.constant 14 : index
    %c0_193 = arith.constant 0 : index
    %c0_194 = arith.constant 0 : index
    %245 = vector.load %arg2[%c14, %c0_193, %c0_194] : memref<30x128x128xbf16, #tpu.memory_space<vmem>>, vector<1x128x128xbf16>
    %246 = vector.shape_cast %245 : vector<1x128x128xbf16> to vector<128x128xbf16>
    %cst_195 = arith.constant dense<0.000000e+00> : vector<32x128xf32>
    %247 = tpu.matmul %244, %246, %cst_195 {dimension_numbers = #tpu.dot_dimension_numbers<[1], [0], [0], [1], [0, 0, 1, 1], [], []>} : vector<32x128xbf16>, vector<128x128xbf16>, vector<32x128xf32> -> vector<32x128xf32>
    %248 = arith.addf %242, %247 : vector<32x128xf32>
    %249 = vector.shape_cast %248 : vector<32x128xf32> to vector<2x16x128xf32>
    %c3_196 = arith.constant 3 : index
    %c0_197 = arith.constant 0 : index
    %250 = vector.load %arg4[%c3_196, %c0_197] : memref<7x128xf32, #tpu.memory_space<vmem>>, vector<1x128xf32>
    %c3_198 = arith.constant 3 : index
    %c0_199 = arith.constant 0 : index
    %251 = vector.load %arg5[%c3_198, %c0_199] : memref<7x128xf32, #tpu.memory_space<vmem>>, vector<1x128xf32>
    %cst_200 = arith.constant dense<0.000000e+00> : vector<2x128xf32>
    %252 = vector.multi_reduction <add>, %249, %cst_200 [1] : vector<2x16x128xf32> to vector<2x128xf32>
    %253 = vector.shape_cast %252 : vector<2x128xf32> to vector<2x1x128xf32>
    %cst_201 = arith.constant dense<0.000000e+00> : vector<1x128xf32>
    %254 = vector.multi_reduction <add>, %253, %cst_201 [0] : vector<2x1x128xf32> to vector<1x128xf32>
    %255 = vector.shape_cast %254 : vector<1x128xf32> to vector<1x1x128xf32>
    %cst_202 = arith.constant 3.125000e-02 : f32
    %256 = vector.broadcast %cst_202 : f32 to vector<1x1x128xf32>
    %257 = arith.mulf %255, %256 : vector<1x1x128xf32>
    %258 = vector.broadcast %257 : vector<1x1x128xf32> to vector<2x16x128xf32>
    %259 = arith.subf %249, %258 : vector<2x16x128xf32>
    %260 = arith.mulf %259, %259 : vector<2x16x128xf32>
    %cst_203 = arith.constant dense<0.000000e+00> : vector<2x128xf32>
    %261 = vector.multi_reduction <add>, %260, %cst_203 [1] : vector<2x16x128xf32> to vector<2x128xf32>
    %262 = vector.shape_cast %261 : vector<2x128xf32> to vector<2x1x128xf32>
    %cst_204 = arith.constant dense<0.000000e+00> : vector<1x128xf32>
    %263 = vector.multi_reduction <add>, %262, %cst_204 [0] : vector<2x1x128xf32> to vector<1x128xf32>
    %264 = vector.shape_cast %263 : vector<1x128xf32> to vector<1x1x128xf32>
    %cst_205 = arith.constant 3.125000e-02 : f32
    %265 = vector.broadcast %cst_205 : f32 to vector<1x1x128xf32>
    %266 = arith.mulf %264, %265 : vector<1x1x128xf32>
    %267 = vector.shape_cast %250 : vector<1x128xf32> to vector<1x1x128xf32>
    %cst_206 = arith.constant 9.99999974E-6 : f32
    %268 = vector.broadcast %cst_206 : f32 to vector<1x1x128xf32>
    %269 = arith.addf %266, %268 : vector<1x1x128xf32>
    %270 = math.rsqrt %269 : vector<1x1x128xf32>
    %271 = arith.mulf %267, %270 : vector<1x1x128xf32>
    %272 = vector.broadcast %271 : vector<1x1x128xf32> to vector<2x16x128xf32>
    %273 = arith.mulf %259, %272 : vector<2x16x128xf32>
    %274 = vector.shape_cast %251 : vector<1x128xf32> to vector<1x1x128xf32>
    %275 = vector.broadcast %274 : vector<1x1x128xf32> to vector<2x16x128xf32>
    %276 = arith.addf %273, %275 : vector<2x16x128xf32>
    %cst_207 = arith.constant 0.000000e+00 : f32
    %277 = vector.broadcast %cst_207 : f32 to vector<2x16x128xf32>
    %278 = arith.maximumf %276, %277 : vector<2x16x128xf32>
    %279 = arith.truncf %278 : vector<2x16x128xf32> to vector<2x16x128xbf16>
    %c0_208 = arith.constant 0 : index
    %c2_209 = arith.constant 2 : index
    %c0_210 = arith.constant 0 : index
    %280 = vector.load %arg9[%c0_208, %c2_209, %c0_210] : memref<2x20x128xbf16, #tpu.memory_space<vmem>>, vector<2x16x128xbf16>
    tpu.vector_store %arg9[%c0_208, %c2_209, %c0_210], %279 {strides = array<i32>} : memref<2x20x128xbf16, #tpu.memory_space<vmem>>, vector<2x16x128xbf16>,
    %c0_211 = arith.constant 0 : index
    %c0_212 = arith.constant 0 : index
    %c0_213 = arith.constant 0 : index
    %281 = vector.load %arg9[%c0_211, %c0_212, %c0_213] : memref<2x20x128xbf16, #tpu.memory_space<vmem>>, vector<2x16x128xbf16>
    %282 = vector.shape_cast %281 : vector<2x16x128xbf16> to vector<32x128xbf16>
    %c15 = arith.constant 15 : index
    %c0_214 = arith.constant 0 : index
    %c0_215 = arith.constant 0 : index
    %283 = vector.load %arg2[%c15, %c0_214, %c0_215] : memref<30x128x128xbf16, #tpu.memory_space<vmem>>, vector<1x128x128xbf16>
    %284 = vector.shape_cast %283 : vector<1x128x128xbf16> to vector<128x128xbf16>
    %cst_216 = arith.constant dense<0.000000e+00> : vector<32x128xf32>
    %285 = tpu.matmul %282, %284, %cst_216 {dimension_numbers = #tpu.dot_dimension_numbers<[1], [0], [0], [1], [0, 0, 1, 1], [], []>} : vector<32x128xbf16>, vector<128x128xbf16>, vector<32x128xf32> -> vector<32x128xf32>
    %c0_217 = arith.constant 0 : index
    %c1_218 = arith.constant 1 : index
    %c0_219 = arith.constant 0 : index
    %286 = vector.load %arg9[%c0_217, %c1_218, %c0_219] : memref<2x20x128xbf16, #tpu.memory_space<vmem>>, vector<2x16x128xbf16>
    %287 = vector.shape_cast %286 : vector<2x16x128xbf16> to vector<32x128xbf16>
    %c16 = arith.constant 16 : index
    %c0_220 = arith.constant 0 : index
    %c0_221 = arith.constant 0 : index
    %288 = vector.load %arg2[%c16, %c0_220, %c0_221] : memref<30x128x128xbf16, #tpu.memory_space<vmem>>, vector<1x128x128xbf16>
    %289 = vector.shape_cast %288 : vector<1x128x128xbf16> to vector<128x128xbf16>
    %cst_222 = arith.constant dense<0.000000e+00> : vector<32x128xf32>
    %290 = tpu.matmul %287, %289, %cst_222 {dimension_numbers = #tpu.dot_dimension_numbers<[1], [0], [0], [1], [0, 0, 1, 1], [], []>} : vector<32x128xbf16>, vector<128x128xbf16>, vector<32x128xf32> -> vector<32x128xf32>
    %291 = arith.addf %285, %290 : vector<32x128xf32>
    %c0_223 = arith.constant 0 : index
    %c2_224 = arith.constant 2 : index
    %c0_225 = arith.constant 0 : index
    %292 = vector.load %arg9[%c0_223, %c2_224, %c0_225] : memref<2x20x128xbf16, #tpu.memory_space<vmem>>, vector<2x16x128xbf16>
    %293 = vector.shape_cast %292 : vector<2x16x128xbf16> to vector<32x128xbf16>
    %c17 = arith.constant 17 : index
    %c0_226 = arith.constant 0 : index
    %c0_227 = arith.constant 0 : index
    %294 = vector.load %arg2[%c17, %c0_226, %c0_227] : memref<30x128x128xbf16, #tpu.memory_space<vmem>>, vector<1x128x128xbf16>
    %295 = vector.shape_cast %294 : vector<1x128x128xbf16> to vector<128x128xbf16>
    %cst_228 = arith.constant dense<0.000000e+00> : vector<32x128xf32>
    %296 = tpu.matmul %293, %295, %cst_228 {dimension_numbers = #tpu.dot_dimension_numbers<[1], [0], [0], [1], [0, 0, 1, 1], [], []>} : vector<32x128xbf16>, vector<128x128xbf16>, vector<32x128xf32> -> vector<32x128xf32>
    %297 = arith.addf %291, %296 : vector<32x128xf32>
    %c0_229 = arith.constant 0 : index
    %c3_230 = arith.constant 3 : index
    %c0_231 = arith.constant 0 : index
    %298 = vector.load %arg9[%c0_229, %c3_230, %c0_231] : memref<2x20x128xbf16, #tpu.memory_space<vmem>>, vector<2x16x128xbf16>
    %299 = vector.shape_cast %298 : vector<2x16x128xbf16> to vector<32x128xbf16>
    %c18_232 = arith.constant 18 : index
    %c0_233 = arith.constant 0 : index
    %c0_234 = arith.constant 0 : index
    %300 = vector.load %arg2[%c18_232, %c0_233, %c0_234] : memref<30x128x128xbf16, #tpu.memory_space<vmem>>, vector<1x128x128xbf16>
    %301 = vector.shape_cast %300 : vector<1x128x128xbf16> to vector<128x128xbf16>
    %cst_235 = arith.constant dense<0.000000e+00> : vector<32x128xf32>
    %302 = tpu.matmul %299, %301, %cst_235 {dimension_numbers = #tpu.dot_dimension_numbers<[1], [0], [0], [1], [0, 0, 1, 1], [], []>} : vector<32x128xbf16>, vector<128x128xbf16>, vector<32x128xf32> -> vector<32x128xf32>
    %303 = arith.addf %297, %302 : vector<32x128xf32>
    %c0_236 = arith.constant 0 : index
    %c4_237 = arith.constant 4 : index
    %c0_238 = arith.constant 0 : index
    %304 = vector.load %arg9[%c0_236, %c4_237, %c0_238] : memref<2x20x128xbf16, #tpu.memory_space<vmem>>, vector<2x16x128xbf16>
    %305 = vector.shape_cast %304 : vector<2x16x128xbf16> to vector<32x128xbf16>
    %c19 = arith.constant 19 : index
    %c0_239 = arith.constant 0 : index
    %c0_240 = arith.constant 0 : index
    %306 = vector.load %arg2[%c19, %c0_239, %c0_240] : memref<30x128x128xbf16, #tpu.memory_space<vmem>>, vector<1x128x128xbf16>
    %307 = vector.shape_cast %306 : vector<1x128x128xbf16> to vector<128x128xbf16>
    %cst_241 = arith.constant dense<0.000000e+00> : vector<32x128xf32>
    %308 = tpu.matmul %305, %307, %cst_241 {dimension_numbers = #tpu.dot_dimension_numbers<[1], [0], [0], [1], [0, 0, 1, 1], [], []>} : vector<32x128xbf16>, vector<128x128xbf16>, vector<32x128xf32> -> vector<32x128xf32>
    %309 = arith.addf %303, %308 : vector<32x128xf32>
    %310 = vector.shape_cast %309 : vector<32x128xf32> to vector<2x16x128xf32>
    %c4_242 = arith.constant 4 : index
    %c0_243 = arith.constant 0 : index
    %311 = vector.load %arg4[%c4_242, %c0_243] : memref<7x128xf32, #tpu.memory_space<vmem>>, vector<1x128xf32>
    %c4_244 = arith.constant 4 : index
    %c0_245 = arith.constant 0 : index
    %312 = vector.load %arg5[%c4_244, %c0_245] : memref<7x128xf32, #tpu.memory_space<vmem>>, vector<1x128xf32>
    %cst_246 = arith.constant dense<0.000000e+00> : vector<2x128xf32>
    %313 = vector.multi_reduction <add>, %310, %cst_246 [1] : vector<2x16x128xf32> to vector<2x128xf32>
    %314 = vector.shape_cast %313 : vector<2x128xf32> to vector<2x1x128xf32>
    %cst_247 = arith.constant dense<0.000000e+00> : vector<1x128xf32>
    %315 = vector.multi_reduction <add>, %314, %cst_247 [0] : vector<2x1x128xf32> to vector<1x128xf32>
    %316 = vector.shape_cast %315 : vector<1x128xf32> to vector<1x1x128xf32>
    %cst_248 = arith.constant 3.125000e-02 : f32
    %317 = vector.broadcast %cst_248 : f32 to vector<1x1x128xf32>
    %318 = arith.mulf %316, %317 : vector<1x1x128xf32>
    %319 = vector.broadcast %318 : vector<1x1x128xf32> to vector<2x16x128xf32>
    %320 = arith.subf %310, %319 : vector<2x16x128xf32>
    %321 = arith.mulf %320, %320 : vector<2x16x128xf32>
    %cst_249 = arith.constant dense<0.000000e+00> : vector<2x128xf32>
    %322 = vector.multi_reduction <add>, %321, %cst_249 [1] : vector<2x16x128xf32> to vector<2x128xf32>
    %323 = vector.shape_cast %322 : vector<2x128xf32> to vector<2x1x128xf32>
    %cst_250 = arith.constant dense<0.000000e+00> : vector<1x128xf32>
    %324 = vector.multi_reduction <add>, %323, %cst_250 [0] : vector<2x1x128xf32> to vector<1x128xf32>
    %325 = vector.shape_cast %324 : vector<1x128xf32> to vector<1x1x128xf32>
    %cst_251 = arith.constant 3.125000e-02 : f32
    %326 = vector.broadcast %cst_251 : f32 to vector<1x1x128xf32>
    %327 = arith.mulf %325, %326 : vector<1x1x128xf32>
    %328 = vector.shape_cast %311 : vector<1x128xf32> to vector<1x1x128xf32>
    %cst_252 = arith.constant 9.99999974E-6 : f32
    %329 = vector.broadcast %cst_252 : f32 to vector<1x1x128xf32>
    %330 = arith.addf %327, %329 : vector<1x1x128xf32>
    %331 = math.rsqrt %330 : vector<1x1x128xf32>
    %332 = arith.mulf %328, %331 : vector<1x1x128xf32>
    %333 = vector.broadcast %332 : vector<1x1x128xf32> to vector<2x16x128xf32>
    %334 = arith.mulf %320, %333 : vector<2x16x128xf32>
    %335 = vector.shape_cast %312 : vector<1x128xf32> to vector<1x1x128xf32>
    %336 = vector.broadcast %335 : vector<1x1x128xf32> to vector<2x16x128xf32>
    %337 = arith.addf %334, %336 : vector<2x16x128xf32>
    %cst_253 = arith.constant 0.000000e+00 : f32
    %338 = vector.broadcast %cst_253 : f32 to vector<2x16x128xf32>
    %339 = arith.maximumf %337, %338 : vector<2x16x128xf32>
    %340 = arith.truncf %339 : vector<2x16x128xf32> to vector<2x16x128xbf16>
    %c0_254 = arith.constant 0 : index
    %c2_255 = arith.constant 2 : index
    %c0_256 = arith.constant 0 : index
    %341 = vector.load %arg9[%c0_254, %c2_255, %c0_256] : memref<2x20x128xbf16, #tpu.memory_space<vmem>>, vector<2x16x128xbf16>
    tpu.vector_store %arg9[%c0_254, %c2_255, %c0_256], %340 {strides = array<i32>} : memref<2x20x128xbf16, #tpu.memory_space<vmem>>, vector<2x16x128xbf16>,
    %c0_257 = arith.constant 0 : index
    %c0_258 = arith.constant 0 : index
    %c0_259 = arith.constant 0 : index
    %342 = vector.load %arg9[%c0_257, %c0_258, %c0_259] : memref<2x20x128xbf16, #tpu.memory_space<vmem>>, vector<2x16x128xbf16>
    %343 = vector.shape_cast %342 : vector<2x16x128xbf16> to vector<32x128xbf16>
    %c20 = arith.constant 20 : index
    %c0_260 = arith.constant 0 : index
    %c0_261 = arith.constant 0 : index
    %344 = vector.load %arg2[%c20, %c0_260, %c0_261] : memref<30x128x128xbf16, #tpu.memory_space<vmem>>, vector<1x128x128xbf16>
    %345 = vector.shape_cast %344 : vector<1x128x128xbf16> to vector<128x128xbf16>
    %cst_262 = arith.constant dense<0.000000e+00> : vector<32x128xf32>
    %346 = tpu.matmul %343, %345, %cst_262 {dimension_numbers = #tpu.dot_dimension_numbers<[1], [0], [0], [1], [0, 0, 1, 1], [], []>} : vector<32x128xbf16>, vector<128x128xbf16>, vector<32x128xf32> -> vector<32x128xf32>
    %c0_263 = arith.constant 0 : index
    %c1_264 = arith.constant 1 : index
    %c0_265 = arith.constant 0 : index
    %347 = vector.load %arg9[%c0_263, %c1_264, %c0_265] : memref<2x20x128xbf16, #tpu.memory_space<vmem>>, vector<2x16x128xbf16>
    %348 = vector.shape_cast %347 : vector<2x16x128xbf16> to vector<32x128xbf16>
    %c21 = arith.constant 21 : index
    %c0_266 = arith.constant 0 : index
    %c0_267 = arith.constant 0 : index
    %349 = vector.load %arg2[%c21, %c0_266, %c0_267] : memref<30x128x128xbf16, #tpu.memory_space<vmem>>, vector<1x128x128xbf16>
    %350 = vector.shape_cast %349 : vector<1x128x128xbf16> to vector<128x128xbf16>
    %cst_268 = arith.constant dense<0.000000e+00> : vector<32x128xf32>
    %351 = tpu.matmul %348, %350, %cst_268 {dimension_numbers = #tpu.dot_dimension_numbers<[1], [0], [0], [1], [0, 0, 1, 1], [], []>} : vector<32x128xbf16>, vector<128x128xbf16>, vector<32x128xf32> -> vector<32x128xf32>
    %352 = arith.addf %346, %351 : vector<32x128xf32>
    %c0_269 = arith.constant 0 : index
    %c2_270 = arith.constant 2 : index
    %c0_271 = arith.constant 0 : index
    %353 = vector.load %arg9[%c0_269, %c2_270, %c0_271] : memref<2x20x128xbf16, #tpu.memory_space<vmem>>, vector<2x16x128xbf16>
    %354 = vector.shape_cast %353 : vector<2x16x128xbf16> to vector<32x128xbf16>
    %c22 = arith.constant 22 : index
    %c0_272 = arith.constant 0 : index
    %c0_273 = arith.constant 0 : index
    %355 = vector.load %arg2[%c22, %c0_272, %c0_273] : memref<30x128x128xbf16, #tpu.memory_space<vmem>>, vector<1x128x128xbf16>
    %356 = vector.shape_cast %355 : vector<1x128x128xbf16> to vector<128x128xbf16>
    %cst_274 = arith.constant dense<0.000000e+00> : vector<32x128xf32>
    %357 = tpu.matmul %354, %356, %cst_274 {dimension_numbers = #tpu.dot_dimension_numbers<[1], [0], [0], [1], [0, 0, 1, 1], [], []>} : vector<32x128xbf16>, vector<128x128xbf16>, vector<32x128xf32> -> vector<32x128xf32>
    %358 = arith.addf %352, %357 : vector<32x128xf32>
    %c0_275 = arith.constant 0 : index
    %c3_276 = arith.constant 3 : index
    %c0_277 = arith.constant 0 : index
    %359 = vector.load %arg9[%c0_275, %c3_276, %c0_277] : memref<2x20x128xbf16, #tpu.memory_space<vmem>>, vector<2x16x128xbf16>
    %360 = vector.shape_cast %359 : vector<2x16x128xbf16> to vector<32x128xbf16>
    %c23 = arith.constant 23 : index
    %c0_278 = arith.constant 0 : index
    %c0_279 = arith.constant 0 : index
    %361 = vector.load %arg2[%c23, %c0_278, %c0_279] : memref<30x128x128xbf16, #tpu.memory_space<vmem>>, vector<1x128x128xbf16>
    %362 = vector.shape_cast %361 : vector<1x128x128xbf16> to vector<128x128xbf16>
    %cst_280 = arith.constant dense<0.000000e+00> : vector<32x128xf32>
    %363 = tpu.matmul %360, %362, %cst_280 {dimension_numbers = #tpu.dot_dimension_numbers<[1], [0], [0], [1], [0, 0, 1, 1], [], []>} : vector<32x128xbf16>, vector<128x128xbf16>, vector<32x128xf32> -> vector<32x128xf32>
    %364 = arith.addf %358, %363 : vector<32x128xf32>
    %c0_281 = arith.constant 0 : index
    %c4_282 = arith.constant 4 : index
    %c0_283 = arith.constant 0 : index
    %365 = vector.load %arg9[%c0_281, %c4_282, %c0_283] : memref<2x20x128xbf16, #tpu.memory_space<vmem>>, vector<2x16x128xbf16>
    %366 = vector.shape_cast %365 : vector<2x16x128xbf16> to vector<32x128xbf16>
    %c24 = arith.constant 24 : index
    %c0_284 = arith.constant 0 : index
    %c0_285 = arith.constant 0 : index
    %367 = vector.load %arg2[%c24, %c0_284, %c0_285] : memref<30x128x128xbf16, #tpu.memory_space<vmem>>, vector<1x128x128xbf16>
    %368 = vector.shape_cast %367 : vector<1x128x128xbf16> to vector<128x128xbf16>
    %cst_286 = arith.constant dense<0.000000e+00> : vector<32x128xf32>
    %369 = tpu.matmul %366, %368, %cst_286 {dimension_numbers = #tpu.dot_dimension_numbers<[1], [0], [0], [1], [0, 0, 1, 1], [], []>} : vector<32x128xbf16>, vector<128x128xbf16>, vector<32x128xf32> -> vector<32x128xf32>
    %370 = arith.addf %364, %369 : vector<32x128xf32>
    %371 = vector.shape_cast %370 : vector<32x128xf32> to vector<2x16x128xf32>
    %c5_287 = arith.constant 5 : index
    %c0_288 = arith.constant 0 : index
    %372 = vector.load %arg4[%c5_287, %c0_288] : memref<7x128xf32, #tpu.memory_space<vmem>>, vector<1x128xf32>
    %c5_289 = arith.constant 5 : index
    %c0_290 = arith.constant 0 : index
    %373 = vector.load %arg5[%c5_289, %c0_290] : memref<7x128xf32, #tpu.memory_space<vmem>>, vector<1x128xf32>
    %cst_291 = arith.constant dense<0.000000e+00> : vector<2x128xf32>
    %374 = vector.multi_reduction <add>, %371, %cst_291 [1] : vector<2x16x128xf32> to vector<2x128xf32>
    %375 = vector.shape_cast %374 : vector<2x128xf32> to vector<2x1x128xf32>
    %cst_292 = arith.constant dense<0.000000e+00> : vector<1x128xf32>
    %376 = vector.multi_reduction <add>, %375, %cst_292 [0] : vector<2x1x128xf32> to vector<1x128xf32>
    %377 = vector.shape_cast %376 : vector<1x128xf32> to vector<1x1x128xf32>
    %cst_293 = arith.constant 3.125000e-02 : f32
    %378 = vector.broadcast %cst_293 : f32 to vector<1x1x128xf32>
    %379 = arith.mulf %377, %378 : vector<1x1x128xf32>
    %380 = vector.broadcast %379 : vector<1x1x128xf32> to vector<2x16x128xf32>
    %381 = arith.subf %371, %380 : vector<2x16x128xf32>
    %382 = arith.mulf %381, %381 : vector<2x16x128xf32>
    %cst_294 = arith.constant dense<0.000000e+00> : vector<2x128xf32>
    %383 = vector.multi_reduction <add>, %382, %cst_294 [1] : vector<2x16x128xf32> to vector<2x128xf32>
    %384 = vector.shape_cast %383 : vector<2x128xf32> to vector<2x1x128xf32>
    %cst_295 = arith.constant dense<0.000000e+00> : vector<1x128xf32>
    %385 = vector.multi_reduction <add>, %384, %cst_295 [0] : vector<2x1x128xf32> to vector<1x128xf32>
    %386 = vector.shape_cast %385 : vector<1x128xf32> to vector<1x1x128xf32>
    %cst_296 = arith.constant 3.125000e-02 : f32
    %387 = vector.broadcast %cst_296 : f32 to vector<1x1x128xf32>
    %388 = arith.mulf %386, %387 : vector<1x1x128xf32>
    %389 = vector.shape_cast %372 : vector<1x128xf32> to vector<1x1x128xf32>
    %cst_297 = arith.constant 9.99999974E-6 : f32
    %390 = vector.broadcast %cst_297 : f32 to vector<1x1x128xf32>
    %391 = arith.addf %388, %390 : vector<1x1x128xf32>
    %392 = math.rsqrt %391 : vector<1x1x128xf32>
    %393 = arith.mulf %389, %392 : vector<1x1x128xf32>
    %394 = vector.broadcast %393 : vector<1x1x128xf32> to vector<2x16x128xf32>
    %395 = arith.mulf %381, %394 : vector<2x16x128xf32>
    %396 = vector.shape_cast %373 : vector<1x128xf32> to vector<1x1x128xf32>
    %397 = vector.broadcast %396 : vector<1x1x128xf32> to vector<2x16x128xf32>
    %398 = arith.addf %395, %397 : vector<2x16x128xf32>
    %399 = arith.truncf %398 : vector<2x16x128xf32> to vector<2x16x128xbf16>
    %c0_298 = arith.constant 0 : index
    %c2_299 = arith.constant 2 : index
    %c0_300 = arith.constant 0 : index
    %400 = vector.load %arg9[%c0_298, %c2_299, %c0_300] : memref<2x20x128xbf16, #tpu.memory_space<vmem>>, vector<2x16x128xbf16>
    tpu.vector_store %arg9[%c0_298, %c2_299, %c0_300], %399 {strides = array<i32>} : memref<2x20x128xbf16, #tpu.memory_space<vmem>>, vector<2x16x128xbf16>,
    %c0_301 = arith.constant 0 : index
    %c0_302 = arith.constant 0 : index
    %c0_303 = arith.constant 0 : index
    %401 = vector.load %arg9[%c0_301, %c0_302, %c0_303] : memref<2x20x128xbf16, #tpu.memory_space<vmem>>, vector<2x16x128xbf16>
    %402 = vector.shape_cast %401 : vector<2x16x128xbf16> to vector<32x128xbf16>
    %c25 = arith.constant 25 : index
    %c0_304 = arith.constant 0 : index
    %c0_305 = arith.constant 0 : index
    %403 = vector.load %arg2[%c25, %c0_304, %c0_305] : memref<30x128x128xbf16, #tpu.memory_space<vmem>>, vector<1x128x128xbf16>
    %404 = vector.shape_cast %403 : vector<1x128x128xbf16> to vector<128x128xbf16>
    %cst_306 = arith.constant dense<0.000000e+00> : vector<32x128xf32>
    %405 = tpu.matmul %402, %404, %cst_306 {dimension_numbers = #tpu.dot_dimension_numbers<[1], [0], [0], [1], [0, 0, 1, 1], [], []>} : vector<32x128xbf16>, vector<128x128xbf16>, vector<32x128xf32> -> vector<32x128xf32>
    %c0_307 = arith.constant 0 : index
    %c1_308 = arith.constant 1 : index
    %c0_309 = arith.constant 0 : index
    %406 = vector.load %arg9[%c0_307, %c1_308, %c0_309] : memref<2x20x128xbf16, #tpu.memory_space<vmem>>, vector<2x16x128xbf16>
    %407 = vector.shape_cast %406 : vector<2x16x128xbf16> to vector<32x128xbf16>
    %c26 = arith.constant 26 : index
    %c0_310 = arith.constant 0 : index
    %c0_311 = arith.constant 0 : index
    %408 = vector.load %arg2[%c26, %c0_310, %c0_311] : memref<30x128x128xbf16, #tpu.memory_space<vmem>>, vector<1x128x128xbf16>
    %409 = vector.shape_cast %408 : vector<1x128x128xbf16> to vector<128x128xbf16>
    %cst_312 = arith.constant dense<0.000000e+00> : vector<32x128xf32>
    %410 = tpu.matmul %407, %409, %cst_312 {dimension_numbers = #tpu.dot_dimension_numbers<[1], [0], [0], [1], [0, 0, 1, 1], [], []>} : vector<32x128xbf16>, vector<128x128xbf16>, vector<32x128xf32> -> vector<32x128xf32>
    %411 = arith.addf %405, %410 : vector<32x128xf32>
    %c0_313 = arith.constant 0 : index
    %c2_314 = arith.constant 2 : index
    %c0_315 = arith.constant 0 : index
    %412 = vector.load %arg9[%c0_313, %c2_314, %c0_315] : memref<2x20x128xbf16, #tpu.memory_space<vmem>>, vector<2x16x128xbf16>
    %413 = vector.shape_cast %412 : vector<2x16x128xbf16> to vector<32x128xbf16>
    %c27 = arith.constant 27 : index
    %c0_316 = arith.constant 0 : index
    %c0_317 = arith.constant 0 : index
    %414 = vector.load %arg2[%c27, %c0_316, %c0_317] : memref<30x128x128xbf16, #tpu.memory_space<vmem>>, vector<1x128x128xbf16>
    %415 = vector.shape_cast %414 : vector<1x128x128xbf16> to vector<128x128xbf16>
    %cst_318 = arith.constant dense<0.000000e+00> : vector<32x128xf32>
    %416 = tpu.matmul %413, %415, %cst_318 {dimension_numbers = #tpu.dot_dimension_numbers<[1], [0], [0], [1], [0, 0, 1, 1], [], []>} : vector<32x128xbf16>, vector<128x128xbf16>, vector<32x128xf32> -> vector<32x128xf32>
    %417 = arith.addf %411, %416 : vector<32x128xf32>
    %c0_319 = arith.constant 0 : index
    %c3_320 = arith.constant 3 : index
    %c0_321 = arith.constant 0 : index
    %418 = vector.load %arg9[%c0_319, %c3_320, %c0_321] : memref<2x20x128xbf16, #tpu.memory_space<vmem>>, vector<2x16x128xbf16>
    %419 = vector.shape_cast %418 : vector<2x16x128xbf16> to vector<32x128xbf16>
    %c28 = arith.constant 28 : index
    %c0_322 = arith.constant 0 : index
    %c0_323 = arith.constant 0 : index
    %420 = vector.load %arg2[%c28, %c0_322, %c0_323] : memref<30x128x128xbf16, #tpu.memory_space<vmem>>, vector<1x128x128xbf16>
    %421 = vector.shape_cast %420 : vector<1x128x128xbf16> to vector<128x128xbf16>
    %cst_324 = arith.constant dense<0.000000e+00> : vector<32x128xf32>
    %422 = tpu.matmul %419, %421, %cst_324 {dimension_numbers = #tpu.dot_dimension_numbers<[1], [0], [0], [1], [0, 0, 1, 1], [], []>} : vector<32x128xbf16>, vector<128x128xbf16>, vector<32x128xf32> -> vector<32x128xf32>
    %423 = arith.addf %417, %422 : vector<32x128xf32>
    %c0_325 = arith.constant 0 : index
    %c4_326 = arith.constant 4 : index
    %c0_327 = arith.constant 0 : index
    %424 = vector.load %arg9[%c0_325, %c4_326, %c0_327] : memref<2x20x128xbf16, #tpu.memory_space<vmem>>, vector<2x16x128xbf16>
    %425 = vector.shape_cast %424 : vector<2x16x128xbf16> to vector<32x128xbf16>
    %c29 = arith.constant 29 : index
    %c0_328 = arith.constant 0 : index
    %c0_329 = arith.constant 0 : index
    %426 = vector.load %arg2[%c29, %c0_328, %c0_329] : memref<30x128x128xbf16, #tpu.memory_space<vmem>>, vector<1x128x128xbf16>
    %427 = vector.shape_cast %426 : vector<1x128x128xbf16> to vector<128x128xbf16>
    %cst_330 = arith.constant dense<0.000000e+00> : vector<32x128xf32>
    %428 = tpu.matmul %425, %427, %cst_330 {dimension_numbers = #tpu.dot_dimension_numbers<[1], [0], [0], [1], [0, 0, 1, 1], [], []>} : vector<32x128xbf16>, vector<128x128xbf16>, vector<32x128xf32> -> vector<32x128xf32>
    %429 = arith.addf %423, %428 : vector<32x128xf32>
    %430 = vector.shape_cast %429 : vector<32x128xf32> to vector<2x16x128xf32>
    %c6_331 = arith.constant 6 : index
    %c0_332 = arith.constant 0 : index
    %431 = vector.load %arg4[%c6_331, %c0_332] : memref<7x128xf32, #tpu.memory_space<vmem>>, vector<1x128xf32>
    %c6_333 = arith.constant 6 : index
    %c0_334 = arith.constant 0 : index
    %432 = vector.load %arg5[%c6_333, %c0_334] : memref<7x128xf32, #tpu.memory_space<vmem>>, vector<1x128xf32>
    %cst_335 = arith.constant dense<0.000000e+00> : vector<2x128xf32>
    %433 = vector.multi_reduction <add>, %430, %cst_335 [1] : vector<2x16x128xf32> to vector<2x128xf32>
    %434 = vector.shape_cast %433 : vector<2x128xf32> to vector<2x1x128xf32>
    %cst_336 = arith.constant dense<0.000000e+00> : vector<1x128xf32>
    %435 = vector.multi_reduction <add>, %434, %cst_336 [0] : vector<2x1x128xf32> to vector<1x128xf32>
    %436 = vector.shape_cast %435 : vector<1x128xf32> to vector<1x1x128xf32>
    %cst_337 = arith.constant 3.125000e-02 : f32
    %437 = vector.broadcast %cst_337 : f32 to vector<1x1x128xf32>
    %438 = arith.mulf %436, %437 : vector<1x1x128xf32>
    %439 = vector.broadcast %438 : vector<1x1x128xf32> to vector<2x16x128xf32>
    %440 = arith.subf %430, %439 : vector<2x16x128xf32>
    %441 = arith.mulf %440, %440 : vector<2x16x128xf32>
    %cst_338 = arith.constant dense<0.000000e+00> : vector<2x128xf32>
    %442 = vector.multi_reduction <add>, %441, %cst_338 [1] : vector<2x16x128xf32> to vector<2x128xf32>
    %443 = vector.shape_cast %442 : vector<2x128xf32> to vector<2x1x128xf32>
    %cst_339 = arith.constant dense<0.000000e+00> : vector<1x128xf32>
    %444 = vector.multi_reduction <add>, %443, %cst_339 [0] : vector<2x1x128xf32> to vector<1x128xf32>
    %445 = vector.shape_cast %444 : vector<1x128xf32> to vector<1x1x128xf32>
    %cst_340 = arith.constant 3.125000e-02 : f32
    %446 = vector.broadcast %cst_340 : f32 to vector<1x1x128xf32>
    %447 = arith.mulf %445, %446 : vector<1x1x128xf32>
    %448 = vector.shape_cast %431 : vector<1x128xf32> to vector<1x1x128xf32>
    %cst_341 = arith.constant 9.99999974E-6 : f32
    %449 = vector.broadcast %cst_341 : f32 to vector<1x1x128xf32>
    %450 = arith.addf %447, %449 : vector<1x1x128xf32>
    %451 = math.rsqrt %450 : vector<1x1x128xf32>
    %452 = arith.mulf %448, %451 : vector<1x1x128xf32>
    %453 = vector.broadcast %452 : vector<1x1x128xf32> to vector<2x16x128xf32>
    %454 = arith.mulf %440, %453 : vector<2x16x128xf32>
    %455 = vector.shape_cast %432 : vector<1x128xf32> to vector<1x1x128xf32>
    %456 = vector.broadcast %455 : vector<1x1x128xf32> to vector<2x16x128xf32>
    %457 = arith.addf %454, %456 : vector<2x16x128xf32>
    %c0_342 = arith.constant 0 : index
    %c0_343 = arith.constant 0 : index
    %c0_344 = arith.constant 0 : index
    %458 = vector.load %arg10[%c0_342, %c0_343, %c0_344] : memref<2x16x128xf32, #tpu.memory_space<vmem>>, vector<2x16x128xf32>
    %459 = arith.addf %457, %458 : vector<2x16x128xf32>
    %cst_345 = arith.constant 0.000000e+00 : f32
    %460 = vector.broadcast %cst_345 : f32 to vector<2x16x128xf32>
    %461 = arith.maximumf %459, %460 : vector<2x16x128xf32>
    %c0_346 = arith.constant 0 : index
    %c0_347 = arith.constant 0 : index
    %c0_348 = arith.constant 0 : index
    %462 = vector.load %arg8[%c0_346, %c0_347, %c0_348] : memref<2x16x128xf32, #tpu.memory_space<vmem>>, vector<2x16x128xf32>
    tpu.vector_store %arg8[%c0_346, %c0_347, %c0_348], %461 {strides = array<i32>} : memref<2x16x128xf32, #tpu.memory_space<vmem>>, vector<2x16x128xf32>,
    return
  }
}

</mosaic_0001>

<bundles_post_ra>
// kernel: tpu_custom_call.1
= control target key start
LH: loop header
LB: loop body
LE: loop exit
PB: predicated region body
PF: predicated region fallthrough
CT: control target
= control target key end

     0   :  { %13 = vsyncpa [#allocation5], 0  ;;  %s9326_s0 = inlined_call_operand.vmem [shape: bf16[2,20,128], index: 0, kind: input, shape index: {}]   ;;  %s9327_s1 = inlined_call_operand.hbm [shape: bf16[5,128,128], index: 1, kind: input, shape index: {}]   ;;  %s9328_s2 = inlined_call_operand.hbm [shape: bf16[30,128,128], index: 2, kind: input, shape index: {}]   ;;  %s9329_s3 = inlined_call_operand.hbm [shape: bf16[128,128], index: 3, kind: input, shape index: {}]   ;;  %s9330_s4 = inlined_call_operand.vmem [shape: f32[7,128], index: 4, kind: input, shape index: {}]   ;;  %s9331_s5 = inlined_call_operand.vmem [shape: f32[7,128], index: 5, kind: input, shape index: {}]   ;;  %s9332_s6 = inlined_call_operand.vmem [shape: f32[1,128], index: 6, kind: input, shape index: {}]   ;;  %s9333_s7 = inlined_call_operand.vmem [shape: f32[1,128], index: 7, kind: input, shape index: {}]   ;;  %s9334_s8 = inlined_call_operand.hbm [shape: f32[2,16,128], index: 8, kind: output, shape index: {}]  }
   0x1   :  { %14 = vsyncpa [#allocation8], 0 }
   0x2   :  { %15 = vsyncpa [#allocation6], 0  ;;  %s8425_s27 = smov [#allocation7]   ;;  %s8426_s29 = smov [#allocation4]  }
   0x3   :  { %s35_s28 = sshll.u32 %s8425_s27, 4  ;;  %s23_s30 = sshll.u32 %s8426_s29, 4  ;;  %s36_s28 = int_to_ptr.vmem [resolvable:$true] %s35_s28  ;;  %s8479_s30 = int_to_ptr.vmem [resolvable:$true] %s23_s30 }
   0x4   :  { %s8331_s11 = scalar_lea.hbm %s9328_s2, 30720 }
   0x5   :  { %p8332_p0 = scmp.ne.s32.totalorder %s9328_s2, %s8331_s11  ;;  %p8335_p1 = scmp.lt.u32.totalorder %s8331_s11, %s9328_s2 }
   0x7   :  { %p8337_p2 = pnand %p8335_p1, %p8332_p0 }
   0x9   :  { %8340 = shalt.err (!%p8337_p2)
}
   0xa   :  { %s8341_s16 = scalar_lea.vmem %s36_s28, 30720  ;;  %p8346_p4 = scmp.lt.s32.totalorder %s36_s28, %s36_s28 }
   0xb   :  { %p8342_p3 = scmp.ne.s32.totalorder %s36_s28, %s8341_s16  ;;  %p8347_p5 = scmp.lt.s32.totalorder %s8341_s16, %s8341_s16 }
   0xd   :  { %p8348_p6 = por %p8347_p5, %p8346_p4 }
   0xf   :  { %p8349_p7 = pnand %p8348_p6, %p8342_p3 }
  0x11   :  { %8352 = shalt.err (!%p8349_p7)
}
  0x12   :  { %s8427_s17 = smov 64   ;;  %s8428_s18 = smov 4  }
  0x13   :  { %41 = dma.hbm_to_vmem [thread:$0]  %s9328_s2, 30720, %s36_s28, [#allocation8], %s8427_s17, %s8427_s17, %s8428_s18  }
  0x14   :  { %s8353_s23 = scalar_lea.hbm %s9327_s1, 5120 }
  0x15   :  { %p8354_p8 = scmp.ne.s32.totalorder %s9327_s1, %s8353_s23  ;;  %p8357_p9 = scmp.lt.u32.totalorder %s8353_s23, %s9327_s1 }
  0x17   :  { %p8359_p10 = pnand %p8357_p9, %p8354_p8 }
  0x19   :  { %8362 = shalt.err (!%p8359_p10)
}
  0x1a   :  { %s8363_s29 = scalar_lea.vmem %s8479_s30, 5120  ;;  %p8368_p12 = scmp.lt.s32.totalorder %s8479_s30, %s8479_s30 }
  0x1b   :  { %p8364_p11 = scmp.ne.s32.totalorder %s8479_s30, %s8363_s29  ;;  %p8369_p13 = scmp.lt.s32.totalorder %s8363_s29, %s8363_s29 }
  0x1d   :  { %p8370_p0 = por %p8369_p13, %p8368_p12 }
  0x1f   :  { %p8371_p1 = pnand %p8370_p0, %p8364_p11 }
  0x21   :  { %8374 = shalt.err (!%p8371_p1)
}
  0x22   :  { %29 = dma.hbm_to_vmem [thread:$0]  %s9327_s1, 5120, %s8479_s30, [#allocation5], %s8427_s17, %s8427_s17, %s8428_s18  }
  0x23   :  { %s8429_s9 = smov [#allocation9]   ;;  %s8375_s13 = scalar_lea.hbm %s9329_s3, 1024 }
  0x24   :  { %s47_s10 = sshll.u32 %s8429_s9, 4  ;;  %p8376_p2 = scmp.ne.s32.totalorder %s9329_s3, %s8375_s13  ;;  %s48_s10 = int_to_ptr.vmem [resolvable:$true] %s47_s10 }
  0x25   :  { %p8379_p3 = scmp.lt.u32.totalorder %s8375_s13, %s9329_s3 }
  0x27   :  { %p8381_p4 = pnand %p8379_p3, %p8376_p2 }
  0x29   :  { %8384 = shalt.err (!%p8381_p4)
}
  0x2a   :  { %s8385_s20 = scalar_lea.vmem %s48_s10, 1024  ;;  %p8390_p6 = scmp.lt.s32.totalorder %s48_s10, %s48_s10 }
  0x2b   :  { %p8386_p5 = scmp.ne.s32.totalorder %s48_s10, %s8385_s20  ;;  %p8391_p7 = scmp.lt.s32.totalorder %s8385_s20, %s8385_s20 }
  0x2d   :  { %p8392_p8 = por %p8391_p7, %p8390_p6 }
  0x2f   :  { %p8393_p9 = pnand %p8392_p8, %p8386_p5 }
  0x31   :  { %8396 = shalt.err (!%p8393_p9)
}
  0x32   :  { %53 = dma.hbm_to_vmem [thread:$0]  %s9329_s3, 1024, %s48_s10, [#allocation8], %s8427_s17, %s8427_s17, %s8428_s18  }
  0x33   :  { %8419 = dma.done.wait [#allocation5], 5120  }
  0x34   :  { %8420 = vsyncadd [#allocation5], 4294962176 }
  0x35   :  { %8421 = dma.done.wait [#allocation8], 31744  }
  0x36   :  { %8422 = vsyncadd [#allocation8], 4294935552  ;;  %v8013_v0 = vld [vmem:[#allocation9] sm:$0xff]   ;;  %v8015_v2 = vld [vmem:[#allocation9 + $0x8] sm:$0xff]   ;;  %vm88_vm0 = vcmask 1042432   ;;  %vm89_vm1 = vcmask 1046532  }
  0x37   :  { %v8014_v1 = vld [vmem:[#allocation4 + $0x80] sm:$0xff]   ;;  %7172 = vmatprep.subr.bf16.mxu0 %v8013_v0  ;;  %v8016_v3 = vld [vmem:[#allocation4 + $0x88] sm:$0xff]   ;;  %v8017_v4 = vld [vmem:[#allocation9 + $0x10] sm:$0xff]   ;;  %vm317_vm3 = vsmask.f32 3328  ;;  %vm928_vm9 = vcmask 1041408  }
  0x38   :  { %7232 = vmatprep.subr.bf16.mxu1 %v8014_v1  ;;  %7173 = vmatpush3.bf16.msra.mxu0 %v8013_v0  ;;  %v8018_v5 = vld [vmem:[#allocation4 + $0x90] sm:$0xff]   ;;  %v8019_v6 = vld [vmem:[#allocation9 + $0x18] sm:$0xff]   ;;  %v8021_v8 = vld [vmem:[#allocation9 + $0x20] sm:$0xff]   ;;  %vm318_vm4 = vsmask.f32 7440  ;;  %vm929_vm10 = vcmask 1045508  }
  0x39   :  { %7233 = vmatpush3.bf16.msra.mxu1 %v8014_v1  ;;  %7174 = vmatprep.subr.bf16.mxu0 %v8015_v2  ;;  %v8020_v7 = vld [vmem:[#allocation4 + $0x98] sm:$0xff]   ;;  %v8022_v9 = vld [vmem:[#allocation4 + $0xa0] sm:$0xff]   ;;  %vm8531_vm2 = vmor %vm88_vm0, %vm89_vm1  ;;  %vm747_vm5 = vsmask.f32 2304  ;;  %vm748_vm6 = vsmask.f32 6416 }
  0x3a   :  { %7234 = vmatprep.subr.bf16.mxu1 %v8016_v3  ;;  %v8023_v11 = vld [vmem:[#allocation9 + $0x28] sm:$0xff]   ;;  %v78_v14 = vld [vmem:[%s9326_s0 + $0x8] sm:$0x1]  ;;  %v79_v20 = vld [vmem:[%s9326_s0 + $0xc] sm:$0xe]  ;;  %vm1148_vm12 = vcmask 1040384  }
  0x3b   :  { %v76_v12 = vld [vmem:[%s9326_s0] sm:$0xe]  ;;  %v77_v13 = vld [vmem:[%s9326_s0 + $0x4] sm:$0xf]  ;;  %v96_v18 = vrot.slane %v78_v14, 5  ;;  %v8025_v19 = vld [vmem:[#allocation9 + $0x30] sm:$0xff]  }
  0x3c   :  { %7175 = vmatpush3.bf16.msra.mxu0 %v8015_v2  ;;  %v8024_v15 = vld [vmem:[#allocation4 + $0xa8] sm:$0xff]   ;;  %v6366_v16 = vrot.slane %v76_v12, 9  ;;  %v93_v17 = vrot.slane %v77_v13, 5  ;;  %v80_v21 = vld [vmem:[%s9326_s0 + $0x10] sm:$0xf]  ;;  %v8026_v28 = vld [vmem:[#allocation4 + $0xb0] sm:$0xff]  }
  0x3d   :  { %7235 = vmatpush3.bf16.msra.mxu1 %v8016_v3  ;;  %7176 = vmatprep.subr.bf16.mxu0 %v8017_v4  ;;  %v81_v24 = vld [vmem:[%s9326_s0 + $0x14] sm:$0x1]  ;;  %v100_v25 = vrot.slane %v80_v21, 5  ;;  %v8558_v26 = vld [vmem:[%s9326_s0 + $0x4] sm:$0xf]  ;;  %v6367_v36 = vrot.slane %v79_v20, 9  ;;  %vm8621_vm7 = vmor %vm317_vm3, %vm318_vm4 }
  0x3e   :  { %7236 = vmatprep.subr.bf16.mxu1 %v8018_v5  ;;  %v94_v22 = vsel %vm8531_vm2, %v6366_v16, %v93_v17  ;;  %v95_v23 = vrot.slane %v93_v17, 4  ;;  %v8563_v27 = vld [vmem:[%s9326_s0 + $0x8] sm:$0x1]  ;;  %v599_v30 = vld [vmem:[%s9326_s0] sm:$0xe]  ;;  %v607_v33 = vrot.slane %v8558_v26, 5  ;;  %vm8648_vm8 = vmor %vm747_vm5, %vm748_vm6 }
  0x3f   :  { %v6399_v32 = vrot.slane %v599_v30, 9  ;;  %v610_v34 = vrot.slane %v8563_v27, 5  ;;  %v8027_v35 = vld [vmem:[#allocation9 + $0x38] sm:$0xff]   ;;  %v102_v37 = vrot.slane %v100_v25, 4  ;;  %v103_v38 = vrot.slane %v81_v24, 5  ;;  %v8029_v52 = vld [vmem:[#allocation4 + $0x40] sm:$0xff]   ;;  %vm8684_vm11 = vmor %vm928_vm9, %vm929_vm10 }
  0x40   :  { %7177 = vmatpush3.bf16.msra.mxu0 %v8017_v4  ;;  %v97_v29 = vsel %vm8531_vm2, %v95_v23, %v96_v18  ;;  %v8575_v39 = vld [vmem:[%s9326_s0 + $0x10] sm:$0xf]  ;;  %v609_v41 = vrot.slane %v607_v33, 4  ;;  %v8582_v42 = vld [vmem:[%s9326_s0 + $0x14] sm:$0x1]  ;;  %v101_v50 = vsel %vm8531_vm2, %v6367_v36, %v100_v25  ;;  %v340_v54 = vshll.u32 %v8563_v27, 16 }
  0x41   :  { %7237 = vmatpush3.bf16.msra.mxu1 %v8018_v5  ;;  %7178 = vmatprep.subr.bf16.mxu0 %v8019_v6  ;;  %v6368_v31 = vcombine.low %v94_v22, %v97_v29  ;;  %v608_v40 = vsel %vm8531_vm2, %v6399_v32, %v607_v33  ;;  %v8587_v43 = vld [vmem:[%s9326_s0 + $0xc] sm:$0xe]  ;;  %v614_v44 = vrot.slane %v8575_v39, 5  ;;  %v8028_v45 = vld [vmem:[#allocation4 + $0xb8] sm:$0xff]   ;;  %v617_v49 = vrot.slane %v8582_v42, 5  ;;  %v8030_v55 = vld [vmem:[#allocation4 + $0xc0] sm:$0xff]  }
  0x42   :  { %7238 = vmatprep.subr.bf16.mxu1 %v8020_v7  ;;  %v6400_v46 = vrot.slane %v8587_v43, 9  ;;  %v611_v47 = vsel %vm8531_vm2, %v609_v41, %v610_v34  ;;  %v104_v51 = vsel %vm8531_vm2, %v102_v37, %v103_v38  ;;  %v751_v58 = vshrl.u32 %v599_v30, 16  ;;  %v8031_v61 = vld [vmem:[#allocation4 + $0x48] sm:$0xff]   ;;  %v8035_v17 = vld [vmem:[#allocation4 + $0x58] sm:$0xff]   ;;  %v8630_v24 = vld [vmem:[%s9326_s0 + $0x8] sm:$0x3] }
  0x43   :  { %7188 = vmatprep.mubr.bf16.mxu0 %v6368_v31  ;;  %v616_v48 = vrot.slane %v614_v44, 4  ;;  %v6401_v53 = vcombine.low %v608_v40, %v611_v47  ;;  %v754_v59 = vshll.u32 %v599_v30, 16  ;;  %v6369_v60 = vcombine.low %v101_v50, %v104_v51  ;;  %v8032_v63 = vld [vmem:[#allocation4 + $0xc8] sm:$0xff]   ;;  %v8637_v31 = vld [vmem:[%s9326_s0 + $0xc] sm:$0xf]  ;;  %v8037_v32 = vld [vmem:[#allocation4 + $0x60] sm:$0xff]  }
  0x44   :  { %7179 = vmatpush3.bf16.msra.mxu0 %v8019_v6  ;;  %v615_v56 = vsel %vm8531_vm2, %v6400_v46, %v614_v44  ;;  %v330_v0 = vshll.u32 %v8558_v26, 16  ;;  %v753_v1 = vrot.slane %v751_v58, 5  ;;  %v334_v2 = vshrl.u32 %v8558_v26, 16  ;;  %v8617_v18 = vld [vmem:[%s9326_s0] sm:$0xf]  ;;  %v8038_v33 = vld [vmem:[#allocation4 + $0xe0] sm:$0xff]  }
  0x45   :  { %7239 = vmatpush3.bf16.msra.mxu1 %v8020_v7  ;;  %7180 = vmatprep.subr.bf16.mxu0 %v8021_v8  ;;  %v618_v57 = vsel %vm8531_vm2, %v616_v48, %v617_v49  ;;  %v756_v3 = vrot.slane %v754_v59, 6  ;;  %v774_v5 = vshrl.u32 %v8587_v43, 16  ;;  %v8608_v7 = vrot.slane %v340_v54, 5  ;;  %v8039_v50 = vld [vmem:[#allocation4 + $0x68] sm:$0xff]  }
  0x46   :  { %7240 = vmatprep.subr.bf16.mxu1 %v8022_v9  ;;  %7248 = vmatprep.mubr.bf16.mxu1 %v6401_v53  ;;  %v6402_v62 = vcombine.low %v615_v56, %v618_v57  ;;  %v8605_v4 = vrot.slane %v330_v0, 5  ;;  %v336_v6 = vrot.slane %v334_v2, 4  ;;  %v759_v12 = vrot.slane %v334_v2, 5  ;;  %v8312_v41 = vld [vmem:[#allocation7 + $0x768] sm:$0xff]  }
  0x47   :  { %v777_v13 = vshll.u32 %v8587_v43, 16  ;;  %v757_v14 = vor.u32 %v756_v3, %v753_v1  ;;  %v8612_v16 = vrot.slane %v774_v5, 5  ;;  %v321_v21 = vshrl.u32 %v8617_v18, 16  ;;  %v8041_v5 = vld [vmem:[#allocation4 + $0x70] sm:$0xff]  }
  0x48   :  { %7181 = vmatpush3.bf16.msra.mxu0 %v8021_v8  ;;  %v8033_v8 = vld [vmem:[#allocation4 + $0x50] sm:$0xff]   ;;  %v324_v22 = vshll.u32 %v8617_v18, 16  ;;  %v765_v34 = vshrl.u32 %v8630_v24, 16  ;;  %v345_v36 = vshrl.u32 %v8637_v31, 16  ;;  %v348_v37 = vshll.u32 %v8637_v31, 16 }
  0x49   :  { %7241 = vmatpush3.bf16.msra.mxu1 %v8022_v9  ;;  %7182 = vmatprep.subr.bf16.mxu0 %v8023_v11  ;;  %v8034_v9 = vld [vmem:[#allocation4 + $0xd0] sm:$0xff]   ;;  %v8632_v27 = vrot.slane %v777_v13, 6  ;;  %v758_v30 = vrot.slane %v757_v14, 4  ;;  %v354_v43 = vshll.u32 %v8575_v39, 16  ;;  %v358_v44 = vshrl.u32 %v8575_v39, 16 }
  0x4a   :  { %7242 = vmatprep.subr.bf16.mxu1 %v8024_v15  ;;  %v326_v29 = vrot.slane %v324_v22, 5  ;;  %v767_v47 = vrot.slane %v765_v34, 5  ;;  %v347_v49 = vrot.slane %v345_v36, 4  ;;  %v933_v14 = vrot.slane %v8558_v26, 6  ;;  %v8044_v22 = vld [vmem:[#allocation4 + $0xf8] sm:$0xff]  }
  0x4b   :  { %v8659_v53 = vrot.slane %v354_v43, 5  ;;  %v360_v54 = vrot.slane %v358_v44, 4  ;;  %v782_v57 = vrot.slane %v358_v44, 5  ;;  %v783_v58 = vrot.slane %v354_v43, 6  ;;  %v922_v36 = vld [vmem:[%s9326_s0] sm:$0xc] }
  0x4c   :  { %7183 = vmatpush3.bf16.msra.mxu0 %v8023_v11  ;;  %v337_v11 = vor.u32 %v336_v6, %v8605_v4  ;;  %v8047_v44 = vld [vmem:[#allocation4 + $0x8] sm:$0xff]   ;;  %vm1149_vm13 = vcmask 1044484  }
  0x4d   :  { %7243 = vmatpush3.bf16.msra.mxu1 %v8024_v15  ;;  %7184 = vmatprep.subr.bf16.mxu0 %v8025_v19  ;;  %v760_v15 = vrot.slane %v330_v0, 6  ;;  %v784_v6 = vor.u32 %v783_v58, %v782_v57  ;;  %v8056_v57 = vld [vmem:[#allocation4 + $0x128] sm:$0xff]   ;;  %v8057_v58 = vld [vmem:[#allocation4 + $0x30] sm:$0xff]   ;;  %vm8744_vm14 = vmor %vm1148_vm12, %vm1149_vm13 }
  0x4e   :  { %7244 = vmatprep.subr.bf16.mxu1 %v8026_v28  ;;  %v338_v23 = vrot.slane %v337_v11, 4  ;;  %v8042_v11 = vld [vmem:[#allocation4 + $0xf0] sm:$0xff]  }
  0x4f   :  { %v761_v25 = vor.u32 %v760_v15, %v759_v12  ;;  %v8043_v12 = vld [vmem:[#allocation4 + $0x78] sm:$0xff]  }
  0x50   :  { %7185 = vmatpush3.bf16.msra.mxu0 %v8025_v19  ;;  %v8036_v19 = vld [vmem:[#allocation4 + $0xd8] sm:$0xff]   ;;  %v343_v40 = vsel %vm8621_vm7, %v338_v23, %v8608_v7  ;;  %v8045_v23 = vld [vmem:[#allocation4] sm:$0xff]  }
  0x51   :  { %7245 = vmatpush3.bf16.msra.mxu1 %v8026_v28  ;;  %7186 = vmatprep.subr.bf16.mxu0 %v8027_v35  ;;  %v323_v28 = vrot.slane %v321_v21, 4  ;;  %v763_v46 = vrot.slane %v761_v25, 4  ;;  %v786_v21 = vrot.slane %v784_v6, 4 }
  0x52   :  { %7246 = vmatprep.subr.bf16.mxu1 %v8028_v45 }
  0x53   :  { %v327_v38 = vor.u32 %v326_v29, %v323_v28  ;;  %v8046_v28 = vld [vmem:[#allocation4 + $0x100] sm:$0xff]  }
  0x54   :  { %7187 = vmatpush3.bf16.msra.mxu0 %v8027_v35  ;;  %v768_v35 = vshll.u32 %v8630_v24, 16 }
  0x55   :  { %7247 = vmatpush3.bf16.msra.mxu1 %v8028_v45  ;;  %7192 = vmatprep.subr.bf16.mxu0 %v8029_v52  ;;  %v8657_v45 = vld [vmem:[%s9326_s0 + $0x14] sm:$0x3]  ;;  %v328_v51 = vrot.slane %v327_v38, 4  ;;  %v6421_v38 = vrot.slane %v922_v36, 10 }
  0x56   :  { %7252 = vmatprep.subr.bf16.mxu1 %v8030_v55  ;;  %v770_v48 = vrot.slane %v768_v35, 6  ;;  %v8070_v36 = vld [vmem:[#allocation7 + $0x78] sm:$0xff]  }
  0x57   :  { %7189 = vmatmul.mubr.bf16.vlgmr.msra.gmra.mrb[0].mxu0 %v6369_v60  ;;  %v333_v59 = vsel %vm8621_vm7, %v328_v51, %v8605_v4  ;;  %v788_v60 = vshrl.u32 %v8657_v45, 16  ;;  %v361_v4 = vor.u32 %v360_v54, %v8659_v53  ;;  %v8049_v51 = vld [vmem:[#allocation4 + $0x10] sm:$0xff]   ;;  %v8051_v54 = vld [vmem:[#allocation4 + $0x18] sm:$0xff]  }
  0x58   :  { %7193 = vmatpush3.bf16.msra.mxu0 %v8029_v52  ;;  %7249 = vmatmul.mubr.bf16.vlgmr.msra.gmra.mrb[0].mxu1 %v6402_v62  ;;  %v350_v52 = vrot.slane %v348_v37, 5  ;;  %v771_v56 = vor.u32 %v770_v48, %v767_v47  ;;  %v364_v62 = vshll.u32 %v8582_v42, 16  ;;  %v6379_v0 = vcombine.low %v333_v59, %v343_v40  ;;  %v923_v37 = vld [vmem:[%s9326_s0 + $0xc] sm:$0xc]  ;;  %v8048_v47 = vld [vmem:[#allocation4 + $0x108] sm:$0xff]  }
  0x59   :  { %7253 = vmatpush3.bf16.msra.mxu1 %v8030_v55  ;;  %7194 = vmatprep.subr.bf16.mxu0 %v8031_v61  ;;  %v762_v55 = vsel %vm8648_vm8, %v758_v30, %v761_v25  ;;  %v780_v42 = vor.u32 %v8632_v27, %v8612_v16  ;;  %v790_v7 = vrot.slane %v788_v60, 5  ;;  %v362_v15 = vrot.slane %v361_v4, 4  ;;  %v8058_v59 = vld [vmem:[#allocation4 + $0x130] sm:$0xff]   ;;  %v8059_v60 = vld [vmem:[#allocation4 + $0x38] sm:$0xff]  }
  0x5a   :  { %7254 = vmatprep.subr.bf16.mxu1 %v8032_v63  ;;  %v772_v1 = vsel %vm8648_vm8, %v763_v46, %v771_v56  ;;  %v351_v3 = vor.u32 %v350_v52, %v347_v49  ;;  %7208 = vmatprep.mubr.bf16.mxu0 %v6379_v0  ;;  %v935_v25 = vrot.slane %v933_v14, 4  ;;  %v936_v27 = vrot.slane %v8630_v24, 6  ;;  %v8053_v56 = vld [vmem:[#allocation4 + $0x20] sm:$0xff]  }
  0x5b   :  { %v6411_v2 = vcombine.low %v762_v55, %v772_v1  ;;  %v943_v24 = vrot.slane %v8657_v45, 6  ;;  %v6422_v40 = vrot.slane %v923_v37, 10  ;;  %v934_v48 = vsel %vm8684_vm11, %v6421_v38, %v933_v14  ;;  %v8052_v55 = vld [vmem:[#allocation4 + $0x118] sm:$0xff]  }
  0x5c   :  { %7195 = vmatpush3.bf16.msra.mxu0 %v8031_v61  ;;  %v791_v61 = vshll.u32 %v8657_v45, 16  ;;  %v352_v13 = vrot.slane %v351_v3, 4  ;;  %v937_v49 = vsel %vm8684_vm11, %v935_v25, %v936_v27  ;;  %v6390_v0 = vcombine.low %v8637_v31, %v8575_v39  ;;  %v8064_v45 = vld [vmem:[#allocation7 + $0x48] sm:$0xff]   ;;  %v8066_v14 = vld [vmem:[#allocation7 + $0x58] sm:$0xff]  }
  0x5d   :  { %7255 = vmatpush3.bf16.msra.mxu1 %v8032_v63  ;;  %7196 = vmatprep.subr.bf16.mxu0 %v8033_v8  ;;  %v8040_v63 = vld [vmem:[#allocation4 + $0xe8] sm:$0xff]   ;;  %v6423_v52 = vcombine.low %v934_v48, %v937_v49 }
  0x5e   :  { %7256 = vmatprep.subr.bf16.mxu1 %v8034_v9  ;;  %7268 = vmatprep.mubr.bf16.mxu1 %v6411_v2  ;;  %v357_v29 = vsel %vm8621_vm7, %v352_v13, %v8659_v53  ;;  %v8050_v53 = vld [vmem:[#allocation4 + $0x110] sm:$0xff]   ;;  %v8063_v2 = vld [vmem:[#allocation7 + $0x40] sm:$0xff]  }
  0x60   :  { %7197 = vmatpush3.bf16.msra.mxu0 %v8033_v8  ;;  %v793_v8 = vrot.slane %v791_v61, 6  ;;  %v8060_v61 = vld [vmem:[#allocation4 + $0x138] sm:$0xff]  }
  0x61   :  { %7257 = vmatpush3.bf16.msra.mxu1 %v8034_v9  ;;  %7198 = vmatprep.subr.bf16.mxu0 %v8035_v17  ;;  %v366_v9 = vrot.slane %v364_v62, 5 }
  0x62   :  { %7258 = vmatprep.subr.bf16.mxu1 %v8036_v19  ;;  %v794_v16 = vor.u32 %v793_v8, %v790_v7 }
  0x63   :  { %v367_v30 = vsel %vm8621_vm7, %v362_v15, %v366_v9  ;;  %v8430_v15 = vmov 0  }
  0x64   :  { %7199 = vmatpush3.bf16.msra.mxu0 %v8035_v17  ;;  %v940_v17 = vrot.slane %v8575_v39, 6  ;;  %v795_v35 = vsel %vm8648_vm8, %v786_v21, %v794_v16  ;;  %v6380_v43 = vcombine.low %v357_v29, %v367_v30  ;;  %v8065_v39 = vld [vmem:[#allocation7 + $0x50] sm:$0xff]   ;;  %72 = vst [vmem:[#allocation2] sm:$0x1] %v8430_v15  ;;  %73 = vst [vmem:[#allocation2 + $0xc] sm:$0x1] %v8430_v15 }
  0x65   :  { %7259 = vmatpush3.bf16.msra.mxu1 %v8036_v19  ;;  %7200 = vmatprep.subr.bf16.mxu0 %v8037_v32  ;;  %v781_v19 = vrot.slane %v780_v42, 4  ;;  %74 = vst [vmem:[#allocation2 + $0x8] sm:$0x2] %v8430_v15  ;;  %75 = vst [vmem:[#allocation2 + $0x14] sm:$0x2] %v8430_v15  ;;  %v8067_v16 = vld [vmem:[#allocation7 + $0x60] sm:$0xff]  }
  0x66   :  { %7260 = vmatprep.subr.bf16.mxu1 %v8038_v33  ;;  %v941_v62 = vsel %vm8684_vm11, %v6422_v40, %v940_v17  ;;  %v8069_v29 = vld [vmem:[#allocation7 + $0x70] sm:$0xff]  }
  0x67   :  { %v785_v34 = vsel %vm8648_vm8, %v781_v19, %v784_v6 }
  0x68   :  { %7201 = vmatpush3.bf16.msra.mxu0 %v8037_v32  ;;  %v6412_v46 = vcombine.low %v785_v34, %v795_v35 }
  0x69   :  { %7261 = vmatpush3.bf16.msra.mxu1 %v8038_v33  ;;  %7202 = vmatprep.subr.bf16.mxu0 %v8039_v50  ;;  %v8690_v33 = vrot.slane %v940_v17, 4 }
  0x6a   :  { %7262 = vmatprep.subr.bf16.mxu1 %v8040_v63 }
  0x6c   :  { %7203 = vmatpush3.bf16.msra.mxu0 %v8039_v50  ;;  %v6389_v50 = vcombine.low %v8617_v18, %v8558_v26  ;;  %v8054_v26 = vld [vmem:[#allocation4 + $0x120] sm:$0xff]   ;;  %v8055_v18 = vld [vmem:[#allocation4 + $0x28] sm:$0xff]  }
  0x6d   :  { %7263 = vmatpush3.bf16.msra.mxu1 %v8040_v63  ;;  %7204 = vmatprep.subr.bf16.mxu0 %v8041_v5  ;;  %v944_v63 = vsel %vm8684_vm11, %v8690_v33, %v943_v24 }
  0x6e   :  { %7264 = vmatprep.subr.bf16.mxu1 %v8042_v11  ;;  %v6424_v1 = vcombine.low %v941_v62, %v944_v63  ;;  %v226_v63 = vld [vmem:[%s9332_s6] sm:$0x1] }
  0x70   :  { %7205 = vmatpush3.bf16.msra.mxu0 %v8041_v5 }
  0x71   :  { %7265 = vmatpush3.bf16.msra.mxu1 %v8042_v11  ;;  %7206 = vmatprep.subr.bf16.mxu0 %v8043_v12 }
  0x72   :  { %7266 = vmatprep.subr.bf16.mxu1 %v8044_v22 }
  0x74   :  { %7207 = vmatpush3.bf16.msra.mxu0 %v8043_v12 }
  0x75   :  { %7267 = vmatpush3.bf16.msra.mxu1 %v8044_v22  ;;  %7212 = vmatprep.subr.bf16.mxu0 %v8045_v23 }
  0x76   :  { %7272 = vmatprep.subr.bf16.mxu1 %v8046_v28 }
  0x77   :  { %7209 = vmatmul.mubr.bf16.vlgmr.msra.gmra.mrb[4].mxu0 %v6380_v43 }
  0x78   :  { %7213 = vmatpush3.bf16.msra.mxu0 %v8045_v23  ;;  %7269 = vmatmul.mubr.bf16.vlgmr.msra.gmra.mrb[0].mxu1 %v6412_v46  ;;  %v8068_v23 = vld [vmem:[#allocation7 + $0x68] sm:$0xff]  }
  0x79   :  { %7273 = vmatpush3.bf16.msra.mxu1 %v8046_v28  ;;  %7214 = vmatprep.subr.bf16.mxu0 %v8047_v44 }
  0x7a   :  { %7274 = vmatprep.subr.bf16.mxu1 %v8048_v47  ;;  %7228 = vmatprep.mubr.bf16.mxu0 %v6389_v50 }
  0x7b   :  { %7288 = vmatprep.mubr.bf16.mxu1 %v6423_v52 }
  0x7c   :  { %7215 = vmatpush3.bf16.msra.mxu0 %v8047_v44 }
  0x7d   :  { %7275 = vmatpush3.bf16.msra.mxu1 %v8048_v47  ;;  %7216 = vmatprep.subr.bf16.mxu0 %v8049_v51 }
  0x7e   :  { %7276 = vmatprep.subr.bf16.mxu1 %v8050_v53 }
  0x80   :  { %7217 = vmatpush3.bf16.msra.mxu0 %v8049_v51  ;;  %v8720_v51 = vld [vmem:[#allocation7] sm:$0xff]  }
  0x81   :  { %7277 = vmatpush3.bf16.msra.mxu1 %v8050_v53  ;;  %7218 = vmatprep.subr.bf16.mxu0 %v8051_v54 }
  0x82   :  { %7278 = vmatprep.subr.bf16.mxu1 %v8052_v55 }
  0x84   :  { %7219 = vmatpush3.bf16.msra.mxu0 %v8051_v54 }
  0x85   :  { %7279 = vmatpush3.bf16.msra.mxu1 %v8052_v55  ;;  %7220 = vmatprep.subr.bf16.mxu0 %v8053_v56 }
  0x86   :  { %7280 = vmatprep.subr.bf16.mxu1 %v8054_v26 }
  0x88   :  { %7221 = vmatpush3.bf16.msra.mxu0 %v8053_v56 }
  0x89   :  { %7281 = vmatpush3.bf16.msra.mxu1 %v8054_v26  ;;  %7222 = vmatprep.subr.bf16.mxu0 %v8055_v18 }
  0x8a   :  { %7282 = vmatprep.subr.bf16.mxu1 %v8056_v57 }
  0x8c   :  { %7223 = vmatpush3.bf16.msra.mxu0 %v8055_v18 }
  0x8d   :  { %7283 = vmatpush3.bf16.msra.mxu1 %v8056_v57  ;;  %7224 = vmatprep.subr.bf16.mxu0 %v8057_v58 }
  0x8e   :  { %7284 = vmatprep.subr.bf16.mxu1 %v8058_v59 }
  0x90   :  { %7225 = vmatpush3.bf16.msra.mxu0 %v8057_v58 }
  0x91   :  { %7285 = vmatpush3.bf16.msra.mxu1 %v8058_v59  ;;  %7226 = vmatprep.subr.bf16.mxu0 %v8059_v60 }
  0x92   :  { %7286 = vmatprep.subr.bf16.mxu1 %v8060_v61 }
  0x94   :  { %7227 = vmatpush3.bf16.msra.mxu0 %v8059_v60 }
  0x95   :  { %7287 = vmatpush3.bf16.msra.mxu1 %v8060_v61  ;;  %7292 = vmatprep.subr.bf16.mxu0 %v8063_v2  ;;  %v272_v61 = vlaneseq }
  0x97   :  { %7229 = vmatmul.mubr.bf16.vlgmr.msra.gmra.mrb[4].mxu0 %v6390_v0  ;;  %v273_v62 = vshrl.u32 %v272_v61, 7 }
  0x98   :  { %7289 = vmatmul.mubr.bf16.vlgmr.msra.gmra.mrb[0].mxu1 %v6424_v1  ;;  %7293 = vmatpush3.bf16.msra.mxu0 %v8063_v2 }
  0x99   :  { %7294 = vmatprep.subr.bf16.mxu0 %v8064_v45  ;;  %v8726_v0 = vsub.s32 0, %v273_v62 }
  0x9c   :  { %7295 = vmatpush3.bf16.msra.mxu0 %v8064_v45 }
  0x9d   :  { %7296 = vmatprep.subr.bf16.mxu0 %v8065_v39 }
  0xa0   :  { %7297 = vmatpush3.bf16.msra.mxu0 %v8065_v39 }
  0xa1   :  { %7298 = vmatprep.subr.bf16.mxu0 %v8066_v14 }
  0xa4   :  { %7299 = vmatpush3.bf16.msra.mxu0 %v8066_v14 }
  0xa5   :  { %7300 = vmatprep.subr.bf16.mxu0 %v8067_v16 }
  0xa8   :  { %7301 = vmatpush3.bf16.msra.mxu0 %v8067_v16 }
  0xa9   :  { %7302 = vmatprep.subr.bf16.mxu0 %v8068_v23 }
  0xac   :  { %7303 = vmatpush3.bf16.msra.mxu0 %v8068_v23 }
  0xad   :  { %7304 = vmatprep.subr.bf16.mxu0 %v8069_v29 }
  0xb0   :  { %7305 = vmatpush3.bf16.msra.mxu0 %v8069_v29 }
  0xb1   :  { %7306 = vmatprep.subr.bf16.mxu0 %v8070_v36 }
  0xb4   :  { %7307 = vmatpush3.bf16.msra.mxu0 %v8070_v36 }
  0xb5   :  { %7312 = vmatprep.subr.bf16.mxu0 %v8720_v51 }
 0x12a   :  { %v7190_v3 = vpop.f32.mrb[0].mxu0 }
 0x12b   :  { %v211_v5 = vpop.f32.mrb[1].mxu0 }
 0x12c   :  { %v7191_v4 = vpop.f32.mrb[2].mxu0 }
 0x12d   :  { %v235_v42 = vadd.f32 %v7191_v4, %v7190_v3  ;;  %v214_v6 = vpop.f32.mrb[3].mxu0 }
 0x12e   :  { %v228_v7 = vadd.f32 %v214_v6, %v211_v5 }
 0x12f   :  { %v236_v8 = vrot.slane %v235_v42, 4 }
 0x130   :  { %v229_v9 = vrot.slane %v228_v7, 4 }
 0x131   :  { %v237_v31 = vadd.f32 %v236_v8, %v235_v42 }
 0x132   :  { %v230_v11 = vadd.f32 %v229_v9, %v228_v7 }
 0x133   :  { %v238_v12 = vrot.slane %v237_v31, 2 }
 0x134   :  { %v231_v13 = vrot.slane %v230_v11, 2 }
 0x135   :  { %v239_v17 = vadd.f32 %v238_v12, %v237_v31 }
 0x136   :  { %v232_v19 = vadd.f32 %v231_v13, %v230_v11 }
 0x137   :  { %v240_v21 = vrot.slane %v239_v17, 1 }
 0x138   :  { %v233_v22 = vrot.slane %v232_v19, 1 }
 0x139   :  { %v241_v25 = vadd.f32 %v240_v21, %v239_v17 }
 0x13a   :  { %v234_v27 = vadd.f32 %v233_v22, %v232_v19 }
 0x13c   :  { %v242_v28 = vadd.f32 %v241_v25, %v234_v27 }
 0x13e   :  { %v243_v30 = vmul.f32 0.03125, %v242_v28 }
 0x140   :  { %v244_v33 = vsub.f32 %v211_v5, %v243_v30  ;;  %v245_v24 = vsub.f32 %v214_v6, %v243_v30  ;;  %v246_v34 = vsub.f32 %v7190_v3, %v243_v30  ;;  %v247_v35 = vsub.f32 %v7191_v4, %v243_v30 }
 0x142   :  { %v248_v37 = vmul.f32 %v244_v33, %v244_v33  ;;  %v249_v38 = vmul.f32 %v245_v24, %v245_v24  ;;  %v250_v40 = vmul.f32 %v246_v34, %v246_v34  ;;  %v251_v43 = vmul.f32 %v247_v35, %v247_v35 }
 0x144   :  { %v252_v44 = vadd.f32 %v249_v38, %v248_v37  ;;  %v259_v46 = vadd.f32 %v251_v43, %v250_v40 }
 0x146   :  { %v253_v47 = vrot.slane %v252_v44, 4  ;;  %v260_v48 = vrot.slane %v259_v46, 4 }
 0x148   :  { %v254_v49 = vadd.f32 %v253_v47, %v252_v44  ;;  %v261_v50 = vadd.f32 %v260_v48, %v259_v46 }
 0x14a   :  { %v255_v52 = vrot.slane %v254_v49, 2  ;;  %v262_v53 = vrot.slane %v261_v50, 2 }
 0x14c   :  { %v256_v54 = vadd.f32 %v255_v52, %v254_v49  ;;  %v263_v55 = vadd.f32 %v262_v53, %v261_v50 }
 0x14e   :  { %v257_v56 = vrot.slane %v256_v54, 1  ;;  %v264_v26 = vrot.slane %v263_v55, 1 }
 0x150   :  { %v258_v18 = vadd.f32 %v257_v56, %v256_v54  ;;  %v265_v57 = vadd.f32 %v264_v26, %v263_v55 }
 0x152   :  { %v266_v58 = vadd.f32 %v265_v57, %v258_v18 }
 0x154   :  { %v267_v59 = vmul.f32 0.03125, %v266_v58 }
 0x156   :  { %v268_v60 = vadd.f32 1e-05, %v267_v59 }
 0x158   :  { %8315 = vrsqrt.f32 %v268_v60 }
 0x162   :  { %v8316_v1 = vpop.eup %8315 }
 0x163   :  { %v270_v2 = vmul.f32 %v8316_v1, %v226_v63 }
 0x165   :  { %v275_v3 = vrot.slane %v270_v2, %v8726_v0 }
 0x167   :  { %v8729_v5 = vmul.f32 %v275_v3, %v244_v33  ;;  %v8731_v4 = vmul.f32 %v275_v3, %v245_v24  ;;  %v8733_v45 = vmul.f32 %v275_v3, %v246_v34  ;;  %v8735_v42 = vmul.f32 %v275_v3, %v247_v35  ;;  %v1071_v3 = vld [vmem:[%s9330_s4] sm:$0x1] }
 0x16a   :  { %v7230_v6 = vpop.f32.mrb[4].mxu0 }
 0x16b   :  { %v7290_v7 = vpop.f32.mrb[0].mxu1  ;;  %v584_v8 = vpop.f32.mrb[5].mxu0 }
 0x16c   :  { %v7892_v9 = vadd.f32 %v7290_v7, %v7230_v6  ;;  %v1052_v39 = vpop.f32.mrb[1].mxu1  ;;  %v7231_v31 = vpop.f32.mrb[6].mxu0 }
 0x16d   :  { %v7893_v11 = vadd.f32 %v1052_v39, %v584_v8  ;;  %v7291_v12 = vpop.f32.mrb[2].mxu1  ;;  %v587_v13 = vpop.f32.mrb[7].mxu0 }
 0x16e   :  { %v7894_v14 = vadd.f32 %v7291_v12, %v7231_v31  ;;  %v1055_v15 = vpop.f32.mrb[3].mxu1 }
 0x16f   :  { %v7895_v17 = vadd.f32 %v1055_v15, %v587_v13 }
 0x170   :  { %v1080_v19 = vadd.f32 %v7894_v14, %v7892_v9 }
 0x171   :  { %v1073_v21 = vadd.f32 %v7895_v17, %v7893_v11 }
 0x172   :  { %v1081_v16 = vrot.slane %v1080_v19, 4 }
 0x173   :  { %v1074_v22 = vrot.slane %v1073_v21, 4 }
 0x174   :  { %v1082_v23 = vadd.f32 %v1081_v16, %v1080_v19 }
 0x175   :  { %v1075_v25 = vadd.f32 %v1074_v22, %v1073_v21 }
 0x176   :  { %v1083_v27 = vrot.slane %v1082_v23, 2 }
 0x177   :  { %v1076_v28 = vrot.slane %v1075_v25, 2 }
 0x178   :  { %v1084_v29 = vadd.f32 %v1083_v27, %v1082_v23 }
 0x179   :  { %v1077_v30 = vadd.f32 %v1076_v28, %v1075_v25 }
 0x17a   :  { %v1085_v33 = vrot.slane %v1084_v29, 1 }
 0x17b   :  { %v1078_v24 = vrot.slane %v1077_v30, 1 }
 0x17c   :  { %v1086_v34 = vadd.f32 %v1085_v33, %v1084_v29 }
 0x17d   :  { %v1079_v35 = vadd.f32 %v1078_v24, %v1077_v30 }
 0x17f   :  { %v1087_v36 = vadd.f32 %v1086_v34, %v1079_v35 }
 0x181   :  { %v1088_v37 = vmul.f32 0.03125, %v1087_v36 }
 0x183   :  { %v1089_v38 = vsub.f32 %v7893_v11, %v1088_v37  ;;  %v1090_v40 = vsub.f32 %v7895_v17, %v1088_v37  ;;  %v1091_v43 = vsub.f32 %v7892_v9, %v1088_v37  ;;  %v1092_v44 = vsub.f32 %v7894_v14, %v1088_v37  ;;  %v6433_v9 = vld [vmem:[%s9331_s5] ss:$0 sm:$0xff] }
 0x185   :  { %v1093_v46 = vmul.f32 %v1089_v38, %v1089_v38  ;;  %v1094_v47 = vmul.f32 %v1090_v40, %v1090_v40  ;;  %v1095_v48 = vmul.f32 %v1091_v43, %v1091_v43  ;;  %v1096_v49 = vmul.f32 %v1092_v44, %v1092_v44 }
 0x187   :  { %v1097_v50 = vadd.f32 %v1094_v47, %v1093_v46  ;;  %v1104_v52 = vadd.f32 %v1096_v49, %v1095_v48 }
 0x189   :  { %v1098_v53 = vrot.slane %v1097_v50, 4  ;;  %v1105_v54 = vrot.slane %v1104_v52, 4 }
 0x18b   :  { %v1099_v55 = vadd.f32 %v1098_v53, %v1097_v50  ;;  %v1106_v56 = vadd.f32 %v1105_v54, %v1104_v52 }
 0x18d   :  { %v1100_v26 = vrot.slane %v1099_v55, 2  ;;  %v1107_v18 = vrot.slane %v1106_v56, 2 }
 0x18f   :  { %v1101_v57 = vadd.f32 %v1100_v26, %v1099_v55  ;;  %v1108_v58 = vadd.f32 %v1107_v18, %v1106_v56 }
 0x191   :  { %v1102_v59 = vrot.slane %v1101_v57, 1  ;;  %v1109_v60 = vrot.slane %v1108_v58, 1 }
 0x193   :  { %v1103_v61 = vadd.f32 %v1102_v59, %v1101_v57  ;;  %v1110_v62 = vadd.f32 %v1109_v60, %v1108_v58 }
 0x195   :  { %v1111_v63 = vadd.f32 %v1110_v62, %v1103_v61 }
 0x197   :  { %v1112_v1 = vmul.f32 0.03125, %v1111_v63 }
 0x199   :  { %v1113_v2 = vadd.f32 1e-05, %v1112_v1 }
 0x19b   :  { %8317 = vrsqrt.f32 %v1113_v2 }
 0x1a5   :  { %v8318_v6 = vpop.eup %8317 }
 0x1a6   :  { %v1115_v7 = vmul.f32 %v8318_v6, %v1071_v3 }
 0x1a8   :  { %v1119_v8 = vrot.slane %v1115_v7, %v8726_v0 }
 0x1aa   :  { %v1120_v39 = vmul.f32 %v1119_v8, %v1089_v38  ;;  %v1121_v31 = vmul.f32 %v1119_v8, %v1090_v40  ;;  %v1122_v11 = vmul.f32 %v1119_v8, %v1091_v43  ;;  %v1123_v12 = vmul.f32 %v1119_v8, %v1092_v44 }
 0x1ac   :  { %v1128_v13 = vadd.f32 %v6433_v9, %v1120_v39  ;;  %v1129_v14 = vadd.f32 %v6433_v9, %v1121_v31  ;;  %v1130_v15 = vadd.f32 %v6433_v9, %v1122_v11  ;;  %v1131_v17 = vadd.f32 %v6433_v9, %v1123_v12 }
 0x1ae   :  { %v1132_v19 = vmax.f32 %v1128_v13, 0.0  ;;  %v1133_v21 = vmax.f32 %v1129_v14, 0.0  ;;  %v1134_v16 = vmax.f32 %v1130_v15, 0.0  ;;  %v1135_v22 = vmax.f32 %v1131_v17, 0.0 }
 0x1b0   :  { %v6788_v23 = vpack.c.bf16 %v1132_v19, %v1132_v19  ;;  %v6789_v25 = vpack.c.bf16 %v1133_v21, %v1133_v21  ;;  %v6790_v27 = vpack.c.bf16 %v1134_v16, %v1134_v16  ;;  %v6791_v28 = vpack.c.bf16 %v1135_v22, %v1135_v22 }
 0x1b2   :  { %v1151_v29 = vrot.slane %v6788_v23, 7  ;;  %v1153_v30 = vrot.slane %v6789_v25, 7  ;;  %v1156_v33 = vrot.slane %v6790_v27, 7  ;;  %v1158_v24 = vrot.slane %v6791_v28, 7  ;;  %v8073_v25 = vld [vmem:[#allocation7 + $0x8] sm:$0xff]  }
 0x1b4   :  { %v1152_v35 = vrot.slane %v1151_v29, 4  ;;  %v1155_v36 = vrot.slane %v1153_v30, 4  ;;  %v1157_v37 = vrot.slane %v1156_v33, 4  ;;  %v1160_v38 = vrot.slane %v1158_v24, 4  ;;  %1167 = vst [vmem:[#allocation2] sm:$0xe] %v1151_v29 }
 0x1b5   :  { %1170 = vst [vmem:[#allocation2 + $0xc] sm:$0xe] %v1156_v33 }
 0x1b6   :  { %v1154_v40 = vsel %vm8744_vm14, %v1152_v35, %v1153_v30  ;;  %v1159_v43 = vsel %vm8744_vm14, %v1157_v37, %v1158_v24  ;;  %1169 = vst [vmem:[#allocation2 + $0x8] sm:$0x1] %v1155_v36  ;;  %1172 = vst [vmem:[#allocation2 + $0x14] sm:$0x1] %v1160_v38  ;;  %v8074_v35 = vld [vmem:[#allocation7 + $0x10] sm:$0xff]   ;;  %v8075_v37 = vld [vmem:[#allocation7 + $0x18] sm:$0xff]  }
 0x1b7   :  { %1168 = vst [vmem:[#allocation2 + $0x4] sm:$0xf] %v1154_v40  ;;  %1171 = vst [vmem:[#allocation2 + $0x10] sm:$0xf] %v1159_v43  ;;  %v8076_v38 = vld [vmem:[#allocation7 + $0x20] sm:$0xff]   ;;  %v8077_v40 = vld [vmem:[#allocation7 + $0x28] sm:$0xff]  }
 0x1bb   :  { %v1173_v44 = vld [vmem:[#allocation2] sm:$0xf] }
 0x1bc   :  { %v8752_v46 = vld [vmem:[#allocation2 + $0xc] sm:$0xf]  ;;  %v1196_v47 = vshrl.u32 %v1173_v44, 16  ;;  %v1199_v48 = vshll.u32 %v1173_v44, 16 }
 0x1bd   :  { %v1220_v49 = vshrl.u32 %v8752_v46, 16  ;;  %v1223_v50 = vshll.u32 %v8752_v46, 16  ;;  %v8756_v52 = vld [vmem:[#allocation2 + $0x8] sm:$0x1]  ;;  %v8758_v53 = vld [vmem:[#allocation2 + $0x14] sm:$0x1] }
 0x1be   :  { %v8760_v54 = vld [vmem:[#allocation2 + $0x4] sm:$0xf]  ;;  %v1198_v55 = vrot.slane %v1196_v47, 4  ;;  %v1201_v56 = vrot.slane %v1199_v48, 5  ;;  %v8764_v58 = vld [vmem:[#allocation2 + $0x10] sm:$0xf] }
 0x1bf   :  { %v1222_v26 = vrot.slane %v1220_v49, 4  ;;  %v1205_v18 = vshll.u32 %v8760_v54, 16  ;;  %v1209_v57 = vshrl.u32 %v8760_v54, 16  ;;  %v1225_v59 = vrot.slane %v1223_v50, 5  ;;  %v1474_v48 = vld [vmem:[#allocation2] sm:$0xe] }
 0x1c0   :  { %v1202_v60 = vor.u32 %v1201_v56, %v1198_v55  ;;  %v1229_v61 = vshll.u32 %v8764_v58, 16  ;;  %v1233_v62 = vshrl.u32 %v8764_v58, 16  ;;  %v1215_v2 = vshll.u32 %v8756_v52, 16  ;;  %v8081_v49 = vld [vmem:[#allocation7 + $0x80] sm:$0xff]  }
 0x1c1   :  { %v1207_v63 = vrot.slane %v1205_v18, 5  ;;  %v1211_v1 = vrot.slane %v1209_v57, 4  ;;  %v1226_v3 = vor.u32 %v1225_v59, %v1222_v26  ;;  %v1239_v8 = vshll.u32 %v8758_v53, 16 }
 0x1c2   :  { %v1231_v6 = vrot.slane %v1229_v61, 5  ;;  %v1235_v7 = vrot.slane %v1233_v62, 4  ;;  %v1203_v9 = vrot.slane %v1202_v60, 4  ;;  %v1217_v13 = vrot.slane %v1215_v2, 5  ;;  %v8083_v60 = vld [vmem:[#allocation7 + $0x90] sm:$0xff]  }
 0x1c3   :  { %v1212_v39 = vor.u32 %v1211_v1, %v1207_v63  ;;  %v1227_v31 = vrot.slane %v1226_v3, 4  ;;  %v1241_v15 = vrot.slane %v1239_v8, 5  ;;  %v6448_v27 = vcombine.low %v1173_v44, %v8760_v54  ;;  %v8079_v44 = vld [vmem:[#allocation7 + $0x38] sm:$0xff]   ;;  %v8792_v1 = vld [vmem:[#allocation2 + $0x8] sm:$0x3] }
 0x1c4   :  { %v1236_v11 = vor.u32 %v1235_v7, %v1231_v6  ;;  %v1208_v17 = vsel %vm8621_vm7, %v1203_v9, %v1207_v63  ;;  %v1631_v28 = vrot.slane %v1209_v57, 5  ;;  %v1632_v29 = vrot.slane %v1205_v18, 6  ;;  %v8082_v57 = vld [vmem:[#allocation7 + $0x88] sm:$0xff]   ;;  %v8087_v2 = vld [vmem:[#allocation7 + $0xb0] sm:$0xff]  }
 0x1c5   :  { %v1213_v12 = vrot.slane %v1212_v39, 4  ;;  %v1232_v16 = vsel %vm8621_vm7, %v1227_v31, %v1231_v6  ;;  %v1654_v30 = vrot.slane %v1233_v62, 5  ;;  %v1655_v24 = vrot.slane %v1229_v61, 6  ;;  %v8085_v61 = vld [vmem:[#allocation7 + $0xa0] sm:$0xff]   ;;  %v8088_v39 = vld [vmem:[#allocation7 + $0xb8] sm:$0xff]  }
 0x1c6   :  { %v1237_v14 = vrot.slane %v1236_v11, 4  ;;  %v8780_v33 = vor.u32 %v1632_v29, %v1631_v28  ;;  %v1482_v43 = vrot.slane %v8760_v54, 5  ;;  %v1485_v50 = vrot.slane %v8756_v52, 5  ;;  %v8084_v52 = vld [vmem:[#allocation7 + $0x98] sm:$0xff]   ;;  %v8090_v29 = vld [vmem:[#allocation7 + $0xc8] sm:$0xff]  }
 0x1c7   :  { %v1218_v19 = vsel %vm8621_vm7, %v1213_v12, %v1217_v13  ;;  %v8782_v36 = vor.u32 %v1655_v24, %v1654_v30  ;;  %v6458_v55 = vrot.slane %v1474_v48, 9  ;;  %v6449_v26 = vcombine.low %v8752_v46, %v8764_v58  ;;  %v8086_v46 = vld [vmem:[#allocation7 + $0xa8] sm:$0xff]   ;;  %v8091_v24 = vld [vmem:[#allocation7 + $0xd0] sm:$0xff]  }
 0x1c8   :  { %v6438_v21 = vcombine.low %v1208_v17, %v1218_v19  ;;  %v1242_v22 = vsel %vm8621_vm7, %v1237_v14, %v1241_v15  ;;  %v1484_v47 = vrot.slane %v1482_v43, 4  ;;  %v1623_v62 = vshrl.u32 %v1474_v48, 16  ;;  %v1475_v14 = vld [vmem:[#allocation2 + $0xc] sm:$0xe]  ;;  %v8089_v19 = vld [vmem:[#allocation7 + $0xc0] sm:$0xff]  }
 0x1c9   :  { %v6439_v23 = vcombine.low %v1232_v16, %v1242_v22  ;;  %v1483_v18 = vsel %vm8531_vm2, %v6458_v55, %v1482_v43  ;;  %v1626_v63 = vshll.u32 %v1474_v48, 16  ;;  %v1637_v7 = vshrl.u32 %v8792_v1, 16  ;;  %v8808_v43 = vld [vmem:[#allocation2 + $0x14] sm:$0x3] }
 0x1ca   :  { %7308 = vmatprep.mubr.bf16.mxu0 %v6438_v21  ;;  %v1486_v56 = vsel %vm8531_vm2, %v1484_v47, %v1485_v50  ;;  %v1625_v3 = vrot.slane %v1623_v62, 5  ;;  %v1640_v8 = vshll.u32 %v8792_v1, 16  ;;  %v1489_v9 = vrot.slane %v8764_v58, 5 }
 0x1cb   :  { %7309 = vmatmul.mubr.bf16.vlgmr.msra.gmra.mrb[8].mxu0 %v6439_v23  ;;  %v6460_v59 = vcombine.low %v1483_v18, %v1486_v56  ;;  %v1628_v6 = vrot.slane %v1626_v63, 6  ;;  %v1639_v11 = vrot.slane %v1637_v7, 5  ;;  %v1635_v15 = vrot.slane %v8780_v33, 4  ;;  %v8096_v18 = vld [vmem:[#allocation7 + $0xf8] sm:$0xff]  }
 0x1cc   :  { %7313 = vmatpush3.bf16.msra.mxu0 %v8720_v51  ;;  %7328 = vmatprep.mubr.bf16.mxu0 %v6448_v27  ;;  %v8078_v51 = vld [vmem:[#allocation7 + $0x30] sm:$0xff]   ;;  %v1642_v12 = vrot.slane %v1640_v8, 6  ;;  %v1491_v13 = vrot.slane %v1489_v9, 4  ;;  %v1492_v17 = vrot.slane %v8758_v53, 5  ;;  %v6459_v22 = vrot.slane %v1475_v14, 9  ;;  %v8098_v8 = vld [vmem:[#allocation7 + $0x108] sm:$0xff]  }
 0x1cd   :  { %7314 = vmatprep.subr.bf16.mxu0 %v8073_v25  ;;  %v1629_v31 = vor.u32 %v1628_v6, %v1625_v3  ;;  %v1660_v47 = vshrl.u32 %v8808_v43, 16  ;;  %v1663_v48 = vshll.u32 %v8808_v43, 16  ;;  %v1802_v50 = vrot.slane %v8760_v54, 6 }
 0x1ce   :  { %v1643_v16 = vor.u32 %v1642_v12, %v1639_v11  ;;  %v1493_v23 = vsel %vm8531_vm2, %v1491_v13, %v1492_v17  ;;  %v1490_v27 = vsel %vm8531_vm2, %v6459_v22, %v1489_v9  ;;  %v1805_v62 = vrot.slane %v8792_v1, 6  ;;  %v8099_v1 = vld [vmem:[#allocation7 + $0x110] sm:$0xff]   ;;  %v8104_v13 = vld [vmem:[#allocation7 + $0x138] sm:$0xff]  }
 0x1cf   :  { %v1630_v21 = vrot.slane %v1629_v31, 4  ;;  %v6461_v28 = vcombine.low %v1490_v27, %v1493_v23  ;;  %v1662_v56 = vrot.slane %v1660_v47, 5  ;;  %v8101_v31 = vld [vmem:[#allocation7 + $0x120] sm:$0xff]   ;;  %v8103_v11 = vld [vmem:[#allocation7 + $0x130] sm:$0xff]   ;;  %v1809_v12 = vrot.slane %v8764_v58, 6  ;;  %v8106_v23 = vld [vmem:[#allocation7 + $0x188] sm:$0xff]  }
 0x1d0   :  { %7315 = vmatpush3.bf16.msra.mxu0 %v8073_v25  ;;  %v1644_v25 = vsel %vm8648_vm8, %v1635_v15, %v1643_v16  ;;  %v1795_v15 = vld [vmem:[#allocation2 + $0xc] sm:$0xc]  ;;  %v1812_v17 = vrot.slane %v8808_v43, 6  ;;  %v8105_v58 = vld [vmem:[#allocation7 + $0x180] sm:$0xff]   ;;  %v8108_v27 = vld [vmem:[#allocation7 + $0x198] sm:$0xff]  }
 0x1d1   :  { %7316 = vmatprep.subr.bf16.mxu0 %v8074_v35  ;;  %v1634_v53 = vsel %vm8648_vm8, %v1630_v21, %v8780_v33  ;;  %7392 = vmatprep.subr.bf16.mxu1 %v8105_v58 }
 0x1d2   :  { %v6470_v30 = vcombine.low %v1634_v53, %v1644_v25  ;;  %7393 = vmatpush3.bf16.msra.mxu1 %v8105_v58  ;;  %v8107_v25 = vld [vmem:[#allocation7 + $0x190] sm:$0xff]   ;;  %v8110_v53 = vld [vmem:[#allocation7 + $0x1a8] sm:$0xff]  }
 0x1d3   :  { %7394 = vmatprep.subr.bf16.mxu1 %v8106_v23  ;;  %v1940_v58 = vld [vmem:[%s9330_s4 + $0x1] sm:$0x1] }
 0x1d4   :  { %7317 = vmatpush3.bf16.msra.mxu0 %v8074_v35  ;;  %v8092_v35 = vld [vmem:[#allocation7 + $0xd8] sm:$0xff]  }
 0x1d5   :  { %7318 = vmatprep.subr.bf16.mxu0 %v8075_v37 }
 0x1d6   :  { %7395 = vmatpush3.bf16.msra.mxu1 %v8106_v23 }
 0x1d7   :  { %7396 = vmatprep.subr.bf16.mxu1 %v8107_v25 }
 0x1d8   :  { %7319 = vmatpush3.bf16.msra.mxu0 %v8075_v37  ;;  %v8093_v37 = vld [vmem:[#allocation7 + $0xe0] sm:$0xff]  }
 0x1d9   :  { %7320 = vmatprep.subr.bf16.mxu0 %v8076_v38 }
 0x1da   :  { %7397 = vmatpush3.bf16.msra.mxu1 %v8107_v25 }
 0x1db   :  { %7398 = vmatprep.subr.bf16.mxu1 %v8108_v27 }
 0x1dc   :  { %7321 = vmatpush3.bf16.msra.mxu0 %v8076_v38  ;;  %v1646_v38 = vshrl.u32 %v1475_v14, 16 }
 0x1dd   :  { %7322 = vmatprep.subr.bf16.mxu0 %v8077_v40 }
 0x1de   :  { %v1648_v33 = vrot.slane %v1646_v38, 5  ;;  %7399 = vmatpush3.bf16.msra.mxu1 %v8108_v27 }
 0x1e0   :  { %7323 = vmatpush3.bf16.msra.mxu0 %v8077_v40  ;;  %v1649_v40 = vshll.u32 %v1475_v14, 16  ;;  %v1811_v14 = vrot.slane %v1809_v12, 4 }
 0x1e1   :  { %7324 = vmatprep.subr.bf16.mxu0 %v8078_v51 }
 0x1e2   :  { %v1813_v21 = vsel %vm8684_vm11, %v1811_v14, %v1812_v17 }
 0x1e4   :  { %7325 = vmatpush3.bf16.msra.mxu0 %v8078_v51  ;;  %v8094_v51 = vld [vmem:[#allocation7 + $0xe8] sm:$0xff]  }
 0x1e5   :  { %7326 = vmatprep.subr.bf16.mxu0 %v8079_v44 }
 0x1e8   :  { %7327 = vmatpush3.bf16.msra.mxu0 %v8079_v44  ;;  %v1651_v44 = vrot.slane %v1649_v40, 6 }
 0x1e9   :  { %7332 = vmatprep.subr.bf16.mxu0 %v8081_v49 }
 0x1ea   :  { %v1652_v55 = vor.u32 %v1651_v44, %v1648_v33 }
 0x1eb   :  { %7329 = vmatmul.mubr.bf16.vlgmr.msra.gmra.mrb[8].mxu0 %v6449_v26  ;;  %v1665_v26 = vrot.slane %v1663_v48, 6 }
 0x1ec   :  { %7333 = vmatpush3.bf16.msra.mxu0 %v8081_v49  ;;  %7348 = vmatprep.mubr.bf16.mxu0 %v6460_v59  ;;  %v8095_v49 = vld [vmem:[#allocation7 + $0xf0] sm:$0xff]   ;;  %v1804_v59 = vrot.slane %v1802_v50, 4 }
 0x1ed   :  { %7334 = vmatprep.subr.bf16.mxu0 %v8082_v57 }
 0x1f0   :  { %7335 = vmatpush3.bf16.msra.mxu0 %v8082_v57  ;;  %v1658_v57 = vrot.slane %v8782_v36, 4 }
 0x1f1   :  { %7336 = vmatprep.subr.bf16.mxu0 %v8083_v60 }
 0x1f4   :  { %7337 = vmatpush3.bf16.msra.mxu0 %v8083_v60  ;;  %v1653_v60 = vrot.slane %v1652_v55, 4 }
 0x1f5   :  { %7338 = vmatprep.subr.bf16.mxu0 %v8084_v52 }
 0x1f6   :  { %v1657_v3 = vsel %vm8648_vm8, %v1653_v60, %v8782_v36  ;;  %v8102_v36 = vld [vmem:[#allocation7 + $0x128] sm:$0xff]  }
 0x1f8   :  { %7339 = vmatpush3.bf16.msra.mxu0 %v8084_v52  ;;  %v1666_v52 = vor.u32 %v1665_v26, %v1662_v56 }
 0x1f9   :  { %7340 = vmatprep.subr.bf16.mxu0 %v8085_v61 }
 0x1fa   :  { %v1667_v54 = vsel %vm8648_vm8, %v1658_v57, %v1666_v52 }
 0x1fb   :  { %v6471_v6 = vcombine.low %v1657_v3, %v1667_v54 }
 0x1fc   :  { %7341 = vmatpush3.bf16.msra.mxu0 %v8085_v61  ;;  %v1794_v61 = vld [vmem:[#allocation2] sm:$0xc] }
 0x1fd   :  { %7342 = vmatprep.subr.bf16.mxu0 %v8086_v46  ;;  %v6480_v63 = vrot.slane %v1794_v61, 10 }
 0x1ff   :  { %v1803_v7 = vsel %vm8684_vm11, %v6480_v63, %v1802_v50 }
 0x200   :  { %7343 = vmatpush3.bf16.msra.mxu0 %v8086_v46  ;;  %v8097_v46 = vld [vmem:[#allocation7 + $0x100] sm:$0xff]  }
 0x201   :  { %7344 = vmatprep.subr.bf16.mxu0 %v8087_v2 }
 0x204   :  { %7345 = vmatpush3.bf16.msra.mxu0 %v8087_v2  ;;  %v1806_v2 = vsel %vm8684_vm11, %v1804_v59, %v1805_v62 }
 0x205   :  { %7346 = vmatprep.subr.bf16.mxu0 %v8088_v39  ;;  %v6482_v9 = vcombine.low %v1803_v7, %v1806_v2 }
 0x208   :  { %7347 = vmatpush3.bf16.msra.mxu0 %v8088_v39  ;;  %v8100_v39 = vld [vmem:[#allocation7 + $0x118] sm:$0xff]  }
 0x209   :  { %7352 = vmatprep.subr.bf16.mxu0 %v8089_v19 }
 0x20b   :  { %7349 = vmatmul.mubr.bf16.vlgmr.msra.gmra.mrb[8].mxu0 %v6461_v28  ;;  %v8109_v28 = vld [vmem:[#allocation7 + $0x1a0] sm:$0xff]  }
 0x20c   :  { %7353 = vmatpush3.bf16.msra.mxu0 %v8089_v19  ;;  %7368 = vmatprep.mubr.bf16.mxu0 %v6470_v30  ;;  %v6481_v19 = vrot.slane %v1795_v15, 10  ;;  %v8112_v30 = vld [vmem:[#allocation7 + $0x1b8] sm:$0xff]  }
 0x20d   :  { %7354 = vmatprep.subr.bf16.mxu0 %v8090_v29  ;;  %7400 = vmatprep.subr.bf16.mxu1 %v8109_v28 }
 0x20e   :  { %v1810_v16 = vsel %vm8684_vm11, %v6481_v19, %v1809_v12  ;;  %7401 = vmatpush3.bf16.msra.mxu1 %v8109_v28  ;;  %v6492_v28 = vld [vmem:[%s9331_s5 + $0x1] ss:$0 sm:$0xff] }
 0x20f   :  { %v6483_v22 = vcombine.low %v1810_v16, %v1813_v21  ;;  %7402 = vmatprep.subr.bf16.mxu1 %v8110_v53 }
 0x210   :  { %7355 = vmatpush3.bf16.msra.mxu0 %v8090_v29  ;;  %v8111_v29 = vld [vmem:[#allocation7 + $0x1b0] sm:$0xff]  }
 0x211   :  { %7356 = vmatprep.subr.bf16.mxu0 %v8091_v24 }
 0x212   :  { %7403 = vmatpush3.bf16.msra.mxu1 %v8110_v53 }
 0x213   :  { %7404 = vmatprep.subr.bf16.mxu1 %v8111_v29 }
 0x214   :  { %7357 = vmatpush3.bf16.msra.mxu0 %v8091_v24  ;;  %v8830_v24 = vld [vmem:[#allocation7 + $0x140] sm:$0xff]  }
 0x215   :  { %7358 = vmatprep.subr.bf16.mxu0 %v8092_v35 }
 0x216   :  { %7405 = vmatpush3.bf16.msra.mxu1 %v8111_v29 }
 0x217   :  { %7406 = vmatprep.subr.bf16.mxu1 %v8112_v30 }
 0x218   :  { %7359 = vmatpush3.bf16.msra.mxu0 %v8092_v35 }
 0x219   :  { %7360 = vmatprep.subr.bf16.mxu0 %v8093_v37 }
 0x21a   :  { %7407 = vmatpush3.bf16.msra.mxu1 %v8112_v30 }
 0x21b   :  { %7412 = vmatprep.subr.bf16.mxu1 %v8830_v24 }
 0x21c   :  { %7361 = vmatpush3.bf16.msra.mxu0 %v8093_v37 }
 0x21d   :  { %7362 = vmatprep.subr.bf16.mxu0 %v8094_v51 }
 0x220   :  { %7363 = vmatpush3.bf16.msra.mxu0 %v8094_v51 }
 0x221   :  { %7364 = vmatprep.subr.bf16.mxu0 %v8095_v49 }
 0x224   :  { %7365 = vmatpush3.bf16.msra.mxu0 %v8095_v49 }
 0x225   :  { %7366 = vmatprep.subr.bf16.mxu0 %v8096_v18 }
 0x228   :  { %7367 = vmatpush3.bf16.msra.mxu0 %v8096_v18 }
 0x229   :  { %7372 = vmatprep.subr.bf16.mxu0 %v8097_v46 }
 0x22b   :  { %7369 = vmatmul.mubr.bf16.vlgmr.msra.gmra.mrb[8].mxu0 %v6471_v6 }
 0x22c   :  { %7373 = vmatpush3.bf16.msra.mxu0 %v8097_v46  ;;  %7388 = vmatprep.mubr.bf16.mxu0 %v6482_v9 }
 0x22d   :  { %7374 = vmatprep.subr.bf16.mxu0 %v8098_v8 }
 0x230   :  { %7375 = vmatpush3.bf16.msra.mxu0 %v8098_v8 }
 0x231   :  { %7376 = vmatprep.subr.bf16.mxu0 %v8099_v1 }
 0x234   :  { %7377 = vmatpush3.bf16.msra.mxu0 %v8099_v1 }
 0x235   :  { %7378 = vmatprep.subr.bf16.mxu0 %v8100_v39 }
 0x238   :  { %7379 = vmatpush3.bf16.msra.mxu0 %v8100_v39 }
 0x239   :  { %7380 = vmatprep.subr.bf16.mxu0 %v8101_v31 }
 0x23c   :  { %7381 = vmatpush3.bf16.msra.mxu0 %v8101_v31 }
 0x23d   :  { %7382 = vmatprep.subr.bf16.mxu0 %v8102_v36 }
 0x240   :  { %7383 = vmatpush3.bf16.msra.mxu0 %v8102_v36 }
 0x241   :  { %7384 = vmatprep.subr.bf16.mxu0 %v8103_v11 }
 0x244   :  { %7385 = vmatpush3.bf16.msra.mxu0 %v8103_v11 }
 0x245   :  { %7386 = vmatprep.subr.bf16.mxu0 %v8104_v13 }
 0x248   :  { %7387 = vmatpush3.bf16.msra.mxu0 %v8104_v13 }
 0x24b   :  { %7389 = vmatmul.mubr.bf16.vlgmr.msra.gmra.mrb[8].mxu0 %v6483_v22 }
 0x31e   :  { %v7390_v35 = vpop.f32.mrb[8].mxu0 }
 0x31f   :  { %v1921_v37 = vpop.f32.mrb[9].mxu0 }
 0x320   :  { %v7391_v38 = vpop.f32.mrb[10].mxu0 }
 0x321   :  { %v1949_v40 = vadd.f32 %v7391_v38, %v7390_v35  ;;  %v1924_v51 = vpop.f32.mrb[11].mxu0 }
 0x322   :  { %v1942_v43 = vadd.f32 %v1924_v51, %v1921_v37 }
 0x323   :  { %v1950_v33 = vrot.slane %v1949_v40, 4 }
 0x324   :  { %v1943_v44 = vrot.slane %v1942_v43, 4 }
 0x325   :  { %v1951_v47 = vadd.f32 %v1950_v33, %v1949_v40 }
 0x326   :  { %v1944_v48 = vadd.f32 %v1943_v44, %v1942_v43 }
 0x327   :  { %v1952_v49 = vrot.slane %v1951_v47, 2 }
 0x328   :  { %v1945_v50 = vrot.slane %v1944_v48, 2 }
 0x329   :  { %v1953_v55 = vadd.f32 %v1952_v49, %v1951_v47 }
 0x32a   :  { %v1946_v56 = vadd.f32 %v1945_v50, %v1944_v48 }
 0x32b   :  { %v1954_v26 = vrot.slane %v1953_v55, 1 }
 0x32c   :  { %v1947_v18 = vrot.slane %v1946_v56, 1 }
 0x32d   :  { %v1955_v57 = vadd.f32 %v1954_v26, %v1953_v55 }
 0x32e   :  { %v1948_v59 = vadd.f32 %v1947_v18, %v1946_v56 }
 0x330   :  { %v1956_v60 = vadd.f32 %v1955_v57, %v1948_v59 }
 0x332   :  { %v1957_v52 = vmul.f32 0.03125, %v1956_v60 }
 0x334   :  { %v1958_v61 = vsub.f32 %v1921_v37, %v1957_v52  ;;  %v1959_v46 = vsub.f32 %v1924_v51, %v1957_v52  ;;  %v1960_v62 = vsub.f32 %v7390_v35, %v1957_v52  ;;  %v1961_v54 = vsub.f32 %v7391_v38, %v1957_v52 }
 0x336   :  { %v1962_v63 = vmul.f32 %v1958_v61, %v1958_v61  ;;  %v1963_v2 = vmul.f32 %v1959_v46, %v1959_v46  ;;  %v1964_v3 = vmul.f32 %v1960_v62, %v1960_v62  ;;  %v1965_v6 = vmul.f32 %v1961_v54, %v1961_v54 }
 0x338   :  { %v1966_v7 = vadd.f32 %v1963_v2, %v1962_v63  ;;  %v1973_v8 = vadd.f32 %v1965_v6, %v1964_v3 }
 0x33a   :  { %v1967_v9 = vrot.slane %v1966_v7, 4  ;;  %v1974_v1 = vrot.slane %v1973_v8, 4 }
 0x33c   :  { %v1968_v39 = vadd.f32 %v1967_v9, %v1966_v7  ;;  %v1975_v31 = vadd.f32 %v1974_v1, %v1973_v8 }
 0x33e   :  { %v1969_v36 = vrot.slane %v1968_v39, 2  ;;  %v1976_v11 = vrot.slane %v1975_v31, 2 }
 0x340   :  { %v1970_v12 = vadd.f32 %v1969_v36, %v1968_v39  ;;  %v1977_v13 = vadd.f32 %v1976_v11, %v1975_v31 }
 0x342   :  { %v1971_v14 = vrot.slane %v1970_v12, 1  ;;  %v1978_v15 = vrot.slane %v1977_v13, 1 }
 0x344   :  { %v1972_v17 = vadd.f32 %v1971_v14, %v1970_v12  ;;  %v1979_v19 = vadd.f32 %v1978_v15, %v1977_v13 }
 0x346   :  { %v1980_v21 = vadd.f32 %v1979_v19, %v1972_v17 }
 0x348   :  { %v1981_v16 = vmul.f32 0.03125, %v1980_v21 }
 0x34a   :  { %v1982_v22 = vadd.f32 1e-05, %v1981_v16 }
 0x34c   :  { %8319 = vrsqrt.f32 %v1982_v22 }
 0x356   :  { %v8320_v23 = vpop.eup %8319 }
 0x357   :  { %v1984_v25 = vmul.f32 %v8320_v23, %v1940_v58 }
 0x359   :  { %v1988_v27 = vrot.slane %v1984_v25, %v8726_v0 }
 0x35b   :  { %v1989_v53 = vmul.f32 %v1988_v27, %v1958_v61  ;;  %v1990_v29 = vmul.f32 %v1988_v27, %v1959_v46  ;;  %v1991_v30 = vmul.f32 %v1988_v27, %v1960_v62  ;;  %v1992_v35 = vmul.f32 %v1988_v27, %v1961_v54 }
 0x35d   :  { %v1997_v37 = vadd.f32 %v6492_v28, %v1989_v53  ;;  %v1998_v38 = vadd.f32 %v6492_v28, %v1990_v29  ;;  %v1999_v40 = vadd.f32 %v6492_v28, %v1991_v30  ;;  %v2000_v51 = vadd.f32 %v6492_v28, %v1992_v35 }
 0x35f   :  { %v2001_v43 = vmax.f32 %v1997_v37, 0.0  ;;  %v2002_v33 = vmax.f32 %v1998_v38, 0.0  ;;  %v2003_v44 = vmax.f32 %v1999_v40, 0.0  ;;  %v2004_v47 = vmax.f32 %v2000_v51, 0.0 }
 0x361   :  { %v6792_v48 = vpack.c.bf16 %v2001_v43, %v2001_v43  ;;  %v6793_v49 = vpack.c.bf16 %v2002_v33, %v2002_v33  ;;  %v6794_v50 = vpack.c.bf16 %v2003_v44, %v2003_v44  ;;  %v6795_v55 = vpack.c.bf16 %v2004_v47, %v2004_v47 }
 0x363   :  { %v2017_v56 = vrot.slane %v6792_v48, 7  ;;  %v2019_v26 = vrot.slane %v6793_v49, 7  ;;  %v2022_v18 = vrot.slane %v6794_v50, 7  ;;  %v2024_v57 = vrot.slane %v6795_v55, 7  ;;  %v8115_v49 = vld [vmem:[#allocation7 + $0x148] sm:$0xff]  }
 0x365   :  { %v2018_v59 = vrot.slane %v2017_v56, 4  ;;  %v2021_v60 = vrot.slane %v2019_v26, 4  ;;  %v2023_v52 = vrot.slane %v2022_v18, 4  ;;  %v2026_v61 = vrot.slane %v2024_v57, 4  ;;  %2033 = vst [vmem:[#allocation2] sm:$0xe] %v2017_v56 }
 0x366   :  { %2036 = vst [vmem:[#allocation2 + $0xc] sm:$0xe] %v2022_v18 }
 0x367   :  { %v2020_v46 = vsel %vm8744_vm14, %v2018_v59, %v2019_v26  ;;  %v2025_v62 = vsel %vm8744_vm14, %v2023_v52, %v2024_v57  ;;  %2035 = vst [vmem:[#allocation2 + $0x8] sm:$0x1] %v2021_v60  ;;  %2038 = vst [vmem:[#allocation2 + $0x14] sm:$0x1] %v2026_v61  ;;  %v8116_v59 = vld [vmem:[#allocation7 + $0x150] sm:$0xff]   ;;  %v8117_v52 = vld [vmem:[#allocation7 + $0x158] sm:$0xff]  }
 0x368   :  { %2034 = vst [vmem:[#allocation2 + $0x4] sm:$0xf] %v2020_v46  ;;  %2037 = vst [vmem:[#allocation2 + $0x10] sm:$0xf] %v2025_v62  ;;  %v8118_v61 = vld [vmem:[#allocation7 + $0x160] sm:$0xff]   ;;  %v8119_v46 = vld [vmem:[#allocation7 + $0x168] sm:$0xff]  }
 0x36c   :  { %v2039_v54 = vld [vmem:[#allocation2] sm:$0xf] }
 0x36d   :  { %v8844_v63 = vld [vmem:[#allocation2 + $0xc] sm:$0xf]  ;;  %v2063_v2 = vshrl.u32 %v2039_v54, 16  ;;  %v2066_v3 = vshll.u32 %v2039_v54, 16 }
 0x36e   :  { %v2087_v6 = vshrl.u32 %v8844_v63, 16  ;;  %v2090_v7 = vshll.u32 %v8844_v63, 16  ;;  %v8848_v8 = vld [vmem:[#allocation2 + $0x8] sm:$0x1]  ;;  %v8850_v9 = vld [vmem:[#allocation2 + $0x14] sm:$0x1] }
 0x36f   :  { %v8852_v1 = vld [vmem:[#allocation2 + $0x4] sm:$0xf]  ;;  %v2065_v39 = vrot.slane %v2063_v2, 4  ;;  %v2068_v31 = vrot.slane %v2066_v3, 5  ;;  %v8856_v13 = vld [vmem:[#allocation2 + $0x10] sm:$0xf] }
 0x370   :  { %v2089_v36 = vrot.slane %v2087_v6, 4  ;;  %v2072_v11 = vshll.u32 %v8852_v1, 16  ;;  %v2076_v12 = vshrl.u32 %v8852_v1, 16  ;;  %v2092_v14 = vrot.slane %v2090_v7, 5  ;;  %v2341_v3 = vld [vmem:[#allocation2] sm:$0xe] }
 0x371   :  { %v2069_v15 = vor.u32 %v2068_v31, %v2065_v39  ;;  %v2096_v17 = vshll.u32 %v8856_v13, 16  ;;  %v2100_v19 = vshrl.u32 %v8856_v13, 16  ;;  %v2082_v22 = vshll.u32 %v8848_v8, 16  ;;  %v8123_v6 = vld [vmem:[#allocation7 + $0x1c0] sm:$0xff]  }
 0x372   :  { %v2074_v21 = vrot.slane %v2072_v11, 5  ;;  %v2078_v16 = vrot.slane %v2076_v12, 4  ;;  %v2093_v58 = vor.u32 %v2092_v14, %v2089_v36  ;;  %v2106_v27 = vshll.u32 %v8850_v9, 16 }
 0x373   :  { %v2098_v23 = vrot.slane %v2096_v17, 5  ;;  %v2102_v25 = vrot.slane %v2100_v19, 4  ;;  %v2070_v28 = vrot.slane %v2069_v15, 4  ;;  %v2084_v37 = vrot.slane %v2082_v22, 5  ;;  %v8125_v15 = vld [vmem:[#allocation7 + $0x1d0] sm:$0xff]  }
 0x374   :  { %v2079_v53 = vor.u32 %v2078_v16, %v2074_v21  ;;  %v2094_v29 = vrot.slane %v2093_v58, 4  ;;  %v2108_v40 = vrot.slane %v2106_v27, 5  ;;  %v6507_v50 = vcombine.low %v2039_v54, %v8852_v1  ;;  %v8121_v54 = vld [vmem:[#allocation7 + $0x178] sm:$0xff]   ;;  %v8884_v16 = vld [vmem:[#allocation2 + $0x8] sm:$0x3] }
 0x375   :  { %v2103_v30 = vor.u32 %v2102_v25, %v2098_v23  ;;  %v2075_v51 = vsel %vm8621_vm7, %v2070_v28, %v2074_v21  ;;  %v2498_v55 = vrot.slane %v2076_v12, 5  ;;  %v2499_v56 = vrot.slane %v2072_v11, 6  ;;  %v8124_v12 = vld [vmem:[#allocation7 + $0x1c8] sm:$0xff]   ;;  %v8129_v22 = vld [vmem:[#allocation7 + $0x1f0] sm:$0xff]  }
 0x376   :  { %v2080_v35 = vrot.slane %v2079_v53, 4  ;;  %v2099_v44 = vsel %vm8621_vm7, %v2094_v29, %v2098_v23  ;;  %v2521_v26 = vrot.slane %v2100_v19, 5  ;;  %v2522_v57 = vrot.slane %v2096_v17, 6  ;;  %v8127_v17 = vld [vmem:[#allocation7 + $0x1e0] sm:$0xff]   ;;  %v8130_v53 = vld [vmem:[#allocation7 + $0x1f8] sm:$0xff]  }
 0x377   :  { %v2104_v38 = vrot.slane %v2103_v30, 4  ;;  %v8872_v18 = vor.u32 %v2499_v56, %v2498_v55  ;;  %v2349_v62 = vrot.slane %v8852_v1, 5  ;;  %v2352_v7 = vrot.slane %v8848_v8, 5  ;;  %v8126_v8 = vld [vmem:[#allocation7 + $0x1d8] sm:$0xff]   ;;  %v8132_v56 = vld [vmem:[#allocation7 + $0x208] sm:$0xff]  }
 0x378   :  { %v2085_v43 = vsel %vm8621_vm7, %v2080_v35, %v2084_v37  ;;  %v8874_v60 = vor.u32 %v2522_v57, %v2521_v26  ;;  %v6517_v39 = vrot.slane %v2341_v3, 9  ;;  %v6508_v36 = vcombine.low %v8844_v63, %v8856_v13  ;;  %v8128_v63 = vld [vmem:[#allocation7 + $0x1e8] sm:$0xff]   ;;  %v8133_v57 = vld [vmem:[#allocation7 + $0x210] sm:$0xff]  }
 0x379   :  { %v6497_v33 = vcombine.low %v2075_v51, %v2085_v43  ;;  %v2109_v47 = vsel %vm8621_vm7, %v2104_v38, %v2108_v40  ;;  %v2351_v2 = vrot.slane %v2349_v62, 4  ;;  %v2490_v19 = vshrl.u32 %v2341_v3, 16  ;;  %v2342_v38 = vld [vmem:[#allocation2 + $0xc] sm:$0xe]  ;;  %v8131_v43 = vld [vmem:[#allocation7 + $0x200] sm:$0xff]  }
 0x37a   :  { %v6498_v48 = vcombine.low %v2099_v44, %v2109_v47  ;;  %v2350_v11 = vsel %vm8531_vm2, %v6517_v39, %v2349_v62  ;;  %v2493_v21 = vshll.u32 %v2341_v3, 16  ;;  %v2504_v25 = vshrl.u32 %v8884_v16, 16  ;;  %v8900_v62 = vld [vmem:[#allocation2 + $0x14] sm:$0x3] }
 0x37b   :  { %7408 = vmatprep.mubr.bf16.mxu1 %v6497_v33  ;;  %v2353_v31 = vsel %vm8531_vm2, %v2351_v2, %v2352_v7  ;;  %v2492_v58 = vrot.slane %v2490_v19, 5  ;;  %v2507_v27 = vshll.u32 %v8884_v16, 16  ;;  %v2356_v28 = vrot.slane %v8856_v13, 5 }
 0x37c   :  { %7409 = vmatmul.mubr.bf16.vlgmr.msra.gmra.mrb[4].mxu1 %v6498_v48  ;;  %v6519_v14 = vcombine.low %v2350_v11, %v2353_v31  ;;  %v2495_v23 = vrot.slane %v2493_v21, 6  ;;  %v2506_v30 = vrot.slane %v2504_v25, 5  ;;  %v2502_v40 = vrot.slane %v8872_v18, 4  ;;  %v8138_v11 = vld [vmem:[#allocation7 + $0x238] sm:$0xff]  }
 0x37d   :  { %7413 = vmatpush3.bf16.msra.mxu1 %v8830_v24  ;;  %7428 = vmatprep.mubr.bf16.mxu1 %v6507_v50  ;;  %v8120_v24 = vld [vmem:[#allocation7 + $0x170] sm:$0xff]   ;;  %v2509_v35 = vrot.slane %v2507_v27, 6  ;;  %v2358_v37 = vrot.slane %v2356_v28, 4  ;;  %v2359_v51 = vrot.slane %v8850_v9, 5  ;;  %v6518_v47 = vrot.slane %v2342_v38, 9  ;;  %v8140_v27 = vld [vmem:[#allocation7 + $0x248] sm:$0xff]  }
 0x37e   :  { %7414 = vmatprep.subr.bf16.mxu1 %v8115_v49  ;;  %v2496_v29 = vor.u32 %v2495_v23, %v2492_v58  ;;  %v2527_v2 = vshrl.u32 %v8900_v62, 16  ;;  %v2530_v3 = vshll.u32 %v8900_v62, 16  ;;  %v2669_v7 = vrot.slane %v8852_v1, 6 }
 0x37f   :  { %v2510_v44 = vor.u32 %v2509_v35, %v2506_v30  ;;  %v2360_v48 = vsel %vm8531_vm2, %v2358_v37, %v2359_v51  ;;  %v2357_v50 = vsel %vm8531_vm2, %v6518_v47, %v2356_v28  ;;  %v2672_v19 = vrot.slane %v8884_v16, 6  ;;  %v8141_v16 = vld [vmem:[#allocation7 + $0x250] sm:$0xff]   ;;  %v8146_v37 = vld [vmem:[#allocation7 + $0x278] sm:$0xff]  }
 0x380   :  { %v2497_v33 = vrot.slane %v2496_v29, 4  ;;  %v6520_v55 = vcombine.low %v2357_v50, %v2360_v48  ;;  %v2529_v31 = vrot.slane %v2527_v2, 5  ;;  %v8143_v29 = vld [vmem:[#allocation7 + $0x260] sm:$0xff]   ;;  %v8145_v30 = vld [vmem:[#allocation7 + $0x270] sm:$0xff]   ;;  %v2676_v35 = vrot.slane %v8856_v13, 6  ;;  %v8148_v48 = vld [vmem:[#allocation7 + $0x2c8] sm:$0xff]  }
 0x381   :  { %7415 = vmatpush3.bf16.msra.mxu1 %v8115_v49  ;;  %v2511_v49 = vsel %vm8648_vm8, %v2502_v40, %v2510_v44  ;;  %v2662_v40 = vld [vmem:[#allocation2 + $0xc] sm:$0xc]  ;;  %v2679_v51 = vrot.slane %v8900_v62, 6  ;;  %v8147_v13 = vld [vmem:[#allocation7 + $0x2c0] sm:$0xff]   ;;  %v8150_v50 = vld [vmem:[#allocation7 + $0x2d8] sm:$0xff]  }
 0x382   :  { %7416 = vmatprep.subr.bf16.mxu1 %v8116_v59  ;;  %v2501_v9 = vsel %vm8648_vm8, %v2497_v33, %v8872_v18  ;;  %7492 = vmatprep.subr.bf16.mxu0 %v8147_v13 }
 0x383   :  { %v6529_v26 = vcombine.low %v2501_v9, %v2511_v49  ;;  %7493 = vmatpush3.bf16.msra.mxu0 %v8147_v13  ;;  %v8149_v49 = vld [vmem:[#allocation7 + $0x2d0] sm:$0xff]   ;;  %v8152_v9 = vld [vmem:[#allocation7 + $0x2e8] sm:$0xff]  }
 0x384   :  { %7494 = vmatprep.subr.bf16.mxu0 %v8148_v48  ;;  %v2807_v13 = vld [vmem:[%s9330_s4 + $0x2] sm:$0x1] }
 0x385   :  { %7417 = vmatpush3.bf16.msra.mxu1 %v8116_v59  ;;  %v8134_v59 = vld [vmem:[#allocation7 + $0x218] sm:$0xff]  }
 0x386   :  { %7418 = vmatprep.subr.bf16.mxu1 %v8117_v52 }
 0x387   :  { %7495 = vmatpush3.bf16.msra.mxu0 %v8148_v48 }
 0x388   :  { %7496 = vmatprep.subr.bf16.mxu0 %v8149_v49 }
 0x389   :  { %7419 = vmatpush3.bf16.msra.mxu1 %v8117_v52  ;;  %v8135_v52 = vld [vmem:[#allocation7 + $0x220] sm:$0xff]  }
 0x38a   :  { %7420 = vmatprep.subr.bf16.mxu1 %v8118_v61 }
 0x38b   :  { %7497 = vmatpush3.bf16.msra.mxu0 %v8149_v49 }
 0x38c   :  { %7498 = vmatprep.subr.bf16.mxu0 %v8150_v50 }
 0x38d   :  { %7421 = vmatpush3.bf16.msra.mxu1 %v8118_v61  ;;  %v2513_v61 = vshrl.u32 %v2342_v38, 16 }
 0x38e   :  { %7422 = vmatprep.subr.bf16.mxu1 %v8119_v46 }
 0x38f   :  { %v2515_v18 = vrot.slane %v2513_v61, 5  ;;  %7499 = vmatpush3.bf16.msra.mxu0 %v8150_v50 }
 0x391   :  { %7423 = vmatpush3.bf16.msra.mxu1 %v8119_v46  ;;  %v2516_v46 = vshll.u32 %v2342_v38, 16  ;;  %v2678_v38 = vrot.slane %v2676_v35, 4 }
 0x392   :  { %7424 = vmatprep.subr.bf16.mxu1 %v8120_v24 }
 0x393   :  { %v2680_v33 = vsel %vm8684_vm11, %v2678_v38, %v2679_v51 }
 0x395   :  { %7425 = vmatpush3.bf16.msra.mxu1 %v8120_v24  ;;  %v8136_v24 = vld [vmem:[#allocation7 + $0x228] sm:$0xff]  }
 0x396   :  { %7426 = vmatprep.subr.bf16.mxu1 %v8121_v54 }
 0x399   :  { %7427 = vmatpush3.bf16.msra.mxu1 %v8121_v54  ;;  %v2518_v54 = vrot.slane %v2516_v46, 6 }
 0x39a   :  { %7432 = vmatprep.subr.bf16.mxu1 %v8123_v6 }
 0x39b   :  { %v2519_v39 = vor.u32 %v2518_v54, %v2515_v18 }
 0x39c   :  { %7429 = vmatmul.mubr.bf16.vlgmr.msra.gmra.mrb[4].mxu1 %v6508_v36  ;;  %v2532_v36 = vrot.slane %v2530_v3, 6 }
 0x39d   :  { %7433 = vmatpush3.bf16.msra.mxu1 %v8123_v6  ;;  %7448 = vmatprep.mubr.bf16.mxu1 %v6519_v14  ;;  %v8137_v6 = vld [vmem:[#allocation7 + $0x230] sm:$0xff]   ;;  %v2671_v14 = vrot.slane %v2669_v7, 4 }
 0x39e   :  { %7434 = vmatprep.subr.bf16.mxu1 %v8124_v12 }
 0x3a1   :  { %7435 = vmatpush3.bf16.msra.mxu1 %v8124_v12  ;;  %v2525_v12 = vrot.slane %v8874_v60, 4 }
 0x3a2   :  { %7436 = vmatprep.subr.bf16.mxu1 %v8125_v15 }
 0x3a5   :  { %7437 = vmatpush3.bf16.msra.mxu1 %v8125_v15  ;;  %v2520_v15 = vrot.slane %v2519_v39, 4 }
 0x3a6   :  { %7438 = vmatprep.subr.bf16.mxu1 %v8126_v8 }
 0x3a7   :  { %v2524_v58 = vsel %vm8648_vm8, %v2520_v15, %v8874_v60  ;;  %v8144_v60 = vld [vmem:[#allocation7 + $0x268] sm:$0xff]  }
 0x3a9   :  { %7439 = vmatpush3.bf16.msra.mxu1 %v8126_v8  ;;  %v2533_v8 = vor.u32 %v2532_v36, %v2529_v31 }
 0x3aa   :  { %7440 = vmatprep.subr.bf16.mxu1 %v8127_v17 }
 0x3ab   :  { %v2534_v1 = vsel %vm8648_vm8, %v2525_v12, %v2533_v8 }
 0x3ac   :  { %v6530_v23 = vcombine.low %v2524_v58, %v2534_v1 }
 0x3ad   :  { %7441 = vmatpush3.bf16.msra.mxu1 %v8127_v17  ;;  %v2661_v17 = vld [vmem:[#allocation2] sm:$0xc] }
 0x3ae   :  { %7442 = vmatprep.subr.bf16.mxu1 %v8128_v63  ;;  %v6539_v21 = vrot.slane %v2661_v17, 10 }
 0x3b0   :  { %v2670_v25 = vsel %vm8684_vm11, %v6539_v21, %v2669_v7 }
 0x3b1   :  { %7443 = vmatpush3.bf16.msra.mxu1 %v8128_v63  ;;  %v8139_v63 = vld [vmem:[#allocation7 + $0x240] sm:$0xff]  }
 0x3b2   :  { %7444 = vmatprep.subr.bf16.mxu1 %v8129_v22 }
 0x3b5   :  { %7445 = vmatpush3.bf16.msra.mxu1 %v8129_v22  ;;  %v2673_v22 = vsel %vm8684_vm11, %v2671_v14, %v2672_v19 }
 0x3b6   :  { %7446 = vmatprep.subr.bf16.mxu1 %v8130_v53  ;;  %v6541_v28 = vcombine.low %v2670_v25, %v2673_v22 }
 0x3b9   :  { %7447 = vmatpush3.bf16.msra.mxu1 %v8130_v53  ;;  %v8142_v53 = vld [vmem:[#allocation7 + $0x258] sm:$0xff]  }
 0x3ba   :  { %7452 = vmatprep.subr.bf16.mxu1 %v8131_v43 }
 0x3bc   :  { %7449 = vmatmul.mubr.bf16.vlgmr.msra.gmra.mrb[4].mxu1 %v6520_v55  ;;  %v8151_v55 = vld [vmem:[#allocation7 + $0x2e0] sm:$0xff]  }
 0x3bd   :  { %7453 = vmatpush3.bf16.msra.mxu1 %v8131_v43  ;;  %7468 = vmatprep.mubr.bf16.mxu1 %v6529_v26  ;;  %v6540_v43 = vrot.slane %v2662_v40, 10  ;;  %v8154_v26 = vld [vmem:[#allocation7 + $0x2f8] sm:$0xff]  }
 0x3be   :  { %7454 = vmatprep.subr.bf16.mxu1 %v8132_v56  ;;  %7500 = vmatprep.subr.bf16.mxu0 %v8151_v55 }
 0x3bf   :  { %v2677_v44 = vsel %vm8684_vm11, %v6540_v43, %v2676_v35  ;;  %7501 = vmatpush3.bf16.msra.mxu0 %v8151_v55  ;;  %v6551_v55 = vld [vmem:[%s9331_s5 + $0x2] ss:$0 sm:$0xff] }
 0x3c0   :  { %v6542_v47 = vcombine.low %v2677_v44, %v2680_v33  ;;  %7502 = vmatprep.subr.bf16.mxu0 %v8152_v9 }
 0x3c1   :  { %7455 = vmatpush3.bf16.msra.mxu1 %v8132_v56  ;;  %v8153_v56 = vld [vmem:[#allocation7 + $0x2f0] sm:$0xff]  }
 0x3c2   :  { %7456 = vmatprep.subr.bf16.mxu1 %v8133_v57 }
 0x3c3   :  { %7503 = vmatpush3.bf16.msra.mxu0 %v8152_v9 }
 0x3c4   :  { %7504 = vmatprep.subr.bf16.mxu0 %v8153_v56 }
 0x3c5   :  { %7457 = vmatpush3.bf16.msra.mxu1 %v8133_v57  ;;  %v8922_v57 = vld [vmem:[#allocation7 + $0x280] sm:$0xff]  }
 0x3c6   :  { %7458 = vmatprep.subr.bf16.mxu1 %v8134_v59 }
 0x3c7   :  { %7505 = vmatpush3.bf16.msra.mxu0 %v8153_v56 }
 0x3c8   :  { %7506 = vmatprep.subr.bf16.mxu0 %v8154_v26 }
 0x3c9   :  { %7459 = vmatpush3.bf16.msra.mxu1 %v8134_v59 }
 0x3ca   :  { %7460 = vmatprep.subr.bf16.mxu1 %v8135_v52 }
 0x3cb   :  { %7507 = vmatpush3.bf16.msra.mxu0 %v8154_v26 }
 0x3cc   :  { %7512 = vmatprep.subr.bf16.mxu0 %v8922_v57 }
 0x3cd   :  { %7461 = vmatpush3.bf16.msra.mxu1 %v8135_v52 }
 0x3ce   :  { %7462 = vmatprep.subr.bf16.mxu1 %v8136_v24 }
 0x3d1   :  { %7463 = vmatpush3.bf16.msra.mxu1 %v8136_v24 }
 0x3d2   :  { %7464 = vmatprep.subr.bf16.mxu1 %v8137_v6 }
 0x3d5   :  { %7465 = vmatpush3.bf16.msra.mxu1 %v8137_v6 }
 0x3d6   :  { %7466 = vmatprep.subr.bf16.mxu1 %v8138_v11 }
 0x3d9   :  { %7467 = vmatpush3.bf16.msra.mxu1 %v8138_v11 }
 0x3da   :  { %7472 = vmatprep.subr.bf16.mxu1 %v8139_v63 }
 0x3dc   :  { %7469 = vmatmul.mubr.bf16.vlgmr.msra.gmra.mrb[4].mxu1 %v6530_v23 }
 0x3dd   :  { %7473 = vmatpush3.bf16.msra.mxu1 %v8139_v63  ;;  %7488 = vmatprep.mubr.bf16.mxu1 %v6541_v28 }
 0x3de   :  { %7474 = vmatprep.subr.bf16.mxu1 %v8140_v27 }
 0x3e1   :  { %7475 = vmatpush3.bf16.msra.mxu1 %v8140_v27 }
 0x3e2   :  { %7476 = vmatprep.subr.bf16.mxu1 %v8141_v16 }
 0x3e5   :  { %7477 = vmatpush3.bf16.msra.mxu1 %v8141_v16 }
 0x3e6   :  { %7478 = vmatprep.subr.bf16.mxu1 %v8142_v53 }
 0x3e9   :  { %7479 = vmatpush3.bf16.msra.mxu1 %v8142_v53 }
 0x3ea   :  { %7480 = vmatprep.subr.bf16.mxu1 %v8143_v29 }
 0x3ed   :  { %7481 = vmatpush3.bf16.msra.mxu1 %v8143_v29 }
 0x3ee   :  { %7482 = vmatprep.subr.bf16.mxu1 %v8144_v60 }
 0x3f1   :  { %7483 = vmatpush3.bf16.msra.mxu1 %v8144_v60 }
 0x3f2   :  { %7484 = vmatprep.subr.bf16.mxu1 %v8145_v30 }
 0x3f5   :  { %7485 = vmatpush3.bf16.msra.mxu1 %v8145_v30 }
 0x3f6   :  { %7486 = vmatprep.subr.bf16.mxu1 %v8146_v37 }
 0x3f9   :  { %7487 = vmatpush3.bf16.msra.mxu1 %v8146_v37 }
 0x3fc   :  { %7489 = vmatmul.mubr.bf16.vlgmr.msra.gmra.mrb[4].mxu1 %v6542_v47 }
 0x4cf   :  { %v7490_v59 = vpop.f32.mrb[4].mxu1 }
 0x4d0   :  { %v2788_v52 = vpop.f32.mrb[5].mxu1 }
 0x4d1   :  { %v7491_v61 = vpop.f32.mrb[6].mxu1 }
 0x4d2   :  { %v2816_v46 = vadd.f32 %v7491_v61, %v7490_v59  ;;  %v2791_v24 = vpop.f32.mrb[7].mxu1 }
 0x4d3   :  { %v2809_v62 = vadd.f32 %v2791_v24, %v2788_v52 }
 0x4d4   :  { %v2817_v18 = vrot.slane %v2816_v46, 4 }
 0x4d5   :  { %v2810_v54 = vrot.slane %v2809_v62, 4 }
 0x4d6   :  { %v2818_v2 = vadd.f32 %v2817_v18, %v2816_v46 }
 0x4d7   :  { %v2811_v3 = vadd.f32 %v2810_v54, %v2809_v62 }
 0x4d8   :  { %v2819_v6 = vrot.slane %v2818_v2, 2 }
 0x4d9   :  { %v2812_v7 = vrot.slane %v2811_v3, 2 }
 0x4da   :  { %v2820_v39 = vadd.f32 %v2819_v6, %v2818_v2 }
 0x4db   :  { %v2813_v31 = vadd.f32 %v2812_v7, %v2811_v3 }
 0x4dc   :  { %v2821_v36 = vrot.slane %v2820_v39, 1 }
 0x4dd   :  { %v2814_v11 = vrot.slane %v2813_v31, 1 }
 0x4de   :  { %v2822_v12 = vadd.f32 %v2821_v36, %v2820_v39 }
 0x4df   :  { %v2815_v14 = vadd.f32 %v2814_v11, %v2813_v31 }
 0x4e1   :  { %v2823_v15 = vadd.f32 %v2822_v12, %v2815_v14 }
 0x4e3   :  { %v2824_v8 = vmul.f32 0.03125, %v2823_v15 }
 0x4e5   :  { %v2825_v17 = vsub.f32 %v2788_v52, %v2824_v8  ;;  %v2826_v63 = vsub.f32 %v2791_v24, %v2824_v8  ;;  %v2827_v19 = vsub.f32 %v7490_v59, %v2824_v8  ;;  %v2828_v1 = vsub.f32 %v7491_v61, %v2824_v8 }
 0x4e7   :  { %v2829_v21 = vmul.f32 %v2825_v17, %v2825_v17  ;;  %v2830_v22 = vmul.f32 %v2826_v63, %v2826_v63  ;;  %v2831_v58 = vmul.f32 %v2827_v19, %v2827_v19  ;;  %v2832_v23 = vmul.f32 %v2828_v1, %v2828_v1 }
 0x4e9   :  { %v2833_v25 = vadd.f32 %v2830_v22, %v2829_v21  ;;  %v2840_v27 = vadd.f32 %v2832_v23, %v2831_v58 }
 0x4eb   :  { %v2834_v28 = vrot.slane %v2833_v25, 4  ;;  %v2841_v16 = vrot.slane %v2840_v27, 4 }
 0x4ed   :  { %v2835_v53 = vadd.f32 %v2834_v28, %v2833_v25  ;;  %v2842_v29 = vadd.f32 %v2841_v16, %v2840_v27 }
 0x4ef   :  { %v2836_v60 = vrot.slane %v2835_v53, 2  ;;  %v2843_v30 = vrot.slane %v2842_v29, 2 }
 0x4f1   :  { %v2837_v35 = vadd.f32 %v2836_v60, %v2835_v53  ;;  %v2844_v37 = vadd.f32 %v2843_v30, %v2842_v29 }
 0x4f3   :  { %v2838_v38 = vrot.slane %v2837_v35, 1  ;;  %v2845_v40 = vrot.slane %v2844_v37, 1 }
 0x4f5   :  { %v2839_v51 = vadd.f32 %v2838_v38, %v2837_v35  ;;  %v2846_v43 = vadd.f32 %v2845_v40, %v2844_v37 }
 0x4f7   :  { %v2847_v33 = vadd.f32 %v2846_v43, %v2839_v51 }
 0x4f9   :  { %v2848_v44 = vmul.f32 0.03125, %v2847_v33 }
 0x4fb   :  { %v2849_v47 = vadd.f32 1e-05, %v2848_v44 }
 0x4fd   :  { %8321 = vrsqrt.f32 %v2849_v47 }
 0x507   :  { %v8322_v48 = vpop.eup %8321 }
 0x508   :  { %v2851_v49 = vmul.f32 %v8322_v48, %v2807_v13 }
 0x50a   :  { %v2855_v50 = vrot.slane %v2851_v49, %v8726_v0 }
 0x50c   :  { %v2856_v9 = vmul.f32 %v2855_v50, %v2825_v17  ;;  %v2857_v56 = vmul.f32 %v2855_v50, %v2826_v63  ;;  %v2858_v26 = vmul.f32 %v2855_v50, %v2827_v19  ;;  %v2859_v59 = vmul.f32 %v2855_v50, %v2828_v1 }
 0x50e   :  { %v2864_v52 = vadd.f32 %v6551_v55, %v2856_v9  ;;  %v2865_v61 = vadd.f32 %v6551_v55, %v2857_v56  ;;  %v2866_v46 = vadd.f32 %v6551_v55, %v2858_v26  ;;  %v2867_v24 = vadd.f32 %v6551_v55, %v2859_v59 }
 0x510   :  { %v2868_v62 = vmax.f32 %v2864_v52, 0.0  ;;  %v2869_v18 = vmax.f32 %v2865_v61, 0.0  ;;  %v2870_v54 = vmax.f32 %v2866_v46, 0.0  ;;  %v2871_v2 = vmax.f32 %v2867_v24, 0.0 }
 0x512   :  { %v6796_v3 = vpack.c.bf16 %v2868_v62, %v2868_v62  ;;  %v6797_v6 = vpack.c.bf16 %v2869_v18, %v2869_v18  ;;  %v6798_v7 = vpack.c.bf16 %v2870_v54, %v2870_v54  ;;  %v6799_v39 = vpack.c.bf16 %v2871_v2, %v2871_v2 }
 0x514   :  { %v2884_v31 = vrot.slane %v6796_v3, 7  ;;  %v2886_v36 = vrot.slane %v6797_v6, 7  ;;  %v2889_v11 = vrot.slane %v6798_v7, 7  ;;  %v2891_v12 = vrot.slane %v6799_v39, 7  ;;  %v8157_v6 = vld [vmem:[#allocation7 + $0x288] sm:$0xff]  }
 0x516   :  { %v2885_v14 = vrot.slane %v2884_v31, 4  ;;  %v2888_v15 = vrot.slane %v2886_v36, 4  ;;  %v2890_v8 = vrot.slane %v2889_v11, 4  ;;  %v2893_v17 = vrot.slane %v2891_v12, 4  ;;  %2903 = vst [vmem:[#allocation2 + $0xc] sm:$0xe] %v2889_v11 }
 0x517   :  { %2900 = vst [vmem:[#allocation2] sm:$0xe] %v2884_v31 }
 0x518   :  { %v2887_v63 = vsel %vm8744_vm14, %v2885_v14, %v2886_v36  ;;  %v2892_v19 = vsel %vm8744_vm14, %v2890_v8, %v2891_v12  ;;  %2902 = vst [vmem:[#allocation2 + $0x8] sm:$0x1] %v2888_v15  ;;  %2905 = vst [vmem:[#allocation2 + $0x14] sm:$0x1] %v2893_v17  ;;  %v8158_v14 = vld [vmem:[#allocation7 + $0x290] sm:$0xff]   ;;  %v8159_v8 = vld [vmem:[#allocation7 + $0x298] sm:$0xff]  }
 0x519   :  { %2901 = vst [vmem:[#allocation2 + $0x4] sm:$0xf] %v2887_v63  ;;  %2904 = vst [vmem:[#allocation2 + $0x10] sm:$0xf] %v2892_v19  ;;  %v8160_v17 = vld [vmem:[#allocation7 + $0x2a0] sm:$0xff]   ;;  %v8161_v63 = vld [vmem:[#allocation7 + $0x2a8] sm:$0xff]  }
 0x51d   :  { %v8936_v21 = vld [vmem:[#allocation2 + $0xc] sm:$0xf] }
 0x51e   :  { %v2906_v1 = vld [vmem:[#allocation2] sm:$0xf]  ;;  %v2954_v23 = vshrl.u32 %v8936_v21, 16  ;;  %v2957_v25 = vshll.u32 %v8936_v21, 16 }
 0x51f   :  { %v2930_v22 = vshrl.u32 %v2906_v1, 16  ;;  %v2933_v58 = vshll.u32 %v2906_v1, 16  ;;  %v8940_v27 = vld [vmem:[#allocation2 + $0x8] sm:$0x1]  ;;  %v8942_v28 = vld [vmem:[#allocation2 + $0x14] sm:$0x1] }
 0x520   :  { %v8944_v16 = vld [vmem:[#allocation2 + $0x4] sm:$0xf]  ;;  %v2956_v60 = vrot.slane %v2954_v23, 4  ;;  %v8948_v37 = vld [vmem:[#allocation2 + $0x10] sm:$0xf]  ;;  %v2959_v38 = vrot.slane %v2957_v25, 5 }
 0x521   :  { %v2932_v53 = vrot.slane %v2930_v22, 4  ;;  %v2935_v29 = vrot.slane %v2933_v58, 5  ;;  %v2939_v30 = vshll.u32 %v8944_v16, 16  ;;  %v2943_v35 = vshrl.u32 %v8944_v16, 16  ;;  %v3208_v58 = vld [vmem:[#allocation2] sm:$0xe] }
 0x522   :  { %v2963_v51 = vshll.u32 %v8948_v37, 16  ;;  %v2967_v43 = vshrl.u32 %v8948_v37, 16  ;;  %v2949_v47 = vshll.u32 %v8940_v27, 16  ;;  %v2960_v13 = vor.u32 %v2959_v38, %v2956_v60  ;;  %v8165_v23 = vld [vmem:[#allocation7 + $0x300] sm:$0xff]  }
 0x523   :  { %v2936_v40 = vor.u32 %v2935_v29, %v2932_v53  ;;  %v2941_v33 = vrot.slane %v2939_v30, 5  ;;  %v2945_v44 = vrot.slane %v2943_v35, 4  ;;  %v2973_v50 = vshll.u32 %v8942_v28, 16 }
 0x524   :  { %v2965_v48 = vrot.slane %v2963_v51, 5  ;;  %v2969_v49 = vrot.slane %v2967_v43, 4  ;;  %v2961_v56 = vrot.slane %v2960_v13, 4  ;;  %v2951_v52 = vrot.slane %v2949_v47, 5  ;;  %v8171_v47 = vld [vmem:[#allocation7 + $0x330] sm:$0xff]  }
 0x525   :  { %v2937_v55 = vrot.slane %v2936_v40, 4  ;;  %v2946_v9 = vor.u32 %v2945_v44, %v2941_v33  ;;  %v2975_v46 = vrot.slane %v2973_v50, 5  ;;  %v6566_v7 = vcombine.low %v2906_v1, %v8944_v16  ;;  %v8163_v1 = vld [vmem:[#allocation7 + $0x2b8] sm:$0xff]   ;;  %v8167_v40 = vld [vmem:[#allocation7 + $0x310] sm:$0xff]  }
 0x526   :  { %v2970_v26 = vor.u32 %v2969_v49, %v2965_v48  ;;  %v2966_v54 = vsel %vm8621_vm7, %v2961_v56, %v2965_v48  ;;  %v3365_v39 = vrot.slane %v2943_v35, 5  ;;  %v3366_v31 = vrot.slane %v2939_v30, 6  ;;  %v8166_v35 = vld [vmem:[#allocation7 + $0x308] sm:$0xff]   ;;  %v8976_v44 = vld [vmem:[#allocation2 + $0x8] sm:$0x3] }
 0x527   :  { %v2947_v59 = vrot.slane %v2946_v9, 4  ;;  %v2942_v24 = vsel %vm8621_vm7, %v2937_v55, %v2941_v33  ;;  %v3388_v36 = vrot.slane %v2967_v43, 5  ;;  %v3389_v12 = vrot.slane %v2963_v51, 6  ;;  %v8169_v51 = vld [vmem:[#allocation7 + $0x320] sm:$0xff]   ;;  %v8172_v9 = vld [vmem:[#allocation7 + $0x338] sm:$0xff]  }
 0x528   :  { %v2971_v61 = vrot.slane %v2970_v26, 4  ;;  %v8964_v11 = vor.u32 %v3366_v31, %v3365_v39  ;;  %v3216_v19 = vrot.slane %v8944_v16, 5  ;;  %v3219_v25 = vrot.slane %v8940_v27, 5  ;;  %v8168_v27 = vld [vmem:[#allocation7 + $0x318] sm:$0xff]   ;;  %v8174_v31 = vld [vmem:[#allocation7 + $0x348] sm:$0xff]  }
 0x529   :  { %v2952_v62 = vsel %vm8621_vm7, %v2947_v59, %v2951_v52  ;;  %v8966_v15 = vor.u32 %v3389_v12, %v3388_v36  ;;  %v6576_v53 = vrot.slane %v3208_v58, 9  ;;  %v6567_v60 = vcombine.low %v8936_v21, %v8948_v37  ;;  %v8170_v21 = vld [vmem:[#allocation7 + $0x328] sm:$0xff]   ;;  %v8175_v12 = vld [vmem:[#allocation7 + $0x350] sm:$0xff]  }
 0x52a   :  { %v6556_v18 = vcombine.low %v2942_v24, %v2952_v62  ;;  %v2976_v2 = vsel %vm8621_vm7, %v2971_v61, %v2975_v46  ;;  %v3218_v22 = vrot.slane %v3216_v19, 4  ;;  %v3357_v43 = vshrl.u32 %v3208_v58, 16  ;;  %v3209_v61 = vld [vmem:[#allocation2 + $0xc] sm:$0xe]  ;;  %v8173_v62 = vld [vmem:[#allocation7 + $0x340] sm:$0xff]  }
 0x52b   :  { %v6557_v3 = vcombine.low %v2966_v54, %v2976_v2  ;;  %v3217_v30 = vsel %vm8531_vm2, %v6576_v53, %v3216_v19  ;;  %v3360_v33 = vshll.u32 %v3208_v58, 16  ;;  %v3371_v49 = vshrl.u32 %v8976_v44, 16  ;;  %v8992_v19 = vld [vmem:[#allocation2 + $0x14] sm:$0x3] }
 0x52c   :  { %7508 = vmatprep.mubr.bf16.mxu0 %v6556_v18  ;;  %v3220_v29 = vsel %vm8531_vm2, %v3218_v22, %v3219_v25  ;;  %v3359_v13 = vrot.slane %v3357_v43, 5  ;;  %v3374_v50 = vshll.u32 %v8976_v44, 16  ;;  %v3223_v55 = vrot.slane %v8948_v37, 5 }
 0x52d   :  { %7509 = vmatmul.mubr.bf16.vlgmr.msra.gmra.mrb[12].mxu0 %v6557_v3  ;;  %v6578_v38 = vcombine.low %v3217_v30, %v3220_v29  ;;  %v3362_v48 = vrot.slane %v3360_v33, 6  ;;  %v3373_v26 = vrot.slane %v3371_v49, 5  ;;  %v3369_v46 = vrot.slane %v8964_v11, 4  ;;  %v8180_v30 = vld [vmem:[#allocation7 + $0x378] sm:$0xff]  }
 0x52e   :  { %7513 = vmatpush3.bf16.msra.mxu0 %v8922_v57  ;;  %7528 = vmatprep.mubr.bf16.mxu0 %v6566_v7  ;;  %v8162_v57 = vld [vmem:[#allocation7 + $0x2b0] sm:$0xff]   ;;  %v3376_v59 = vrot.slane %v3374_v50, 6  ;;  %v3225_v52 = vrot.slane %v3223_v55, 4  ;;  %v3226_v24 = vrot.slane %v8942_v28, 5  ;;  %v6577_v2 = vrot.slane %v3209_v61, 9  ;;  %v8182_v50 = vld [vmem:[#allocation7 + $0x388] sm:$0xff]  }
 0x52f   :  { %7514 = vmatprep.subr.bf16.mxu0 %v8157_v6  ;;  %v3363_v56 = vor.u32 %v3362_v48, %v3359_v13  ;;  %v3394_v22 = vshrl.u32 %v8992_v19, 16  ;;  %v3397_v58 = vshll.u32 %v8992_v19, 16  ;;  %v3536_v25 = vrot.slane %v8944_v16, 6 }
 0x530   :  { %v3377_v54 = vor.u32 %v3376_v59, %v3373_v26  ;;  %v3227_v3 = vsel %vm8531_vm2, %v3225_v52, %v3226_v24  ;;  %v3224_v7 = vsel %vm8531_vm2, %v6577_v2, %v3223_v55  ;;  %v3539_v43 = vrot.slane %v8976_v44, 6  ;;  %v8183_v44 = vld [vmem:[#allocation7 + $0x390] sm:$0xff]   ;;  %v8188_v52 = vld [vmem:[#allocation7 + $0x3b8] sm:$0xff]  }
 0x531   :  { %v3364_v18 = vrot.slane %v3363_v56, 4  ;;  %v6579_v39 = vcombine.low %v3224_v7, %v3227_v3  ;;  %v3396_v29 = vrot.slane %v3394_v22, 5  ;;  %v8185_v56 = vld [vmem:[#allocation7 + $0x3a0] sm:$0xff]   ;;  %v8187_v26 = vld [vmem:[#allocation7 + $0x3b0] sm:$0xff]   ;;  %v3543_v59 = vrot.slane %v8948_v37, 6  ;;  %v8190_v3 = vld [vmem:[#allocation7 + $0x408] sm:$0xff]  }
 0x532   :  { %7515 = vmatpush3.bf16.msra.mxu0 %v8157_v6  ;;  %v3378_v6 = vsel %vm8648_vm8, %v3369_v46, %v3377_v54  ;;  %v3529_v46 = vld [vmem:[#allocation2 + $0xc] sm:$0xc]  ;;  %v3546_v24 = vrot.slane %v8992_v19, 6  ;;  %v8189_v37 = vld [vmem:[#allocation7 + $0x400] sm:$0xff]   ;;  %v8192_v7 = vld [vmem:[#allocation7 + $0x418] sm:$0xff]  }
 0x533   :  { %7516 = vmatprep.subr.bf16.mxu0 %v8158_v14  ;;  %v3368_v28 = vsel %vm8648_vm8, %v3364_v18, %v8964_v11  ;;  %7592 = vmatprep.subr.bf16.mxu1 %v8189_v37 }
 0x534   :  { %v6588_v36 = vcombine.low %v3368_v28, %v3378_v6  ;;  %7593 = vmatpush3.bf16.msra.mxu1 %v8189_v37  ;;  %v8191_v6 = vld [vmem:[#allocation7 + $0x410] sm:$0xff]   ;;  %v8194_v28 = vld [vmem:[#allocation7 + $0x428] sm:$0xff]  }
 0x535   :  { %7594 = vmatprep.subr.bf16.mxu1 %v8190_v3  ;;  %v3674_v37 = vld [vmem:[%s9330_s4 + $0x3] sm:$0x1] }
 0x536   :  { %7517 = vmatpush3.bf16.msra.mxu0 %v8158_v14  ;;  %v8176_v14 = vld [vmem:[#allocation7 + $0x358] sm:$0xff]  }
 0x537   :  { %7518 = vmatprep.subr.bf16.mxu0 %v8159_v8 }
 0x538   :  { %7595 = vmatpush3.bf16.msra.mxu1 %v8190_v3 }
 0x539   :  { %7596 = vmatprep.subr.bf16.mxu1 %v8191_v6 }
 0x53a   :  { %7519 = vmatpush3.bf16.msra.mxu0 %v8159_v8  ;;  %v8177_v8 = vld [vmem:[#allocation7 + $0x360] sm:$0xff]  }
 0x53b   :  { %7520 = vmatprep.subr.bf16.mxu0 %v8160_v17 }
 0x53c   :  { %7597 = vmatpush3.bf16.msra.mxu1 %v8191_v6 }
 0x53d   :  { %7598 = vmatprep.subr.bf16.mxu1 %v8192_v7 }
 0x53e   :  { %7521 = vmatpush3.bf16.msra.mxu0 %v8160_v17  ;;  %v3380_v17 = vshrl.u32 %v3209_v61, 16 }
 0x53f   :  { %7522 = vmatprep.subr.bf16.mxu0 %v8161_v63 }
 0x540   :  { %v3382_v11 = vrot.slane %v3380_v17, 5  ;;  %7599 = vmatpush3.bf16.msra.mxu1 %v8192_v7 }
 0x542   :  { %7523 = vmatpush3.bf16.msra.mxu0 %v8161_v63  ;;  %v3383_v63 = vshll.u32 %v3209_v61, 16  ;;  %v3545_v61 = vrot.slane %v3543_v59, 4 }
 0x543   :  { %7524 = vmatprep.subr.bf16.mxu0 %v8162_v57 }
 0x544   :  { %v3547_v18 = vsel %vm8684_vm11, %v3545_v61, %v3546_v24 }
 0x546   :  { %7525 = vmatpush3.bf16.msra.mxu0 %v8162_v57  ;;  %v8178_v57 = vld [vmem:[#allocation7 + $0x368] sm:$0xff]  }
 0x547   :  { %7526 = vmatprep.subr.bf16.mxu0 %v8163_v1 }
 0x54a   :  { %7527 = vmatpush3.bf16.msra.mxu0 %v8163_v1  ;;  %v3385_v1 = vrot.slane %v3383_v63, 6 }
 0x54b   :  { %7532 = vmatprep.subr.bf16.mxu0 %v8165_v23 }
 0x54c   :  { %v3386_v53 = vor.u32 %v3385_v1, %v3382_v11 }
 0x54d   :  { %7529 = vmatmul.mubr.bf16.vlgmr.msra.gmra.mrb[12].mxu0 %v6567_v60  ;;  %v3399_v60 = vrot.slane %v3397_v58, 6 }
 0x54e   :  { %7533 = vmatpush3.bf16.msra.mxu0 %v8165_v23  ;;  %7548 = vmatprep.mubr.bf16.mxu0 %v6578_v38  ;;  %v8179_v23 = vld [vmem:[#allocation7 + $0x370] sm:$0xff]   ;;  %v3538_v38 = vrot.slane %v3536_v25, 4 }
 0x54f   :  { %7534 = vmatprep.subr.bf16.mxu0 %v8166_v35 }
 0x552   :  { %7535 = vmatpush3.bf16.msra.mxu0 %v8166_v35  ;;  %v3392_v35 = vrot.slane %v8966_v15, 4 }
 0x553   :  { %7536 = vmatprep.subr.bf16.mxu0 %v8167_v40 }
 0x556   :  { %7537 = vmatpush3.bf16.msra.mxu0 %v8167_v40  ;;  %v3387_v40 = vrot.slane %v3386_v53, 4 }
 0x557   :  { %7538 = vmatprep.subr.bf16.mxu0 %v8168_v27 }
 0x558   :  { %v3391_v13 = vsel %vm8648_vm8, %v3387_v40, %v8966_v15  ;;  %v8186_v15 = vld [vmem:[#allocation7 + $0x3a8] sm:$0xff]  }
 0x55a   :  { %7539 = vmatpush3.bf16.msra.mxu0 %v8168_v27  ;;  %v3400_v27 = vor.u32 %v3399_v60, %v3396_v29 }
 0x55b   :  { %7540 = vmatprep.subr.bf16.mxu0 %v8169_v51 }
 0x55c   :  { %v3401_v16 = vsel %vm8648_vm8, %v3392_v35, %v3400_v27 }
 0x55d   :  { %v6589_v48 = vcombine.low %v3391_v13, %v3401_v16 }
 0x55e   :  { %7541 = vmatpush3.bf16.msra.mxu0 %v8169_v51  ;;  %v3528_v51 = vld [vmem:[#allocation2] sm:$0xc] }
 0x55f   :  { %7542 = vmatprep.subr.bf16.mxu0 %v8170_v21  ;;  %v6598_v33 = vrot.slane %v3528_v51, 10 }
 0x561   :  { %v3537_v49 = vsel %vm8684_vm11, %v6598_v33, %v3536_v25 }
 0x562   :  { %7543 = vmatpush3.bf16.msra.mxu0 %v8170_v21  ;;  %v8181_v21 = vld [vmem:[#allocation7 + $0x380] sm:$0xff]  }
 0x563   :  { %7544 = vmatprep.subr.bf16.mxu0 %v8171_v47 }
 0x566   :  { %7545 = vmatpush3.bf16.msra.mxu0 %v8171_v47  ;;  %v3540_v47 = vsel %vm8684_vm11, %v3538_v38, %v3539_v43 }
 0x567   :  { %7546 = vmatprep.subr.bf16.mxu0 %v8172_v9  ;;  %v6600_v55 = vcombine.low %v3537_v49, %v3540_v47 }
 0x56a   :  { %7547 = vmatpush3.bf16.msra.mxu0 %v8172_v9  ;;  %v8184_v9 = vld [vmem:[#allocation7 + $0x398] sm:$0xff]  }
 0x56b   :  { %7552 = vmatprep.subr.bf16.mxu0 %v8173_v62 }
 0x56d   :  { %7549 = vmatmul.mubr.bf16.vlgmr.msra.gmra.mrb[12].mxu0 %v6579_v39  ;;  %v8193_v39 = vld [vmem:[#allocation7 + $0x420] sm:$0xff]  }
 0x56e   :  { %7553 = vmatpush3.bf16.msra.mxu0 %v8173_v62  ;;  %7568 = vmatprep.mubr.bf16.mxu0 %v6588_v36  ;;  %v6599_v62 = vrot.slane %v3529_v46, 10  ;;  %v8196_v36 = vld [vmem:[#allocation7 + $0x438] sm:$0xff]  }
 0x56f   :  { %7554 = vmatprep.subr.bf16.mxu0 %v8174_v31  ;;  %7600 = vmatprep.subr.bf16.mxu1 %v8193_v39 }
 0x570   :  { %v3544_v54 = vsel %vm8684_vm11, %v6599_v62, %v3543_v59  ;;  %7601 = vmatpush3.bf16.msra.mxu1 %v8193_v39  ;;  %v6610_v39 = vld [vmem:[%s9331_s5 + $0x3] ss:$0 sm:$0xff] }
 0x571   :  { %v6601_v2 = vcombine.low %v3544_v54, %v3547_v18  ;;  %7602 = vmatprep.subr.bf16.mxu1 %v8194_v28 }
 0x572   :  { %7555 = vmatpush3.bf16.msra.mxu0 %v8174_v31  ;;  %v8195_v31 = vld [vmem:[#allocation7 + $0x430] sm:$0xff]  }
 0x573   :  { %7556 = vmatprep.subr.bf16.mxu0 %v8175_v12 }
 0x574   :  { %7603 = vmatpush3.bf16.msra.mxu1 %v8194_v28 }
 0x575   :  { %7604 = vmatprep.subr.bf16.mxu1 %v8195_v31 }
 0x576   :  { %7557 = vmatpush3.bf16.msra.mxu0 %v8175_v12  ;;  %v9014_v12 = vld [vmem:[#allocation7 + $0x3c0] sm:$0xff]  }
 0x577   :  { %7558 = vmatprep.subr.bf16.mxu0 %v8176_v14 }
 0x578   :  { %7605 = vmatpush3.bf16.msra.mxu1 %v8195_v31 }
 0x579   :  { %7606 = vmatprep.subr.bf16.mxu1 %v8196_v36 }
 0x57a   :  { %7559 = vmatpush3.bf16.msra.mxu0 %v8176_v14 }
 0x57b   :  { %7560 = vmatprep.subr.bf16.mxu0 %v8177_v8 }
 0x57c   :  { %7607 = vmatpush3.bf16.msra.mxu1 %v8196_v36 }
 0x57d   :  { %7612 = vmatprep.subr.bf16.mxu1 %v9014_v12 }
 0x57e   :  { %7561 = vmatpush3.bf16.msra.mxu0 %v8177_v8 }
 0x57f   :  { %7562 = vmatprep.subr.bf16.mxu0 %v8178_v57 }
 0x582   :  { %7563 = vmatpush3.bf16.msra.mxu0 %v8178_v57 }
 0x583   :  { %7564 = vmatprep.subr.bf16.mxu0 %v8179_v23 }
 0x586   :  { %7565 = vmatpush3.bf16.msra.mxu0 %v8179_v23 }
 0x587   :  { %7566 = vmatprep.subr.bf16.mxu0 %v8180_v30 }
 0x58a   :  { %7567 = vmatpush3.bf16.msra.mxu0 %v8180_v30 }
 0x58b   :  { %7572 = vmatprep.subr.bf16.mxu0 %v8181_v21 }
 0x58d   :  { %7569 = vmatmul.mubr.bf16.vlgmr.msra.gmra.mrb[12].mxu0 %v6589_v48 }
 0x58e   :  { %7573 = vmatpush3.bf16.msra.mxu0 %v8181_v21  ;;  %7588 = vmatprep.mubr.bf16.mxu0 %v6600_v55 }
 0x58f   :  { %7574 = vmatprep.subr.bf16.mxu0 %v8182_v50 }
 0x592   :  { %7575 = vmatpush3.bf16.msra.mxu0 %v8182_v50 }
 0x593   :  { %7576 = vmatprep.subr.bf16.mxu0 %v8183_v44 }
 0x596   :  { %7577 = vmatpush3.bf16.msra.mxu0 %v8183_v44 }
 0x597   :  { %7578 = vmatprep.subr.bf16.mxu0 %v8184_v9 }
 0x59a   :  { %7579 = vmatpush3.bf16.msra.mxu0 %v8184_v9 }
 0x59b   :  { %7580 = vmatprep.subr.bf16.mxu0 %v8185_v56 }
 0x59e   :  { %7581 = vmatpush3.bf16.msra.mxu0 %v8185_v56 }
 0x59f   :  { %7582 = vmatprep.subr.bf16.mxu0 %v8186_v15 }
 0x5a2   :  { %7583 = vmatpush3.bf16.msra.mxu0 %v8186_v15 }
 0x5a3   :  { %7584 = vmatprep.subr.bf16.mxu0 %v8187_v26 }
 0x5a6   :  { %7585 = vmatpush3.bf16.msra.mxu0 %v8187_v26 }
 0x5a7   :  { %7586 = vmatprep.subr.bf16.mxu0 %v8188_v52 }
 0x5aa   :  { %7587 = vmatpush3.bf16.msra.mxu0 %v8188_v52 }
 0x5ad   :  { %7589 = vmatmul.mubr.bf16.vlgmr.msra.gmra.mrb[12].mxu0 %v6601_v2 }
 0x680   :  { %v7590_v14 = vpop.f32.mrb[12].mxu0 }
 0x681   :  { %v3655_v8 = vpop.f32.mrb[13].mxu0 }
 0x682   :  { %v7591_v17 = vpop.f32.mrb[14].mxu0 }
 0x683   :  { %v3683_v63 = vadd.f32 %v7591_v17, %v7590_v14  ;;  %v3658_v57 = vpop.f32.mrb[15].mxu0 }
 0x684   :  { %v3676_v19 = vadd.f32 %v3658_v57, %v3655_v8 }
 0x685   :  { %v3684_v11 = vrot.slane %v3683_v63, 4 }
 0x686   :  { %v3677_v1 = vrot.slane %v3676_v19, 4 }
 0x687   :  { %v3685_v22 = vadd.f32 %v3684_v11, %v3683_v63 }
 0x688   :  { %v3678_v58 = vadd.f32 %v3677_v1, %v3676_v19 }
 0x689   :  { %v3686_v23 = vrot.slane %v3685_v22, 2 }
 0x68a   :  { %v3679_v25 = vrot.slane %v3678_v58, 2 }
 0x68b   :  { %v3687_v53 = vadd.f32 %v3686_v23, %v3685_v22 }
 0x68c   :  { %v3680_v29 = vadd.f32 %v3679_v25, %v3678_v58 }
 0x68d   :  { %v3688_v60 = vrot.slane %v3687_v53, 1 }
 0x68e   :  { %v3681_v30 = vrot.slane %v3680_v29, 1 }
 0x68f   :  { %v3689_v35 = vadd.f32 %v3688_v60, %v3687_v53 }
 0x690   :  { %v3682_v38 = vadd.f32 %v3681_v30, %v3680_v29 }
 0x692   :  { %v3690_v40 = vadd.f32 %v3689_v35, %v3682_v38 }
 0x694   :  { %v3691_v27 = vmul.f32 0.03125, %v3690_v40 }
 0x696   :  { %v3692_v51 = vsub.f32 %v3655_v8, %v3691_v27  ;;  %v3693_v21 = vsub.f32 %v3658_v57, %v3691_v27  ;;  %v3694_v43 = vsub.f32 %v7590_v14, %v3691_v27  ;;  %v3695_v16 = vsub.f32 %v7591_v17, %v3691_v27 }
 0x698   :  { %v3696_v33 = vmul.f32 %v3692_v51, %v3692_v51  ;;  %v3697_v47 = vmul.f32 %v3693_v21, %v3693_v21  ;;  %v3698_v13 = vmul.f32 %v3694_v43, %v3694_v43  ;;  %v3699_v48 = vmul.f32 %v3695_v16, %v3695_v16 }
 0x69a   :  { %v3700_v49 = vadd.f32 %v3697_v47, %v3696_v33  ;;  %v3707_v50 = vadd.f32 %v3699_v48, %v3698_v13 }
 0x69c   :  { %v3701_v55 = vrot.slane %v3700_v49, 4  ;;  %v3708_v44 = vrot.slane %v3707_v50, 4 }
 0x69e   :  { %v3702_v9 = vadd.f32 %v3701_v55, %v3700_v49  ;;  %v3709_v56 = vadd.f32 %v3708_v44, %v3707_v50 }
 0x6a0   :  { %v3703_v15 = vrot.slane %v3702_v9, 2  ;;  %v3710_v26 = vrot.slane %v3709_v56, 2 }
 0x6a2   :  { %v3704_v59 = vadd.f32 %v3703_v15, %v3702_v9  ;;  %v3711_v52 = vadd.f32 %v3710_v26, %v3709_v56 }
 0x6a4   :  { %v3705_v61 = vrot.slane %v3704_v59, 1  ;;  %v3712_v46 = vrot.slane %v3711_v52, 1 }
 0x6a6   :  { %v3706_v24 = vadd.f32 %v3705_v61, %v3704_v59  ;;  %v3713_v62 = vadd.f32 %v3712_v46, %v3711_v52 }
 0x6a8   :  { %v3714_v18 = vadd.f32 %v3713_v62, %v3706_v24 }
 0x6aa   :  { %v3715_v54 = vmul.f32 0.03125, %v3714_v18 }
 0x6ac   :  { %v3716_v2 = vadd.f32 1e-05, %v3715_v54 }
 0x6ae   :  { %8323 = vrsqrt.f32 %v3716_v2 }
 0x6b8   :  { %v8324_v3 = vpop.eup %8323 }
 0x6b9   :  { %v3718_v6 = vmul.f32 %v8324_v3, %v3674_v37 }
 0x6bb   :  { %v3722_v7 = vrot.slane %v3718_v6, %v8726_v0 }
 0x6bd   :  { %v3723_v28 = vmul.f32 %v3722_v7, %v3692_v51  ;;  %v3724_v31 = vmul.f32 %v3722_v7, %v3693_v21  ;;  %v3725_v36 = vmul.f32 %v3722_v7, %v3694_v43  ;;  %v3726_v14 = vmul.f32 %v3722_v7, %v3695_v16 }
 0x6bf   :  { %v3731_v8 = vadd.f32 %v6610_v39, %v3723_v28  ;;  %v3732_v17 = vadd.f32 %v6610_v39, %v3724_v31  ;;  %v3733_v63 = vadd.f32 %v6610_v39, %v3725_v36  ;;  %v3734_v57 = vadd.f32 %v6610_v39, %v3726_v14 }
 0x6c1   :  { %v3735_v19 = vmax.f32 %v3731_v8, 0.0  ;;  %v3736_v11 = vmax.f32 %v3732_v17, 0.0  ;;  %v3737_v1 = vmax.f32 %v3733_v63, 0.0  ;;  %v3738_v22 = vmax.f32 %v3734_v57, 0.0 }
 0x6c3   :  { %v6800_v58 = vpack.c.bf16 %v3735_v19, %v3735_v19  ;;  %v6801_v23 = vpack.c.bf16 %v3736_v11, %v3736_v11  ;;  %v6802_v25 = vpack.c.bf16 %v3737_v1, %v3737_v1  ;;  %v6803_v53 = vpack.c.bf16 %v3738_v22, %v3738_v22 }
 0x6c5   :  { %v3751_v29 = vrot.slane %v6800_v58, 7  ;;  %v3753_v60 = vrot.slane %v6801_v23, 7  ;;  %v3756_v30 = vrot.slane %v6802_v25, 7  ;;  %v3758_v35 = vrot.slane %v6803_v53, 7  ;;  %v8199_v23 = vld [vmem:[#allocation7 + $0x3c8] sm:$0xff]  }
 0x6c7   :  { %v3752_v38 = vrot.slane %v3751_v29, 4  ;;  %v3755_v40 = vrot.slane %v3753_v60, 4  ;;  %v3757_v27 = vrot.slane %v3756_v30, 4  ;;  %v3760_v51 = vrot.slane %v3758_v35, 4  ;;  %3767 = vst [vmem:[#allocation2] sm:$0xe] %v3751_v29 }
 0x6c8   :  { %3770 = vst [vmem:[#allocation2 + $0xc] sm:$0xe] %v3756_v30 }
 0x6c9   :  { %v3754_v21 = vsel %vm8744_vm14, %v3752_v38, %v3753_v60  ;;  %v3759_v43 = vsel %vm8744_vm14, %v3757_v27, %v3758_v35  ;;  %3769 = vst [vmem:[#allocation2 + $0x8] sm:$0x1] %v3755_v40  ;;  %3772 = vst [vmem:[#allocation2 + $0x14] sm:$0x1] %v3760_v51  ;;  %v8200_v38 = vld [vmem:[#allocation7 + $0x3d0] sm:$0xff]   ;;  %v8201_v27 = vld [vmem:[#allocation7 + $0x3d8] sm:$0xff]  }
 0x6ca   :  { %3768 = vst [vmem:[#allocation2 + $0x4] sm:$0xf] %v3754_v21  ;;  %3771 = vst [vmem:[#allocation2 + $0x10] sm:$0xf] %v3759_v43  ;;  %v8202_v51 = vld [vmem:[#allocation7 + $0x3e0] sm:$0xff]   ;;  %v8203_v21 = vld [vmem:[#allocation7 + $0x3e8] sm:$0xff]  }
 0x6ce   :  { %v3773_v16 = vld [vmem:[#allocation2] sm:$0xf] }
 0x6cf   :  { %v9028_v33 = vld [vmem:[#allocation2 + $0xc] sm:$0xf]  ;;  %v3797_v47 = vshrl.u32 %v3773_v16, 16  ;;  %v3800_v13 = vshll.u32 %v3773_v16, 16 }
 0x6d0   :  { %v3821_v48 = vshrl.u32 %v9028_v33, 16  ;;  %v3824_v49 = vshll.u32 %v9028_v33, 16  ;;  %v9032_v50 = vld [vmem:[#allocation2 + $0x8] sm:$0x1]  ;;  %v9034_v55 = vld [vmem:[#allocation2 + $0x14] sm:$0x1] }
 0x6d1   :  { %v9036_v44 = vld [vmem:[#allocation2 + $0x4] sm:$0xf]  ;;  %v3799_v9 = vrot.slane %v3797_v47, 4  ;;  %v3802_v56 = vrot.slane %v3800_v13, 5  ;;  %v9040_v52 = vld [vmem:[#allocation2 + $0x10] sm:$0xf] }
 0x6d2   :  { %v3823_v15 = vrot.slane %v3821_v48, 4  ;;  %v3806_v26 = vshll.u32 %v9036_v44, 16  ;;  %v3810_v59 = vshrl.u32 %v9036_v44, 16  ;;  %v3826_v61 = vrot.slane %v3824_v49, 5  ;;  %v4075_v13 = vld [vmem:[#allocation2] sm:$0xe] }
 0x6d3   :  { %v3803_v46 = vor.u32 %v3802_v56, %v3799_v9  ;;  %v3830_v24 = vshll.u32 %v9040_v52, 16  ;;  %v3834_v62 = vshrl.u32 %v9040_v52, 16  ;;  %v3816_v2 = vshll.u32 %v9032_v50, 16  ;;  %v8207_v48 = vld [vmem:[#allocation7 + $0x440] sm:$0xff]  }
 0x6d4   :  { %v3808_v18 = vrot.slane %v3806_v26, 5  ;;  %v3812_v54 = vrot.slane %v3810_v59, 4  ;;  %v3827_v37 = vor.u32 %v3826_v61, %v3823_v15  ;;  %v3840_v7 = vshll.u32 %v9034_v55, 16 }
 0x6d5   :  { %v3832_v3 = vrot.slane %v3830_v24, 5  ;;  %v3836_v6 = vrot.slane %v3834_v62, 4  ;;  %v3804_v39 = vrot.slane %v3803_v46, 4  ;;  %v3818_v8 = vrot.slane %v3816_v2, 5  ;;  %v8209_v46 = vld [vmem:[#allocation7 + $0x450] sm:$0xff]  }
 0x6d6   :  { %v3813_v28 = vor.u32 %v3812_v54, %v3808_v18  ;;  %v3828_v31 = vrot.slane %v3827_v37, 4  ;;  %v3842_v63 = vrot.slane %v3840_v7, 5  ;;  %v6625_v25 = vcombine.low %v3773_v16, %v9036_v44  ;;  %v8205_v16 = vld [vmem:[#allocation7 + $0x3f8] sm:$0xff]   ;;  %v9068_v54 = vld [vmem:[#allocation2 + $0x8] sm:$0x3] }
 0x6d7   :  { %v3837_v36 = vor.u32 %v3836_v6, %v3832_v3  ;;  %v3809_v57 = vsel %vm8621_vm7, %v3804_v39, %v3808_v18  ;;  %v4232_v53 = vrot.slane %v3810_v59, 5  ;;  %v4233_v29 = vrot.slane %v3806_v26, 6  ;;  %v8208_v59 = vld [vmem:[#allocation7 + $0x448] sm:$0xff]   ;;  %v8213_v2 = vld [vmem:[#allocation7 + $0x470] sm:$0xff]  }
 0x6d8   :  { %v3814_v14 = vrot.slane %v3813_v28, 4  ;;  %v3833_v1 = vsel %vm8621_vm7, %v3828_v31, %v3832_v3  ;;  %v4255_v60 = vrot.slane %v3834_v62, 5  ;;  %v4256_v35 = vrot.slane %v3830_v24, 6  ;;  %v8211_v24 = vld [vmem:[#allocation7 + $0x460] sm:$0xff]   ;;  %v8214_v28 = vld [vmem:[#allocation7 + $0x478] sm:$0xff]  }
 0x6d9   :  { %v3838_v17 = vrot.slane %v3837_v36, 4  ;;  %v9056_v30 = vor.u32 %v4233_v29, %v4232_v53  ;;  %v4083_v43 = vrot.slane %v9036_v44, 5  ;;  %v4086_v49 = vrot.slane %v9032_v50, 5  ;;  %v8210_v50 = vld [vmem:[#allocation7 + $0x458] sm:$0xff]   ;;  %v8216_v29 = vld [vmem:[#allocation7 + $0x488] sm:$0xff]  }
 0x6da   :  { %v3819_v19 = vsel %vm8621_vm7, %v3814_v14, %v3818_v8  ;;  %v9058_v40 = vor.u32 %v4256_v35, %v4255_v60  ;;  %v6635_v9 = vrot.slane %v4075_v13, 9  ;;  %v6626_v15 = vcombine.low %v9028_v33, %v9040_v52  ;;  %v8212_v33 = vld [vmem:[#allocation7 + $0x468] sm:$0xff]   ;;  %v8217_v35 = vld [vmem:[#allocation7 + $0x490] sm:$0xff]  }
 0x6db   :  { %v6615_v11 = vcombine.low %v3809_v57, %v3819_v19  ;;  %v3843_v22 = vsel %vm8621_vm7, %v3838_v17, %v3842_v63  ;;  %v4085_v47 = vrot.slane %v4083_v43, 4  ;;  %v4224_v62 = vshrl.u32 %v4075_v13, 16  ;;  %v4076_v17 = vld [vmem:[#allocation2 + $0xc] sm:$0xe]  ;;  %v8215_v19 = vld [vmem:[#allocation7 + $0x480] sm:$0xff]  }
 0x6dc   :  { %v6616_v58 = vcombine.low %v3833_v1, %v3843_v22  ;;  %v4084_v26 = vsel %vm8531_vm2, %v6635_v9, %v4083_v43  ;;  %v4227_v18 = vshll.u32 %v4075_v13, 16  ;;  %v4238_v6 = vshrl.u32 %v9068_v54, 16  ;;  %v9084_v43 = vld [vmem:[#allocation2 + $0x14] sm:$0x3] }
 0x6dd   :  { %7608 = vmatprep.mubr.bf16.mxu1 %v6615_v11  ;;  %v4087_v56 = vsel %vm8531_vm2, %v4085_v47, %v4086_v49  ;;  %v4226_v37 = vrot.slane %v4224_v62, 5  ;;  %v4241_v7 = vshll.u32 %v9068_v54, 16  ;;  %v4090_v39 = vrot.slane %v9040_v52, 5 }
 0x6de   :  { %7609 = vmatmul.mubr.bf16.vlgmr.msra.gmra.mrb[8].mxu1 %v6616_v58  ;;  %v6637_v61 = vcombine.low %v4084_v26, %v4087_v56  ;;  %v4229_v3 = vrot.slane %v4227_v18, 6  ;;  %v4240_v36 = vrot.slane %v4238_v6, 5  ;;  %v4236_v63 = vrot.slane %v9056_v30, 4  ;;  %v8222_v26 = vld [vmem:[#allocation7 + $0x4b8] sm:$0xff]  }
 0x6df   :  { %7613 = vmatpush3.bf16.msra.mxu1 %v9014_v12  ;;  %7628 = vmatprep.mubr.bf16.mxu1 %v6625_v25  ;;  %v8204_v12 = vld [vmem:[#allocation7 + $0x3f0] sm:$0xff]   ;;  %v4243_v14 = vrot.slane %v4241_v7, 6  ;;  %v4092_v8 = vrot.slane %v4090_v39, 4  ;;  %v4093_v57 = vrot.slane %v9034_v55, 5  ;;  %v6636_v22 = vrot.slane %v4076_v17, 9  ;;  %v8224_v7 = vld [vmem:[#allocation7 + $0x4c8] sm:$0xff]  }
 0x6e0   :  { %7614 = vmatprep.subr.bf16.mxu1 %v8199_v23  ;;  %v4230_v31 = vor.u32 %v4229_v3, %v4226_v37  ;;  %v4261_v47 = vshrl.u32 %v9084_v43, 16  ;;  %v4264_v13 = vshll.u32 %v9084_v43, 16  ;;  %v4403_v49 = vrot.slane %v9036_v44, 6 }
 0x6e1   :  { %v4244_v1 = vor.u32 %v4243_v14, %v4240_v36  ;;  %v4094_v58 = vsel %vm8531_vm2, %v4092_v8, %v4093_v57  ;;  %v4091_v25 = vsel %vm8531_vm2, %v6636_v22, %v4090_v39  ;;  %v4406_v62 = vrot.slane %v9068_v54, 6  ;;  %v8225_v54 = vld [vmem:[#allocation7 + $0x4d0] sm:$0xff]   ;;  %v8230_v8 = vld [vmem:[#allocation7 + $0x4f8] sm:$0xff]  }
 0x6e2   :  { %v4231_v11 = vrot.slane %v4230_v31, 4  ;;  %v6638_v53 = vcombine.low %v4091_v25, %v4094_v58  ;;  %v4263_v56 = vrot.slane %v4261_v47, 5  ;;  %v8227_v31 = vld [vmem:[#allocation7 + $0x4e0] sm:$0xff]   ;;  %v8229_v36 = vld [vmem:[#allocation7 + $0x4f0] sm:$0xff]   ;;  %v4410_v14 = vrot.slane %v9040_v52, 6  ;;  %v8232_v58 = vld [vmem:[#allocation7 + $0x548] sm:$0xff]  }
 0x6e3   :  { %7615 = vmatpush3.bf16.msra.mxu1 %v8199_v23  ;;  %v4245_v23 = vsel %vm8648_vm8, %v4236_v63, %v4244_v1  ;;  %v4396_v63 = vld [vmem:[#allocation2 + $0xc] sm:$0xc]  ;;  %v4413_v57 = vrot.slane %v9084_v43, 6  ;;  %v8231_v52 = vld [vmem:[#allocation7 + $0x540] sm:$0xff]   ;;  %v8234_v25 = vld [vmem:[#allocation7 + $0x558] sm:$0xff]  }
 0x6e4   :  { %7616 = vmatprep.subr.bf16.mxu1 %v8200_v38  ;;  %v4235_v55 = vsel %vm8648_vm8, %v4231_v11, %v9056_v30  ;;  %7692 = vmatprep.subr.bf16.mxu0 %v8231_v52 }
 0x6e5   :  { %v6647_v60 = vcombine.low %v4235_v55, %v4245_v23  ;;  %7693 = vmatpush3.bf16.msra.mxu0 %v8231_v52  ;;  %v8233_v23 = vld [vmem:[#allocation7 + $0x550] sm:$0xff]   ;;  %v8236_v55 = vld [vmem:[#allocation7 + $0x568] sm:$0xff]  }
 0x6e6   :  { %7694 = vmatprep.subr.bf16.mxu0 %v8232_v58  ;;  %v4541_v52 = vld [vmem:[%s9330_s4 + $0x4] sm:$0x1] }
 0x6e7   :  { %7617 = vmatpush3.bf16.msra.mxu1 %v8200_v38  ;;  %v8218_v38 = vld [vmem:[#allocation7 + $0x498] sm:$0xff]  }
 0x6e8   :  { %7618 = vmatprep.subr.bf16.mxu1 %v8201_v27 }
 0x6e9   :  { %7695 = vmatpush3.bf16.msra.mxu0 %v8232_v58 }
 0x6ea   :  { %7696 = vmatprep.subr.bf16.mxu0 %v8233_v23 }
 0x6eb   :  { %7619 = vmatpush3.bf16.msra.mxu1 %v8201_v27  ;;  %v8219_v27 = vld [vmem:[#allocation7 + $0x4a0] sm:$0xff]  }
 0x6ec   :  { %7620 = vmatprep.subr.bf16.mxu1 %v8202_v51 }
 0x6ed   :  { %7697 = vmatpush3.bf16.msra.mxu0 %v8233_v23 }
 0x6ee   :  { %7698 = vmatprep.subr.bf16.mxu0 %v8234_v25 }
 0x6ef   :  { %7621 = vmatpush3.bf16.msra.mxu1 %v8202_v51  ;;  %v4247_v51 = vshrl.u32 %v4076_v17, 16 }
 0x6f0   :  { %7622 = vmatprep.subr.bf16.mxu1 %v8203_v21 }
 0x6f1   :  { %v4249_v30 = vrot.slane %v4247_v51, 5  ;;  %7699 = vmatpush3.bf16.msra.mxu0 %v8234_v25 }
 0x6f3   :  { %7623 = vmatpush3.bf16.msra.mxu1 %v8203_v21  ;;  %v4250_v21 = vshll.u32 %v4076_v17, 16  ;;  %v4412_v17 = vrot.slane %v4410_v14, 4 }
 0x6f4   :  { %7624 = vmatprep.subr.bf16.mxu1 %v8204_v12 }
 0x6f5   :  { %v4414_v11 = vsel %vm8684_vm11, %v4412_v17, %v4413_v57 }
 0x6f7   :  { %7625 = vmatpush3.bf16.msra.mxu1 %v8204_v12  ;;  %v8220_v12 = vld [vmem:[#allocation7 + $0x4a8] sm:$0xff]  }
 0x6f8   :  { %7626 = vmatprep.subr.bf16.mxu1 %v8205_v16 }
 0x6fb   :  { %7627 = vmatpush3.bf16.msra.mxu1 %v8205_v16  ;;  %v4252_v16 = vrot.slane %v4250_v21, 6 }
 0x6fc   :  { %7632 = vmatprep.subr.bf16.mxu1 %v8207_v48 }
 0x6fd   :  { %v4253_v9 = vor.u32 %v4252_v16, %v4249_v30 }
 0x6fe   :  { %7629 = vmatmul.mubr.bf16.vlgmr.msra.gmra.mrb[8].mxu1 %v6626_v15  ;;  %v4266_v15 = vrot.slane %v4264_v13, 6 }
 0x6ff   :  { %7633 = vmatpush3.bf16.msra.mxu1 %v8207_v48  ;;  %7648 = vmatprep.mubr.bf16.mxu1 %v6637_v61  ;;  %v8221_v48 = vld [vmem:[#allocation7 + $0x4b0] sm:$0xff]   ;;  %v4405_v61 = vrot.slane %v4403_v49, 4 }
 0x700   :  { %7634 = vmatprep.subr.bf16.mxu1 %v8208_v59 }
 0x703   :  { %7635 = vmatpush3.bf16.msra.mxu1 %v8208_v59  ;;  %v4259_v59 = vrot.slane %v9058_v40, 4 }
 0x704   :  { %7636 = vmatprep.subr.bf16.mxu1 %v8209_v46 }
 0x707   :  { %7637 = vmatpush3.bf16.msra.mxu1 %v8209_v46  ;;  %v4254_v46 = vrot.slane %v4253_v9, 4 }
 0x708   :  { %7638 = vmatprep.subr.bf16.mxu1 %v8210_v50 }
 0x709   :  { %v4258_v37 = vsel %vm8648_vm8, %v4254_v46, %v9058_v40  ;;  %v8228_v40 = vld [vmem:[#allocation7 + $0x4e8] sm:$0xff]  }
 0x70b   :  { %7639 = vmatpush3.bf16.msra.mxu1 %v8210_v50  ;;  %v4267_v50 = vor.u32 %v4266_v15, %v4263_v56 }
 0x70c   :  { %7640 = vmatprep.subr.bf16.mxu1 %v8211_v24 }
 0x70d   :  { %v4268_v44 = vsel %vm8648_vm8, %v4259_v59, %v4267_v50 }
 0x70e   :  { %v6648_v3 = vcombine.low %v4258_v37, %v4268_v44 }
 0x70f   :  { %7641 = vmatpush3.bf16.msra.mxu1 %v8211_v24  ;;  %v4395_v24 = vld [vmem:[#allocation2] sm:$0xc] }
 0x710   :  { %7642 = vmatprep.subr.bf16.mxu1 %v8212_v33  ;;  %v6657_v18 = vrot.slane %v4395_v24, 10 }
 0x712   :  { %v4404_v6 = vsel %vm8684_vm11, %v6657_v18, %v4403_v49 }
 0x713   :  { %7643 = vmatpush3.bf16.msra.mxu1 %v8212_v33  ;;  %v8223_v33 = vld [vmem:[#allocation7 + $0x4c0] sm:$0xff]  }
 0x714   :  { %7644 = vmatprep.subr.bf16.mxu1 %v8213_v2 }
 0x717   :  { %7645 = vmatpush3.bf16.msra.mxu1 %v8213_v2  ;;  %v4407_v2 = vsel %vm8684_vm11, %v4405_v61, %v4406_v62 }
 0x718   :  { %7646 = vmatprep.subr.bf16.mxu1 %v8214_v28  ;;  %v6659_v39 = vcombine.low %v4404_v6, %v4407_v2 }
 0x71b   :  { %7647 = vmatpush3.bf16.msra.mxu1 %v8214_v28  ;;  %v8226_v28 = vld [vmem:[#allocation7 + $0x4d8] sm:$0xff]  }
 0x71c   :  { %7652 = vmatprep.subr.bf16.mxu1 %v8215_v19 }
 0x71e   :  { %7649 = vmatmul.mubr.bf16.vlgmr.msra.gmra.mrb[8].mxu1 %v6638_v53  ;;  %v8235_v53 = vld [vmem:[#allocation7 + $0x560] sm:$0xff]  }
 0x71f   :  { %7653 = vmatpush3.bf16.msra.mxu1 %v8215_v19  ;;  %7668 = vmatprep.mubr.bf16.mxu1 %v6647_v60  ;;  %v6658_v19 = vrot.slane %v4396_v63, 10  ;;  %v8238_v60 = vld [vmem:[#allocation7 + $0x578] sm:$0xff]  }
 0x720   :  { %7654 = vmatprep.subr.bf16.mxu1 %v8216_v29  ;;  %7700 = vmatprep.subr.bf16.mxu0 %v8235_v53 }
 0x721   :  { %v4411_v1 = vsel %vm8684_vm11, %v6658_v19, %v4410_v14  ;;  %7701 = vmatpush3.bf16.msra.mxu0 %v8235_v53  ;;  %v6669_v53 = vld [vmem:[%s9331_s5 + $0x4] ss:$0 sm:$0xff] }
 0x722   :  { %v6660_v22 = vcombine.low %v4411_v1, %v4414_v11  ;;  %7702 = vmatprep.subr.bf16.mxu0 %v8236_v55 }
 0x723   :  { %7655 = vmatpush3.bf16.msra.mxu1 %v8216_v29  ;;  %v8237_v29 = vld [vmem:[#allocation7 + $0x570] sm:$0xff]  }
 0x724   :  { %7656 = vmatprep.subr.bf16.mxu1 %v8217_v35 }
 0x725   :  { %7703 = vmatpush3.bf16.msra.mxu0 %v8236_v55 }
 0x726   :  { %7704 = vmatprep.subr.bf16.mxu0 %v8237_v29 }
 0x727   :  { %7657 = vmatpush3.bf16.msra.mxu1 %v8217_v35  ;;  %v9106_v35 = vld [vmem:[#allocation7 + $0x500] sm:$0xff]  }
 0x728   :  { %7658 = vmatprep.subr.bf16.mxu1 %v8218_v38 }
 0x729   :  { %7705 = vmatpush3.bf16.msra.mxu0 %v8237_v29 }
 0x72a   :  { %7706 = vmatprep.subr.bf16.mxu0 %v8238_v60 }
 0x72b   :  { %7659 = vmatpush3.bf16.msra.mxu1 %v8218_v38 }
 0x72c   :  { %7660 = vmatprep.subr.bf16.mxu1 %v8219_v27 }
 0x72d   :  { %7707 = vmatpush3.bf16.msra.mxu0 %v8238_v60 }
 0x72e   :  { %7712 = vmatprep.subr.bf16.mxu0 %v9106_v35 }
 0x72f   :  { %7661 = vmatpush3.bf16.msra.mxu1 %v8219_v27 }
 0x730   :  { %7662 = vmatprep.subr.bf16.mxu1 %v8220_v12 }
 0x733   :  { %7663 = vmatpush3.bf16.msra.mxu1 %v8220_v12 }
 0x734   :  { %7664 = vmatprep.subr.bf16.mxu1 %v8221_v48 }
 0x737   :  { %7665 = vmatpush3.bf16.msra.mxu1 %v8221_v48 }
 0x738   :  { %7666 = vmatprep.subr.bf16.mxu1 %v8222_v26 }
 0x73b   :  { %7667 = vmatpush3.bf16.msra.mxu1 %v8222_v26 }
 0x73c   :  { %7672 = vmatprep.subr.bf16.mxu1 %v8223_v33 }
 0x73e   :  { %7669 = vmatmul.mubr.bf16.vlgmr.msra.gmra.mrb[8].mxu1 %v6648_v3 }
 0x73f   :  { %7673 = vmatpush3.bf16.msra.mxu1 %v8223_v33  ;;  %7688 = vmatprep.mubr.bf16.mxu1 %v6659_v39 }
 0x740   :  { %7674 = vmatprep.subr.bf16.mxu1 %v8224_v7 }
 0x743   :  { %7675 = vmatpush3.bf16.msra.mxu1 %v8224_v7 }
 0x744   :  { %7676 = vmatprep.subr.bf16.mxu1 %v8225_v54 }
 0x747   :  { %7677 = vmatpush3.bf16.msra.mxu1 %v8225_v54 }
 0x748   :  { %7678 = vmatprep.subr.bf16.mxu1 %v8226_v28 }
 0x74b   :  { %7679 = vmatpush3.bf16.msra.mxu1 %v8226_v28 }
 0x74c   :  { %7680 = vmatprep.subr.bf16.mxu1 %v8227_v31 }
 0x74f   :  { %7681 = vmatpush3.bf16.msra.mxu1 %v8227_v31 }
 0x750   :  { %7682 = vmatprep.subr.bf16.mxu1 %v8228_v40 }
 0x753   :  { %7683 = vmatpush3.bf16.msra.mxu1 %v8228_v40 }
 0x754   :  { %7684 = vmatprep.subr.bf16.mxu1 %v8229_v36 }
 0x757   :  { %7685 = vmatpush3.bf16.msra.mxu1 %v8229_v36 }
 0x758   :  { %7686 = vmatprep.subr.bf16.mxu1 %v8230_v8 }
 0x75b   :  { %7687 = vmatpush3.bf16.msra.mxu1 %v8230_v8 }
 0x75e   :  { %7689 = vmatmul.mubr.bf16.vlgmr.msra.gmra.mrb[8].mxu1 %v6660_v22 }
 0x831   :  { %v7690_v38 = vpop.f32.mrb[8].mxu1 }
 0x832   :  { %v4522_v27 = vpop.f32.mrb[9].mxu1 }
 0x833   :  { %v7691_v51 = vpop.f32.mrb[10].mxu1 }
 0x834   :  { %v4550_v21 = vadd.f32 %v7691_v51, %v7690_v38  ;;  %v4525_v12 = vpop.f32.mrb[11].mxu1 }
 0x835   :  { %v4543_v43 = vadd.f32 %v4525_v12, %v4522_v27 }
 0x836   :  { %v4551_v30 = vrot.slane %v4550_v21, 4 }
 0x837   :  { %v4544_v16 = vrot.slane %v4543_v43, 4 }
 0x838   :  { %v4552_v47 = vadd.f32 %v4551_v30, %v4550_v21 }
 0x839   :  { %v4545_v13 = vadd.f32 %v4544_v16, %v4543_v43 }
 0x83a   :  { %v4553_v48 = vrot.slane %v4552_v47, 2 }
 0x83b   :  { %v4546_v49 = vrot.slane %v4545_v13, 2 }
 0x83c   :  { %v4554_v9 = vadd.f32 %v4553_v48, %v4552_v47 }
 0x83d   :  { %v4547_v56 = vadd.f32 %v4546_v49, %v4545_v13 }
 0x83e   :  { %v4555_v15 = vrot.slane %v4554_v9, 1 }
 0x83f   :  { %v4548_v26 = vrot.slane %v4547_v56, 1 }
 0x840   :  { %v4556_v59 = vadd.f32 %v4555_v15, %v4554_v9 }
 0x841   :  { %v4549_v61 = vadd.f32 %v4548_v26, %v4547_v56 }
 0x843   :  { %v4557_v46 = vadd.f32 %v4556_v59, %v4549_v61 }
 0x845   :  { %v4558_v50 = vmul.f32 0.03125, %v4557_v46 }
 0x847   :  { %v4559_v24 = vsub.f32 %v4522_v27, %v4558_v50  ;;  %v4560_v33 = vsub.f32 %v4525_v12, %v4558_v50  ;;  %v4561_v62 = vsub.f32 %v7690_v38, %v4558_v50  ;;  %v4562_v44 = vsub.f32 %v7691_v51, %v4558_v50 }
 0x849   :  { %v4563_v18 = vmul.f32 %v4559_v24, %v4559_v24  ;;  %v4564_v2 = vmul.f32 %v4560_v33, %v4560_v33  ;;  %v4565_v37 = vmul.f32 %v4561_v62, %v4561_v62  ;;  %v4566_v3 = vmul.f32 %v4562_v44, %v4562_v44 }
 0x84b   :  { %v4567_v6 = vadd.f32 %v4564_v2, %v4563_v18  ;;  %v4574_v7 = vadd.f32 %v4566_v3, %v4565_v37 }
 0x84d   :  { %v4568_v39 = vrot.slane %v4567_v6, 4  ;;  %v4575_v54 = vrot.slane %v4574_v7, 4 }
 0x84f   :  { %v4569_v28 = vadd.f32 %v4568_v39, %v4567_v6  ;;  %v4576_v31 = vadd.f32 %v4575_v54, %v4574_v7 }
 0x851   :  { %v4570_v40 = vrot.slane %v4569_v28, 2  ;;  %v4577_v36 = vrot.slane %v4576_v31, 2 }
 0x853   :  { %v4571_v14 = vadd.f32 %v4570_v40, %v4569_v28  ;;  %v4578_v8 = vadd.f32 %v4577_v36, %v4576_v31 }
 0x855   :  { %v4572_v17 = vrot.slane %v4571_v14, 1  ;;  %v4579_v63 = vrot.slane %v4578_v8, 1 }
 0x857   :  { %v4573_v57 = vadd.f32 %v4572_v17, %v4571_v14  ;;  %v4580_v19 = vadd.f32 %v4579_v63, %v4578_v8 }
 0x859   :  { %v4581_v11 = vadd.f32 %v4580_v19, %v4573_v57 }
 0x85b   :  { %v4582_v1 = vmul.f32 0.03125, %v4581_v11 }
 0x85d   :  { %v4583_v22 = vadd.f32 1e-05, %v4582_v1 }
 0x85f   :  { %8325 = vrsqrt.f32 %v4583_v22 }
 0x869   :  { %v8326_v58 = vpop.eup %8325 }
 0x86a   :  { %v4585_v23 = vmul.f32 %v8326_v58, %v4541_v52 }
 0x86c   :  { %v4589_v25 = vrot.slane %v4585_v23, %v8726_v0 }
 0x86e   :  { %v4590_v55 = vmul.f32 %v4589_v25, %v4559_v24  ;;  %v4591_v29 = vmul.f32 %v4589_v25, %v4560_v33  ;;  %v4592_v60 = vmul.f32 %v4589_v25, %v4561_v62  ;;  %v4593_v38 = vmul.f32 %v4589_v25, %v4562_v44 }
 0x870   :  { %v4598_v27 = vadd.f32 %v6669_v53, %v4590_v55  ;;  %v4599_v51 = vadd.f32 %v6669_v53, %v4591_v29  ;;  %v4600_v21 = vadd.f32 %v6669_v53, %v4592_v60  ;;  %v4601_v12 = vadd.f32 %v6669_v53, %v4593_v38 }
 0x872   :  { %v4602_v43 = vmax.f32 %v4598_v27, 0.0  ;;  %v4603_v30 = vmax.f32 %v4599_v51, 0.0  ;;  %v4604_v16 = vmax.f32 %v4600_v21, 0.0  ;;  %v4605_v47 = vmax.f32 %v4601_v12, 0.0 }
 0x874   :  { %v6804_v13 = vpack.c.bf16 %v4602_v43, %v4602_v43  ;;  %v6805_v48 = vpack.c.bf16 %v4603_v30, %v4603_v30  ;;  %v6806_v49 = vpack.c.bf16 %v4604_v16, %v4604_v16  ;;  %v6807_v9 = vpack.c.bf16 %v4605_v47, %v4605_v47 }
 0x876   :  { %v4618_v56 = vrot.slane %v6804_v13, 7  ;;  %v4620_v15 = vrot.slane %v6805_v48, 7  ;;  %v4623_v26 = vrot.slane %v6806_v49, 7  ;;  %v4625_v59 = vrot.slane %v6807_v9, 7  ;;  %v8241_v48 = vld [vmem:[#allocation7 + $0x508] sm:$0xff]  }
 0x878   :  { %v4619_v61 = vrot.slane %v4618_v56, 4  ;;  %v4622_v46 = vrot.slane %v4620_v15, 4  ;;  %v4624_v50 = vrot.slane %v4623_v26, 4  ;;  %v4627_v24 = vrot.slane %v4625_v59, 4  ;;  %4634 = vst [vmem:[#allocation2] sm:$0xe] %v4618_v56 }
 0x879   :  { %4637 = vst [vmem:[#allocation2 + $0xc] sm:$0xe] %v4623_v26 }
 0x87a   :  { %v4621_v33 = vsel %vm8744_vm14, %v4619_v61, %v4620_v15  ;;  %v4626_v62 = vsel %vm8744_vm14, %v4624_v50, %v4625_v59  ;;  %4636 = vst [vmem:[#allocation2 + $0x8] sm:$0x1] %v4622_v46  ;;  %4639 = vst [vmem:[#allocation2 + $0x14] sm:$0x1] %v4627_v24  ;;  %v8242_v61 = vld [vmem:[#allocation7 + $0x510] sm:$0xff]   ;;  %v8243_v50 = vld [vmem:[#allocation7 + $0x518] sm:$0xff]  }
 0x87b   :  { %4635 = vst [vmem:[#allocation2 + $0x4] sm:$0xf] %v4621_v33  ;;  %4638 = vst [vmem:[#allocation2 + $0x10] sm:$0xf] %v4626_v62  ;;  %v8244_v24 = vld [vmem:[#allocation7 + $0x520] sm:$0xff]   ;;  %v8245_v33 = vld [vmem:[#allocation7 + $0x528] sm:$0xff]  }
 0x87f   :  { %v4640_v44 = vld [vmem:[#allocation2] sm:$0xf] }
 0x880   :  { %v9120_v18 = vld [vmem:[#allocation2 + $0xc] sm:$0xf]  ;;  %v4664_v2 = vshrl.u32 %v4640_v44, 16  ;;  %v4667_v37 = vshll.u32 %v4640_v44, 16 }
 0x881   :  { %v4688_v3 = vshrl.u32 %v9120_v18, 16  ;;  %v4691_v6 = vshll.u32 %v9120_v18, 16  ;;  %v9124_v7 = vld [vmem:[#allocation2 + $0x8] sm:$0x1]  ;;  %v9126_v39 = vld [vmem:[#allocation2 + $0x14] sm:$0x1] }
 0x882   :  { %v9128_v54 = vld [vmem:[#allocation2 + $0x4] sm:$0xf]  ;;  %v4666_v28 = vrot.slane %v4664_v2, 4  ;;  %v4669_v31 = vrot.slane %v4667_v37, 5  ;;  %v9132_v8 = vld [vmem:[#allocation2 + $0x10] sm:$0xf] }
 0x883   :  { %v4690_v40 = vrot.slane %v4688_v3, 4  ;;  %v4673_v36 = vshll.u32 %v9128_v54, 16  ;;  %v4677_v14 = vshrl.u32 %v9128_v54, 16  ;;  %v4693_v17 = vrot.slane %v4691_v6, 5  ;;  %v4942_v37 = vld [vmem:[#allocation2] sm:$0xe] }
 0x884   :  { %v4670_v63 = vor.u32 %v4669_v31, %v4666_v28  ;;  %v4697_v57 = vshll.u32 %v9132_v8, 16  ;;  %v4701_v19 = vshrl.u32 %v9132_v8, 16  ;;  %v4683_v22 = vshll.u32 %v9124_v7, 16  ;;  %v8249_v3 = vld [vmem:[#allocation7 + $0x580] sm:$0xff]  }
 0x885   :  { %v4675_v11 = vrot.slane %v4673_v36, 5  ;;  %v4679_v1 = vrot.slane %v4677_v14, 4  ;;  %v4694_v52 = vor.u32 %v4693_v17, %v4690_v40  ;;  %v4707_v25 = vshll.u32 %v9126_v39, 16 }
 0x886   :  { %v4699_v58 = vrot.slane %v4697_v57, 5  ;;  %v4703_v23 = vrot.slane %v4701_v19, 4  ;;  %v4671_v53 = vrot.slane %v4670_v63, 4  ;;  %v4685_v27 = vrot.slane %v4683_v22, 5  ;;  %v8251_v63 = vld [vmem:[#allocation7 + $0x590] sm:$0xff]  }
 0x887   :  { %v4680_v55 = vor.u32 %v4679_v1, %v4675_v11  ;;  %v4695_v29 = vrot.slane %v4694_v52, 4  ;;  %v4709_v21 = vrot.slane %v4707_v25, 5  ;;  %v6684_v49 = vcombine.low %v4640_v44, %v9128_v54  ;;  %v8247_v44 = vld [vmem:[#allocation7 + $0x538] sm:$0xff]   ;;  %v9160_v1 = vld [vmem:[#allocation2 + $0x8] sm:$0x3] }
 0x888   :  { %v4704_v60 = vor.u32 %v4703_v23, %v4699_v58  ;;  %v4676_v12 = vsel %vm8621_vm7, %v4671_v53, %v4675_v11  ;;  %v5099_v9 = vrot.slane %v4677_v14, 5  ;;  %v5100_v56 = vrot.slane %v4673_v36, 6  ;;  %v8250_v14 = vld [vmem:[#allocation7 + $0x588] sm:$0xff]   ;;  %v8255_v22 = vld [vmem:[#allocation7 + $0x5b0] sm:$0xff]  }
 0x889   :  { %v4681_v38 = vrot.slane %v4680_v55, 4  ;;  %v4700_v16 = vsel %vm8621_vm7, %v4695_v29, %v4699_v58  ;;  %v5122_v15 = vrot.slane %v4701_v19, 5  ;;  %v5123_v59 = vrot.slane %v4697_v57, 6  ;;  %v8253_v57 = vld [vmem:[#allocation7 + $0x5a0] sm:$0xff]   ;;  %v8256_v55 = vld [vmem:[#allocation7 + $0x5b8] sm:$0xff]  }
 0x88a   :  { %v4705_v51 = vrot.slane %v4704_v60, 4  ;;  %v9148_v26 = vor.u32 %v5100_v56, %v5099_v9  ;;  %v4950_v62 = vrot.slane %v9128_v54, 5  ;;  %v4953_v6 = vrot.slane %v9124_v7, 5  ;;  %v8252_v7 = vld [vmem:[#allocation7 + $0x598] sm:$0xff]   ;;  %v8258_v56 = vld [vmem:[#allocation7 + $0x5c8] sm:$0xff]  }
 0x88b   :  { %v4686_v43 = vsel %vm8621_vm7, %v4681_v38, %v4685_v27  ;;  %v9150_v46 = vor.u32 %v5123_v59, %v5122_v15  ;;  %v6694_v28 = vrot.slane %v4942_v37, 9  ;;  %v6685_v40 = vcombine.low %v9120_v18, %v9132_v8  ;;  %v8254_v18 = vld [vmem:[#allocation7 + $0x5a8] sm:$0xff]   ;;  %v8259_v59 = vld [vmem:[#allocation7 + $0x5d0] sm:$0xff]  }
 0x88c   :  { %v6674_v30 = vcombine.low %v4676_v12, %v4686_v43  ;;  %v4710_v47 = vsel %vm8621_vm7, %v4705_v51, %v4709_v21  ;;  %v4952_v2 = vrot.slane %v4950_v62, 4  ;;  %v5091_v19 = vshrl.u32 %v4942_v37, 16  ;;  %v4943_v51 = vld [vmem:[#allocation2 + $0xc] sm:$0xe]  ;;  %v8257_v43 = vld [vmem:[#allocation7 + $0x5c0] sm:$0xff]  }
 0x88d   :  { %v6675_v13 = vcombine.low %v4700_v16, %v4710_v47  ;;  %v4951_v36 = vsel %vm8531_vm2, %v6694_v28, %v4950_v62  ;;  %v5094_v11 = vshll.u32 %v4942_v37, 16  ;;  %v5105_v23 = vshrl.u32 %v9160_v1, 16  ;;  %v9176_v62 = vld [vmem:[#allocation2 + $0x14] sm:$0x3] }
 0x88e   :  { %7708 = vmatprep.mubr.bf16.mxu0 %v6674_v30  ;;  %v4954_v31 = vsel %vm8531_vm2, %v4952_v2, %v4953_v6  ;;  %v5093_v52 = vrot.slane %v5091_v19, 5  ;;  %v5108_v25 = vshll.u32 %v9160_v1, 16  ;;  %v4957_v53 = vrot.slane %v9132_v8, 5 }
 0x88f   :  { %7709 = vmatmul.mubr.bf16.vlgmr.msra.gmra.mrb[16].mxu0 %v6675_v13  ;;  %v6696_v17 = vcombine.low %v4951_v36, %v4954_v31  ;;  %v5096_v58 = vrot.slane %v5094_v11, 6  ;;  %v5107_v60 = vrot.slane %v5105_v23, 5  ;;  %v5103_v21 = vrot.slane %v9148_v26, 4  ;;  %v8264_v36 = vld [vmem:[#allocation7 + $0x5f8] sm:$0xff]  }
 0x890   :  { %7713 = vmatpush3.bf16.msra.mxu0 %v9106_v35  ;;  %7728 = vmatprep.mubr.bf16.mxu0 %v6684_v49  ;;  %v8246_v35 = vld [vmem:[#allocation7 + $0x530] sm:$0xff]   ;;  %v5110_v38 = vrot.slane %v5108_v25, 6  ;;  %v4959_v27 = vrot.slane %v4957_v53, 4  ;;  %v4960_v12 = vrot.slane %v9126_v39, 5  ;;  %v6695_v47 = vrot.slane %v4943_v51, 9  ;;  %v8266_v25 = vld [vmem:[#allocation7 + $0x608] sm:$0xff]  }
 0x891   :  { %7714 = vmatprep.subr.bf16.mxu0 %v8241_v48  ;;  %v5097_v29 = vor.u32 %v5096_v58, %v5093_v52  ;;  %v5128_v2 = vshrl.u32 %v9176_v62, 16  ;;  %v5131_v37 = vshll.u32 %v9176_v62, 16  ;;  %v5270_v6 = vrot.slane %v9128_v54, 6 }
 0x892   :  { %v5111_v16 = vor.u32 %v5110_v38, %v5107_v60  ;;  %v4961_v13 = vsel %vm8531_vm2, %v4959_v27, %v4960_v12  ;;  %v4958_v49 = vsel %vm8531_vm2, %v6695_v47, %v4957_v53  ;;  %v5273_v19 = vrot.slane %v9160_v1, 6  ;;  %v8267_v1 = vld [vmem:[#allocation7 + $0x610] sm:$0xff]   ;;  %v8272_v27 = vld [vmem:[#allocation7 + $0x638] sm:$0xff]  }
 0x893   :  { %v5098_v30 = vrot.slane %v5097_v29, 4  ;;  %v6697_v9 = vcombine.low %v4958_v49, %v4961_v13  ;;  %v5130_v31 = vrot.slane %v5128_v2, 5  ;;  %v8269_v29 = vld [vmem:[#allocation7 + $0x620] sm:$0xff]   ;;  %v8271_v60 = vld [vmem:[#allocation7 + $0x630] sm:$0xff]   ;;  %v5277_v38 = vrot.slane %v9132_v8, 6  ;;  %v8274_v13 = vld [vmem:[#allocation7 + $0x688] sm:$0xff]  }
 0x894   :  { %7715 = vmatpush3.bf16.msra.mxu0 %v8241_v48  ;;  %v5112_v48 = vsel %vm8648_vm8, %v5103_v21, %v5111_v16  ;;  %v5263_v21 = vld [vmem:[#allocation2 + $0xc] sm:$0xc]  ;;  %v5280_v12 = vrot.slane %v9176_v62, 6  ;;  %v8273_v8 = vld [vmem:[#allocation7 + $0x680] sm:$0xff]   ;;  %v8276_v49 = vld [vmem:[#allocation7 + $0x698] sm:$0xff]  }
 0x895   :  { %7716 = vmatprep.subr.bf16.mxu0 %v8242_v61  ;;  %v5102_v39 = vsel %vm8648_vm8, %v5098_v30, %v9148_v26  ;;  %7792 = vmatprep.subr.bf16.mxu1 %v8273_v8 }
 0x896   :  { %v6706_v15 = vcombine.low %v5102_v39, %v5112_v48  ;;  %7793 = vmatpush3.bf16.msra.mxu1 %v8273_v8  ;;  %v8275_v48 = vld [vmem:[#allocation7 + $0x690] sm:$0xff]   ;;  %v8278_v39 = vld [vmem:[#allocation7 + $0x6a8] sm:$0xff]  }
 0x897   :  { %7794 = vmatprep.subr.bf16.mxu1 %v8274_v13  ;;  %v5408_v8 = vld [vmem:[%s9330_s4 + $0x5] sm:$0x1] }
 0x898   :  { %7717 = vmatpush3.bf16.msra.mxu0 %v8242_v61  ;;  %v8260_v61 = vld [vmem:[#allocation7 + $0x5d8] sm:$0xff]  }
 0x899   :  { %7718 = vmatprep.subr.bf16.mxu0 %v8243_v50 }
 0x89a   :  { %7795 = vmatpush3.bf16.msra.mxu1 %v8274_v13 }
 0x89b   :  { %7796 = vmatprep.subr.bf16.mxu1 %v8275_v48 }
 0x89c   :  { %7719 = vmatpush3.bf16.msra.mxu0 %v8243_v50  ;;  %v8261_v50 = vld [vmem:[#allocation7 + $0x5e0] sm:$0xff]  }
 0x89d   :  { %7720 = vmatprep.subr.bf16.mxu0 %v8244_v24 }
 0x89e   :  { %7797 = vmatpush3.bf16.msra.mxu1 %v8275_v48 }
 0x89f   :  { %7798 = vmatprep.subr.bf16.mxu1 %v8276_v49 }
 0x8a0   :  { %7721 = vmatpush3.bf16.msra.mxu0 %v8244_v24  ;;  %v5114_v24 = vshrl.u32 %v4943_v51, 16 }
 0x8a1   :  { %7722 = vmatprep.subr.bf16.mxu0 %v8245_v33 }
 0x8a2   :  { %v5116_v26 = vrot.slane %v5114_v24, 5  ;;  %7799 = vmatpush3.bf16.msra.mxu1 %v8276_v49 }
 0x8a4   :  { %7723 = vmatpush3.bf16.msra.mxu0 %v8245_v33  ;;  %v5117_v33 = vshll.u32 %v4943_v51, 16  ;;  %v5279_v51 = vrot.slane %v5277_v38, 4 }
 0x8a5   :  { %7724 = vmatprep.subr.bf16.mxu0 %v8246_v35 }
 0x8a6   :  { %v5281_v30 = vsel %vm8684_vm11, %v5279_v51, %v5280_v12 }
 0x8a8   :  { %7725 = vmatpush3.bf16.msra.mxu0 %v8246_v35  ;;  %v8262_v35 = vld [vmem:[#allocation7 + $0x5e8] sm:$0xff]  }
 0x8a9   :  { %7726 = vmatprep.subr.bf16.mxu0 %v8247_v44 }
 0x8ac   :  { %7727 = vmatpush3.bf16.msra.mxu0 %v8247_v44  ;;  %v5119_v44 = vrot.slane %v5117_v33, 6 }
 0x8ad   :  { %7732 = vmatprep.subr.bf16.mxu0 %v8249_v3 }
 0x8ae   :  { %v5120_v28 = vor.u32 %v5119_v44, %v5116_v26 }
 0x8af   :  { %7729 = vmatmul.mubr.bf16.vlgmr.msra.gmra.mrb[16].mxu0 %v6685_v40  ;;  %v5133_v40 = vrot.slane %v5131_v37, 6 }
 0x8b0   :  { %7733 = vmatpush3.bf16.msra.mxu0 %v8249_v3  ;;  %7748 = vmatprep.mubr.bf16.mxu0 %v6696_v17  ;;  %v8263_v3 = vld [vmem:[#allocation7 + $0x5f0] sm:$0xff]   ;;  %v5272_v17 = vrot.slane %v5270_v6, 4 }
 0x8b1   :  { %7734 = vmatprep.subr.bf16.mxu0 %v8250_v14 }
 0x8b4   :  { %7735 = vmatpush3.bf16.msra.mxu0 %v8250_v14  ;;  %v5126_v14 = vrot.slane %v9150_v46, 4 }
 0x8b5   :  { %7736 = vmatprep.subr.bf16.mxu0 %v8251_v63 }
 0x8b8   :  { %7737 = vmatpush3.bf16.msra.mxu0 %v8251_v63  ;;  %v5121_v63 = vrot.slane %v5120_v28, 4 }
 0x8b9   :  { %7738 = vmatprep.subr.bf16.mxu0 %v8252_v7 }
 0x8ba   :  { %v5125_v52 = vsel %vm8648_vm8, %v5121_v63, %v9150_v46  ;;  %v8270_v46 = vld [vmem:[#allocation7 + $0x628] sm:$0xff]  }
 0x8bc   :  { %7739 = vmatpush3.bf16.msra.mxu0 %v8252_v7  ;;  %v5134_v7 = vor.u32 %v5133_v40, %v5130_v31 }
 0x8bd   :  { %7740 = vmatprep.subr.bf16.mxu0 %v8253_v57 }
 0x8be   :  { %v5135_v54 = vsel %vm8648_vm8, %v5126_v14, %v5134_v7 }
 0x8bf   :  { %v6707_v58 = vcombine.low %v5125_v52, %v5135_v54 }
 0x8c0   :  { %7741 = vmatpush3.bf16.msra.mxu0 %v8253_v57  ;;  %v5262_v57 = vld [vmem:[#allocation2] sm:$0xc] }
 0x8c1   :  { %7742 = vmatprep.subr.bf16.mxu0 %v8254_v18  ;;  %v6716_v11 = vrot.slane %v5262_v57, 10 }
 0x8c3   :  { %v5271_v23 = vsel %vm8684_vm11, %v6716_v11, %v5270_v6 }
 0x8c4   :  { %7743 = vmatpush3.bf16.msra.mxu0 %v8254_v18  ;;  %v8265_v18 = vld [vmem:[#allocation7 + $0x600] sm:$0xff]  }
 0x8c5   :  { %7744 = vmatprep.subr.bf16.mxu0 %v8255_v22 }
 0x8c8   :  { %7745 = vmatpush3.bf16.msra.mxu0 %v8255_v22  ;;  %v5274_v22 = vsel %vm8684_vm11, %v5272_v17, %v5273_v19 }
 0x8c9   :  { %7746 = vmatprep.subr.bf16.mxu0 %v8256_v55  ;;  %v6718_v53 = vcombine.low %v5271_v23, %v5274_v22 }
 0x8cc   :  { %7747 = vmatpush3.bf16.msra.mxu0 %v8256_v55  ;;  %v8268_v55 = vld [vmem:[#allocation7 + $0x618] sm:$0xff]  }
 0x8cd   :  { %7752 = vmatprep.subr.bf16.mxu0 %v8257_v43 }
 0x8cf   :  { %7749 = vmatmul.mubr.bf16.vlgmr.msra.gmra.mrb[16].mxu0 %v6697_v9  ;;  %v8277_v9 = vld [vmem:[#allocation7 + $0x6a0] sm:$0xff]  }
 0x8d0   :  { %7753 = vmatpush3.bf16.msra.mxu0 %v8257_v43  ;;  %7768 = vmatprep.mubr.bf16.mxu0 %v6706_v15  ;;  %v6717_v43 = vrot.slane %v5263_v21, 10  ;;  %v8280_v15 = vld [vmem:[#allocation7 + $0x6b8] sm:$0xff]  }
 0x8d1   :  { %7754 = vmatprep.subr.bf16.mxu0 %v8258_v56  ;;  %7800 = vmatprep.subr.bf16.mxu1 %v8277_v9 }
 0x8d2   :  { %v5278_v16 = vsel %vm8684_vm11, %v6717_v43, %v5277_v38  ;;  %7801 = vmatpush3.bf16.msra.mxu1 %v8277_v9  ;;  %v6728_v9 = vld [vmem:[%s9331_s5 + $0x5] ss:$0 sm:$0xff] }
 0x8d3   :  { %v6719_v47 = vcombine.low %v5278_v16, %v5281_v30  ;;  %7802 = vmatprep.subr.bf16.mxu1 %v8278_v39 }
 0x8d4   :  { %7755 = vmatpush3.bf16.msra.mxu0 %v8258_v56  ;;  %v8279_v56 = vld [vmem:[#allocation7 + $0x6b0] sm:$0xff]  }
 0x8d5   :  { %7756 = vmatprep.subr.bf16.mxu0 %v8259_v59 }
 0x8d6   :  { %7803 = vmatpush3.bf16.msra.mxu1 %v8278_v39 }
 0x8d7   :  { %7804 = vmatprep.subr.bf16.mxu1 %v8279_v56 }
 0x8d8   :  { %7757 = vmatpush3.bf16.msra.mxu0 %v8259_v59  ;;  %v9198_v59 = vld [vmem:[#allocation7 + $0x640] sm:$0xff]  }
 0x8d9   :  { %7758 = vmatprep.subr.bf16.mxu0 %v8260_v61 }
 0x8da   :  { %7805 = vmatpush3.bf16.msra.mxu1 %v8279_v56 }
 0x8db   :  { %7806 = vmatprep.subr.bf16.mxu1 %v8280_v15 }
 0x8dc   :  { %7759 = vmatpush3.bf16.msra.mxu0 %v8260_v61 }
 0x8dd   :  { %7760 = vmatprep.subr.bf16.mxu0 %v8261_v50 }
 0x8de   :  { %7807 = vmatpush3.bf16.msra.mxu1 %v8280_v15 }
 0x8df   :  { %7812 = vmatprep.subr.bf16.mxu1 %v9198_v59 }
 0x8e0   :  { %7761 = vmatpush3.bf16.msra.mxu0 %v8261_v50 }
 0x8e1   :  { %7762 = vmatprep.subr.bf16.mxu0 %v8262_v35 }
 0x8e4   :  { %7763 = vmatpush3.bf16.msra.mxu0 %v8262_v35 }
 0x8e5   :  { %7764 = vmatprep.subr.bf16.mxu0 %v8263_v3 }
 0x8e8   :  { %7765 = vmatpush3.bf16.msra.mxu0 %v8263_v3 }
 0x8e9   :  { %7766 = vmatprep.subr.bf16.mxu0 %v8264_v36 }
 0x8ec   :  { %7767 = vmatpush3.bf16.msra.mxu0 %v8264_v36 }
 0x8ed   :  { %7772 = vmatprep.subr.bf16.mxu0 %v8265_v18 }
 0x8ef   :  { %7769 = vmatmul.mubr.bf16.vlgmr.msra.gmra.mrb[16].mxu0 %v6707_v58 }
 0x8f0   :  { %7773 = vmatpush3.bf16.msra.mxu0 %v8265_v18  ;;  %7788 = vmatprep.mubr.bf16.mxu0 %v6718_v53 }
 0x8f1   :  { %7774 = vmatprep.subr.bf16.mxu0 %v8266_v25 }
 0x8f4   :  { %7775 = vmatpush3.bf16.msra.mxu0 %v8266_v25 }
 0x8f5   :  { %7776 = vmatprep.subr.bf16.mxu0 %v8267_v1 }
 0x8f8   :  { %7777 = vmatpush3.bf16.msra.mxu0 %v8267_v1 }
 0x8f9   :  { %7778 = vmatprep.subr.bf16.mxu0 %v8268_v55 }
 0x8fc   :  { %7779 = vmatpush3.bf16.msra.mxu0 %v8268_v55 }
 0x8fd   :  { %7780 = vmatprep.subr.bf16.mxu0 %v8269_v29 }
 0x900   :  { %7781 = vmatpush3.bf16.msra.mxu0 %v8269_v29 }
 0x901   :  { %7782 = vmatprep.subr.bf16.mxu0 %v8270_v46 }
 0x904   :  { %7783 = vmatpush3.bf16.msra.mxu0 %v8270_v46 }
 0x905   :  { %7784 = vmatprep.subr.bf16.mxu0 %v8271_v60 }
 0x908   :  { %7785 = vmatpush3.bf16.msra.mxu0 %v8271_v60 }
 0x909   :  { %7786 = vmatprep.subr.bf16.mxu0 %v8272_v27 }
 0x90c   :  { %7787 = vmatpush3.bf16.msra.mxu0 %v8272_v27 }
 0x90f   :  { %7789 = vmatmul.mubr.bf16.vlgmr.msra.gmra.mrb[16].mxu0 %v6719_v47 }
 0x9e2   :  { %v7790_v61 = vpop.f32.mrb[16].mxu0 }
 0x9e3   :  { %v5389_v50 = vpop.f32.mrb[17].mxu0 }
 0x9e4   :  { %v7791_v24 = vpop.f32.mrb[18].mxu0 }
 0x9e5   :  { %v5417_v33 = vadd.f32 %v7791_v24, %v7790_v61  ;;  %v5392_v35 = vpop.f32.mrb[19].mxu0 }
 0x9e6   :  { %v5410_v62 = vadd.f32 %v5392_v35, %v5389_v50 }
 0x9e7   :  { %v5418_v26 = vrot.slane %v5417_v33, 4 }
 0x9e8   :  { %v5411_v44 = vrot.slane %v5410_v62, 4 }
 0x9e9   :  { %v5419_v2 = vadd.f32 %v5418_v26, %v5417_v33 }
 0x9ea   :  { %v5412_v37 = vadd.f32 %v5411_v44, %v5410_v62 }
 0x9eb   :  { %v5420_v3 = vrot.slane %v5419_v2, 2 }
 0x9ec   :  { %v5413_v6 = vrot.slane %v5412_v37, 2 }
 0x9ed   :  { %v5421_v28 = vadd.f32 %v5420_v3, %v5419_v2 }
 0x9ee   :  { %v5414_v31 = vadd.f32 %v5413_v6, %v5412_v37 }
 0x9ef   :  { %v5422_v40 = vrot.slane %v5421_v28, 1 }
 0x9f0   :  { %v5415_v36 = vrot.slane %v5414_v31, 1 }
 0x9f1   :  { %v5423_v14 = vadd.f32 %v5422_v40, %v5421_v28 }
 0x9f2   :  { %v5416_v17 = vadd.f32 %v5415_v36, %v5414_v31 }
 0x9f4   :  { %v5424_v63 = vadd.f32 %v5423_v14, %v5416_v17 }
 0x9f6   :  { %v5425_v7 = vmul.f32 0.03125, %v5424_v63 }
 0x9f8   :  { %v5426_v57 = vsub.f32 %v5389_v50, %v5425_v7  ;;  %v5427_v18 = vsub.f32 %v5392_v35, %v5425_v7  ;;  %v5428_v19 = vsub.f32 %v7790_v61, %v5425_v7  ;;  %v5429_v54 = vsub.f32 %v7791_v24, %v5425_v7 }
 0x9fa   :  { %v5430_v11 = vmul.f32 %v5426_v57, %v5426_v57  ;;  %v5431_v22 = vmul.f32 %v5427_v18, %v5427_v18  ;;  %v5432_v52 = vmul.f32 %v5428_v19, %v5428_v19  ;;  %v5433_v58 = vmul.f32 %v5429_v54, %v5429_v54 }
 0x9fc   :  { %v5434_v23 = vadd.f32 %v5431_v22, %v5430_v11  ;;  %v5441_v25 = vadd.f32 %v5433_v58, %v5432_v52 }
 0x9fe   :  { %v5435_v53 = vrot.slane %v5434_v23, 4  ;;  %v5442_v1 = vrot.slane %v5441_v25, 4 }
 0xa00   :  { %v5436_v55 = vadd.f32 %v5435_v53, %v5434_v23  ;;  %v5443_v29 = vadd.f32 %v5442_v1, %v5441_v25 }
 0xa02   :  { %v5437_v46 = vrot.slane %v5436_v55, 2  ;;  %v5444_v60 = vrot.slane %v5443_v29, 2 }
 0xa04   :  { %v5438_v38 = vadd.f32 %v5437_v46, %v5436_v55  ;;  %v5445_v27 = vadd.f32 %v5444_v60, %v5443_v29 }
 0xa06   :  { %v5439_v51 = vrot.slane %v5438_v38, 1  ;;  %v5446_v21 = vrot.slane %v5445_v27, 1 }
 0xa08   :  { %v5440_v12 = vadd.f32 %v5439_v51, %v5438_v38  ;;  %v5447_v43 = vadd.f32 %v5446_v21, %v5445_v27 }
 0xa0a   :  { %v5448_v30 = vadd.f32 %v5447_v43, %v5440_v12 }
 0xa0c   :  { %v5449_v16 = vmul.f32 0.03125, %v5448_v30 }
 0xa0e   :  { %v5450_v47 = vadd.f32 1e-05, %v5449_v16 }
 0xa10   :  { %8327 = vrsqrt.f32 %v5450_v47 }
 0xa1a   :  { %v8328_v13 = vpop.eup %8327 }
 0xa1b   :  { %v5452_v48 = vmul.f32 %v8328_v13, %v5408_v8 }
 0xa1d   :  { %v5456_v49 = vrot.slane %v5452_v48, %v8726_v0 }
 0xa1f   :  { %v5457_v39 = vmul.f32 %v5456_v49, %v5426_v57  ;;  %v5458_v56 = vmul.f32 %v5456_v49, %v5427_v18  ;;  %v5459_v15 = vmul.f32 %v5456_v49, %v5428_v19  ;;  %v5460_v61 = vmul.f32 %v5456_v49, %v5429_v54 }
 0xa21   :  { %v5465_v50 = vadd.f32 %v6728_v9, %v5457_v39  ;;  %v5466_v24 = vadd.f32 %v6728_v9, %v5458_v56  ;;  %v5467_v33 = vadd.f32 %v6728_v9, %v5459_v15  ;;  %v5468_v35 = vadd.f32 %v6728_v9, %v5460_v61 }
 0xa23   :  { %v6808_v62 = vpack.c.bf16 %v5465_v50, %v5465_v50  ;;  %v6809_v26 = vpack.c.bf16 %v5466_v24, %v5466_v24  ;;  %v6810_v44 = vpack.c.bf16 %v5467_v33, %v5467_v33  ;;  %v6811_v2 = vpack.c.bf16 %v5468_v35, %v5468_v35 }
 0xa25   :  { %v5481_v37 = vrot.slane %v6808_v62, 7  ;;  %v5483_v3 = vrot.slane %v6809_v26, 7  ;;  %v5486_v6 = vrot.slane %v6810_v44, 7  ;;  %v5488_v28 = vrot.slane %v6811_v2, 7 }
 0xa27   :  { %v5482_v31 = vrot.slane %v5481_v37, 4  ;;  %v5485_v40 = vrot.slane %v5483_v3, 4  ;;  %v5487_v36 = vrot.slane %v5486_v6, 4  ;;  %v5490_v14 = vrot.slane %v5488_v28, 4  ;;  %5497 = vst [vmem:[#allocation2] sm:$0xe] %v5481_v37 }
 0xa28   :  { %5500 = vst [vmem:[#allocation2 + $0xc] sm:$0xe] %v5486_v6 }
 0xa29   :  { %v5484_v17 = vsel %vm8744_vm14, %v5482_v31, %v5483_v3  ;;  %v5489_v63 = vsel %vm8744_vm14, %v5487_v36, %v5488_v28  ;;  %5499 = vst [vmem:[#allocation2 + $0x8] sm:$0x1] %v5485_v40  ;;  %5502 = vst [vmem:[#allocation2 + $0x14] sm:$0x1] %v5490_v14  ;;  %v8283_v28 = vld [vmem:[#allocation7 + $0x648] sm:$0xff]  }
 0xa2a   :  { %5498 = vst [vmem:[#allocation2 + $0x4] sm:$0xf] %v5484_v17  ;;  %5501 = vst [vmem:[#allocation2 + $0x10] sm:$0xf] %v5489_v63 }
 0xa2e   :  { %v5503_v7 = vld [vmem:[#allocation2] sm:$0xf] }
 0xa2f   :  { %v9212_v57 = vld [vmem:[#allocation2 + $0xc] sm:$0xf]  ;;  %v5527_v18 = vshrl.u32 %v5503_v7, 16  ;;  %v5530_v19 = vshll.u32 %v5503_v7, 16 }
 0xa30   :  { %v5551_v54 = vshrl.u32 %v9212_v57, 16  ;;  %v5554_v11 = vshll.u32 %v9212_v57, 16  ;;  %v9216_v22 = vld [vmem:[#allocation2 + $0x8] sm:$0x1]  ;;  %v5525_v52 = vld [vmem:[#allocation2 + $0x14] sm:$0x1] }
 0xa31   :  { %v9218_v58 = vld [vmem:[#allocation2 + $0x4] sm:$0xf]  ;;  %v5529_v34 = vrot.slane %v5527_v18, 4  ;;  %v5532_v23 = vrot.slane %v5530_v19, 5  ;;  %v9222_v55 = vld [vmem:[#allocation2 + $0x10] sm:$0xf] }
 0xa32   :  { %v5553_v25 = vrot.slane %v5551_v54, 4  ;;  %v5536_v53 = vshll.u32 %v9218_v58, 16  ;;  %v5540_v1 = vshrl.u32 %v9218_v58, 16  ;;  %v5556_v29 = vrot.slane %v5554_v11, 5  ;;  %v9227_v47 = vld [vmem:[#allocation2 + $0xc] sm:$0xe] }
 0xa33   :  { %v5533_v46 = vor.u32 %v5532_v23, %v5529_v34  ;;  %v5560_v60 = vshll.u32 %v9222_v55, 16  ;;  %v5564_v38 = vshrl.u32 %v9222_v55, 16  ;;  %v5546_v21 = vshll.u32 %v9216_v22, 16  ;;  %v8284_v18 = vld [vmem:[#allocation7 + $0x650] sm:$0xff]   ;;  %v8285_v54 = vld [vmem:[#allocation7 + $0x658] sm:$0xff]   ;;  %v8287_v11 = vld [vmem:[#allocation7 + $0x668] sm:$0xff]  }
 0xa34   :  { %v5538_v27 = vrot.slane %v5536_v53, 5  ;;  %v5542_v51 = vrot.slane %v5540_v1, 4  ;;  %v5557_v12 = vor.u32 %v5556_v29, %v5553_v25  ;;  %v5570_v16 = vshll.u32 %v5525_v52, 16  ;;  %v8289_v34 = vld [vmem:[#allocation7 + $0x678] sm:$0xff]   ;;  %v5805_v25 = vld [vmem:[#allocation2] sm:$0xe] }
 0xa35   :  { %v5562_v43 = vrot.slane %v5560_v60, 5  ;;  %v5566_v30 = vrot.slane %v5564_v38, 4  ;;  %v5534_v8 = vrot.slane %v5533_v46, 4  ;;  %v5820_v9 = vrot.slane %v9222_v55, 5  ;;  %v9263_v10 = vld [vmem:[#allocation2 + $0x8] sm:$0x3] }
 0xa36   :  { %v5543_v13 = vor.u32 %v5542_v51, %v5538_v27  ;;  %v5558_v48 = vrot.slane %v5557_v12, 4  ;;  %v5548_v56 = vrot.slane %v5546_v21, 5  ;;  %v6754_v15 = vrot.slane %v9227_v47, 9  ;;  %v8293_v21 = vld [vmem:[#allocation7 + $0x6d0] sm:$0xff]   ;;  %v8295_v12 = vld [vmem:[#allocation7 + $0x6e0] sm:$0xff]  }
 0xa37   :  { %v5567_v49 = vor.u32 %v5566_v30, %v5562_v43  ;;  %v5572_v50 = vrot.slane %v5570_v16, 5  ;;  %v5822_v24 = vrot.slane %v5820_v9, 4  ;;  %v5823_v33 = vrot.slane %v5525_v52, 5  ;;  %v8297_v16 = vld [vmem:[#allocation7 + $0x6f0] sm:$0xff]  }
 0xa38   :  { %v5544_v39 = vrot.slane %v5543_v13, 4  ;;  %v5539_v35 = vsel %vm8621_vm7, %v5534_v8, %v5538_v27  ;;  %v5563_v26 = vsel %vm8621_vm7, %v5558_v48, %v5562_v43  ;;  %v9241_v37 = vsel %vm8531_vm2, %v6754_v15, %v5820_v9  ;;  %v8292_v27 = vld [vmem:[#allocation7 + $0x6c8] sm:$0xff]   ;;  %v8298_v9 = vld [vmem:[#allocation7 + $0x6f8] sm:$0xff]  }
 0xa39   :  { %v5568_v61 = vrot.slane %v5567_v49, 4  ;;  %v9245_v3 = vsel %vm8531_vm2, %v5822_v24, %v5823_v33  ;;  %v6743_v40 = vcombine.low %v5503_v7, %v9218_v58  ;;  %v5962_v36 = vrot.slane %v5540_v1, 5  ;;  %v8286_v7 = vld [vmem:[#allocation7 + $0x660] sm:$0xff]  }
 0xa3a   :  { %v5549_v62 = vsel %vm8621_vm7, %v5544_v39, %v5548_v56  ;;  %v6756_v31 = vcombine.low %v9241_v37, %v9245_v3  ;;  %v5963_v14 = vrot.slane %v5536_v53, 6  ;;  %v5985_v20 = vrot.slane %v5564_v38, 5  ;;  %v8291_v53 = vld [vmem:[#allocation7 + $0x6c0] sm:$0xff]  }
 0xa3b   :  { %v6733_v44 = vcombine.low %v5539_v35, %v5549_v62  ;;  %v5573_v2 = vsel %vm8621_vm7, %v5568_v61, %v5572_v50  ;;  %v5986_v63 = vrot.slane %v5560_v60, 6  ;;  %v5813_v52 = vrot.slane %v9218_v58, 5  ;;  %v8299_v50 = vld [vmem:[#allocation7 + $0x700] sm:$0xff]  }
 0xa3c   :  { %v6734_v6 = vcombine.low %v5563_v26, %v5573_v2  ;;  %v9251_v17 = vor.u32 %v5963_v14, %v5962_v36  ;;  %v5816_v1 = vrot.slane %v9216_v22, 5  ;;  %v6753_v29 = vrot.slane %v5805_v25, 9  ;;  %v8294_v22 = vld [vmem:[#allocation7 + $0x6d8] sm:$0xff]   ;;  %v8300_v26 = vld [vmem:[#allocation7 + $0x708] sm:$0xff]   ;;  %v8301_v2 = vld [vmem:[#allocation7 + $0x710] sm:$0xff]  }
 0xa3d   :  { %7808 = vmatprep.mubr.bf16.mxu1 %v6733_v44  ;;  %v9253_v19 = vor.u32 %v5986_v63, %v5985_v20  ;;  %v5815_v23 = vrot.slane %v5813_v52, 4  ;;  %v6744_v60 = vcombine.low %v9212_v57, %v9222_v55  ;;  %v8296_v57 = vld [vmem:[#allocation7 + $0x6e8] sm:$0xff]   ;;  %v5954_v43 = vshrl.u32 %v5805_v25, 16  ;;  %v9278_v20 = vld [vmem:[#allocation2 + $0x14] sm:$0x3]  ;;  %v8305_v63 = vld [vmem:[#allocation7 + $0x730] sm:$0xff]  }
 0xa3e   :  { %7809 = vmatmul.mubr.bf16.vlgmr.msra.gmra.mrb[12].mxu1 %v6734_v6  ;;  %v5814_v38 = vsel %vm8531_vm2, %v6753_v29, %v5813_v52  ;;  %v5957_v30 = vshll.u32 %v5805_v25, 16  ;;  %v5968_v48 = vshrl.u32 %v9263_v10, 16  ;;  %v5971_v49 = vshll.u32 %v9263_v10, 16  ;;  %v8302_v6 = vld [vmem:[#allocation7 + $0x718] sm:$0xff]   ;;  %v8304_v14 = vld [vmem:[#allocation7 + $0x728] sm:$0xff]  }
 0xa3f   :  { %7813 = vmatpush3.bf16.msra.mxu1 %v9198_v59  ;;  %7828 = vmatprep.mubr.bf16.mxu1 %v6743_v40  ;;  %v8288_v59 = vld [vmem:[#allocation7 + $0x670] sm:$0xff]   ;;  %v5817_v46 = vsel %vm8531_vm2, %v5815_v23, %v5816_v1  ;;  %v5956_v8 = vrot.slane %v5954_v43, 5  ;;  %v5966_v61 = vrot.slane %v9251_v17, 4  ;;  %v5977_v40 = vshrl.u32 %v9227_v47, 16  ;;  %v6125_v25 = vld [vmem:[#allocation2] sm:$0xc] }
 0xa40   :  { %7814 = vmatprep.subr.bf16.mxu1 %v8283_v28  ;;  %v6755_v51 = vcombine.low %v5814_v38, %v5817_v46  ;;  %v5959_v13 = vrot.slane %v5957_v30, 6  ;;  %v5970_v56 = vrot.slane %v5968_v48, 5  ;;  %v5973_v15 = vrot.slane %v5971_v49, 6  ;;  %v8314_v30 = vld [vmem:[#allocation7 + $0x778] sm:$0xff]  }
 0xa41   :  { %v5980_v36 = vshll.u32 %v9227_v47, 16  ;;  %v5979_v37 = vrot.slane %v5977_v40, 5  ;;  %v8306_v47 = vld [vmem:[#allocation7 + $0x738] sm:$0xff]   ;;  %v6136_v1 = vrot.slane %v9263_v10, 6  ;;  %v6775_v29 = vrot.slane %v6125_v25, 10 }
 0xa42   :  { %v5960_v39 = vor.u32 %v5959_v13, %v5956_v8  ;;  %v5974_v33 = vor.u32 %v5973_v15, %v5970_v56  ;;  %v6140_v43 = vrot.slane %v9222_v55, 6  ;;  %v6143_v8 = vrot.slane %v9278_v20, 6 }
 0xa43   :  { %7815 = vmatpush3.bf16.msra.mxu1 %v8283_v28  ;;  %v8303_v28 = vld [vmem:[#allocation7 + $0x720] sm:$0xff]   ;;  %v5982_v3 = vrot.slane %v5980_v36, 6 }
 0xa44   :  { %7816 = vmatprep.subr.bf16.mxu1 %v8284_v18  ;;  %v5961_v24 = vrot.slane %v5960_v39, 4  ;;  %v5975_v35 = vsel %vm8648_vm8, %v5966_v61, %v5974_v33  ;;  %v6142_v10 = vrot.slane %v6140_v43, 4 }
 0xa46   :  { %v5965_v62 = vsel %vm8648_vm8, %v5961_v24, %v9251_v17  ;;  %v5994_v17 = vshll.u32 %v9278_v20, 16  ;;  %v6144_v48 = vsel %vm8684_vm11, %v6142_v10, %v6143_v8 }
 0xa47   :  { %7817 = vmatpush3.bf16.msra.mxu1 %v8284_v18  ;;  %v6765_v44 = vcombine.low %v5965_v62, %v5975_v35  ;;  %v6133_v18 = vrot.slane %v9218_v58, 6 }
 0xa48   :  { %7818 = vmatprep.subr.bf16.mxu1 %v8285_v54 }
 0xa49   :  { %v6135_v52 = vrot.slane %v6133_v18, 4 }
 0xa4b   :  { %7819 = vmatpush3.bf16.msra.mxu1 %v8285_v54  ;;  %v5983_v54 = vor.u32 %v5982_v3, %v5979_v37  ;;  %v6137_v46 = vsel %vm8684_vm11, %v6135_v52, %v6136_v1 }
 0xa4c   :  { %7820 = vmatprep.subr.bf16.mxu1 %v8286_v7 }
 0xa4f   :  { %7821 = vmatpush3.bf16.msra.mxu1 %v8286_v7 }
 0xa50   :  { %7822 = vmatprep.subr.bf16.mxu1 %v8287_v11 }
 0xa53   :  { %7823 = vmatpush3.bf16.msra.mxu1 %v8287_v11  ;;  %v5996_v11 = vrot.slane %v5994_v17, 6 }
 0xa54   :  { %7824 = vmatprep.subr.bf16.mxu1 %v8288_v59 }
 0xa57   :  { %7825 = vmatpush3.bf16.msra.mxu1 %v8288_v59  ;;  %v5989_v59 = vrot.slane %v9253_v19, 4 }
 0xa58   :  { %7826 = vmatprep.subr.bf16.mxu1 %v8289_v34 }
 0xa5b   :  { %7827 = vmatpush3.bf16.msra.mxu1 %v8289_v34  ;;  %v5984_v34 = vrot.slane %v5983_v54, 4 }
 0xa5c   :  { %7832 = vmatprep.subr.bf16.mxu1 %v8291_v53 }
 0xa5e   :  { %7829 = vmatmul.mubr.bf16.vlgmr.msra.gmra.mrb[12].mxu1 %v6744_v60  ;;  %v5988_v60 = vsel %vm8648_vm8, %v5984_v34, %v9253_v19  ;;  %v8313_v19 = vld [vmem:[#allocation7 + $0x770] sm:$0xff]  }
 0xa5f   :  { %7833 = vmatpush3.bf16.msra.mxu1 %v8291_v53  ;;  %7848 = vmatprep.mubr.bf16.mxu1 %v6755_v51  ;;  %v8307_v53 = vld [vmem:[#allocation7 + $0x740] sm:$0xff]   ;;  %v8308_v51 = vld [vmem:[#allocation7 + $0x748] sm:$0xff]  }
 0xa60   :  { %7834 = vmatprep.subr.bf16.mxu1 %v8292_v27 }
 0xa63   :  { %7835 = vmatpush3.bf16.msra.mxu1 %v8292_v27  ;;  %v6134_v27 = vsel %vm8684_vm11, %v6775_v29, %v6133_v18 }
 0xa64   :  { %7836 = vmatprep.subr.bf16.mxu1 %v8293_v21 }
 0xa67   :  { %7837 = vmatpush3.bf16.msra.mxu1 %v8293_v21  ;;  %v6777_v21 = vcombine.low %v6134_v27, %v6137_v46 }
 0xa68   :  { %7838 = vmatprep.subr.bf16.mxu1 %v8294_v22 }
 0xa6b   :  { %7839 = vmatpush3.bf16.msra.mxu1 %v8294_v22  ;;  %v8309_v22 = vld [vmem:[#allocation7 + $0x750] sm:$0xff]  }
 0xa6c   :  { %7840 = vmatprep.subr.bf16.mxu1 %v8295_v12 }
 0xa6f   :  { %7841 = vmatpush3.bf16.msra.mxu1 %v8295_v12  ;;  %v8310_v12 = vld [vmem:[#allocation7 + $0x758] sm:$0xff]  }
 0xa70   :  { %7842 = vmatprep.subr.bf16.mxu1 %v8296_v57 }
 0xa73   :  { %7843 = vmatpush3.bf16.msra.mxu1 %v8296_v57  ;;  %v8311_v57 = vld [vmem:[#allocation7 + $0x760] sm:$0xff]  }
 0xa74   :  { %7844 = vmatprep.subr.bf16.mxu1 %v8297_v16 }
 0xa77   :  { %7845 = vmatpush3.bf16.msra.mxu1 %v8297_v16  ;;  %v6126_v16 = vld [vmem:[#allocation2 + $0xc] sm:$0xc] }
 0xa78   :  { %7846 = vmatprep.subr.bf16.mxu1 %v8298_v9  ;;  %v6776_v13 = vrot.slane %v6126_v16, 10 }
 0xa7a   :  { %v6141_v49 = vsel %vm8684_vm11, %v6776_v13, %v6140_v43  ;;  %v6787_v43 = vld [vmem:[%s9331_s5 + $0x6] ss:$0 sm:$0xff] }
 0xa7b   :  { %7847 = vmatpush3.bf16.msra.mxu1 %v8298_v9  ;;  %v6778_v9 = vcombine.low %v6141_v49, %v6144_v48 }
 0xa7c   :  { %7852 = vmatprep.subr.bf16.mxu1 %v8299_v50 }
 0xa7e   :  { %7849 = vmatmul.mubr.bf16.vlgmr.msra.gmra.mrb[12].mxu1 %v6756_v31  ;;  %v5991_v31 = vshrl.u32 %v9278_v20, 16 }
 0xa7f   :  { %7853 = vmatpush3.bf16.msra.mxu1 %v8299_v50  ;;  %7868 = vmatprep.mubr.bf16.mxu1 %v6765_v44 }
 0xa80   :  { %7854 = vmatprep.subr.bf16.mxu1 %v8300_v26  ;;  %v5993_v7 = vrot.slane %v5991_v31, 5 }
 0xa82   :  { %v5997_v23 = vor.u32 %v5996_v11, %v5993_v7 }
 0xa83   :  { %7855 = vmatpush3.bf16.msra.mxu1 %v8300_v26 }
 0xa84   :  { %7856 = vmatprep.subr.bf16.mxu1 %v8301_v2  ;;  %v5998_v58 = vsel %vm8648_vm8, %v5989_v59, %v5997_v23 }
 0xa85   :  { %v6766_v38 = vcombine.low %v5988_v60, %v5998_v58 }
 0xa87   :  { %7857 = vmatpush3.bf16.msra.mxu1 %v8301_v2 }
 0xa88   :  { %7858 = vmatprep.subr.bf16.mxu1 %v8302_v6 }
 0xa8b   :  { %7859 = vmatpush3.bf16.msra.mxu1 %v8302_v6 }
 0xa8c   :  { %7860 = vmatprep.subr.bf16.mxu1 %v8303_v28 }
 0xa8f   :  { %7861 = vmatpush3.bf16.msra.mxu1 %v8303_v28 }
 0xa90   :  { %7862 = vmatprep.subr.bf16.mxu1 %v8304_v14 }
 0xa93   :  { %7863 = vmatpush3.bf16.msra.mxu1 %v8304_v14 }
 0xa94   :  { %7864 = vmatprep.subr.bf16.mxu1 %v8305_v63 }
 0xa97   :  { %7865 = vmatpush3.bf16.msra.mxu1 %v8305_v63 }
 0xa98   :  { %7866 = vmatprep.subr.bf16.mxu1 %v8306_v47 }
 0xa9b   :  { %7867 = vmatpush3.bf16.msra.mxu1 %v8306_v47 }
 0xa9c   :  { %7872 = vmatprep.subr.bf16.mxu1 %v8307_v53 }
 0xa9e   :  { %7869 = vmatmul.mubr.bf16.vlgmr.msra.gmra.mrb[12].mxu1 %v6766_v38 }
 0xa9f   :  { %7873 = vmatpush3.bf16.msra.mxu1 %v8307_v53  ;;  %7888 = vmatprep.mubr.bf16.mxu1 %v6777_v21 }
 0xaa0   :  { %7874 = vmatprep.subr.bf16.mxu1 %v8308_v51 }
 0xaa3   :  { %7875 = vmatpush3.bf16.msra.mxu1 %v8308_v51 }
 0xaa4   :  { %7876 = vmatprep.subr.bf16.mxu1 %v8309_v22 }
 0xaa7   :  { %7877 = vmatpush3.bf16.msra.mxu1 %v8309_v22  ;;  %v6271_v22 = vld [vmem:[%s9330_s4 + $0x6] sm:$0x1]  ;;  %s8431_s4 = smov [#allocation10]  }
 0xaa8   :  { %7878 = vmatprep.subr.bf16.mxu1 %v8310_v12 }
 0xaab   :  { %7879 = vmatpush3.bf16.msra.mxu1 %v8310_v12 }
 0xaac   :  { %7880 = vmatprep.subr.bf16.mxu1 %v8311_v57 }
 0xaaf   :  { %7881 = vmatpush3.bf16.msra.mxu1 %v8311_v57 }
 0xab0   :  { %7882 = vmatprep.subr.bf16.mxu1 %v8312_v41 }
 0xab3   :  { %7883 = vmatpush3.bf16.msra.mxu1 %v8312_v41  ;;  %v6378_v41 = vld [vmem:[%s9333_s7] ss:$0 sm:$0xff]  ;;  %s6353_s7 = sshll.u32 %s8431_s4, 4  ;;  %s6354_s7 = int_to_ptr.vmem [resolvable:$true] %s6353_s7 }
 0xab4   :  { %7884 = vmatprep.subr.bf16.mxu1 %v8313_v19  ;;  %v287_v13 = vadd.f32 %v6378_v41, %v8729_v5  ;;  %v288_v48 = vadd.f32 %v6378_v41, %v8731_v4  ;;  %v289_v49 = vadd.f32 %v6378_v41, %v8733_v45  ;;  %s8397_s5 = scalar_lea.vmem %s6354_s7, 512  ;;  %p8402_p11 = scmp.lt.s32.totalorder %s6354_s7, %s6354_s7 }
 0xab5   :  { %p8398_p10 = scmp.ne.s32.totalorder %s6354_s7, %s8397_s5  ;;  %p8403_p12 = scmp.lt.s32.totalorder %s8397_s5, %s8397_s5 }
 0xab7   :  { %7885 = vmatpush3.bf16.msra.mxu1 %v8313_v19  ;;  %p8404_p13 = por %p8403_p12, %p8402_p11 }
 0xab8   :  { %7886 = vmatprep.subr.bf16.mxu1 %v8314_v30 }
 0xab9   :  { %p8405_p0 = pnand %p8404_p13, %p8398_p10 }
 0xabb   :  { %7887 = vmatpush3.bf16.msra.mxu1 %v8314_v30 }
 0xabe   :  { %7889 = vmatmul.mubr.bf16.vlgmr.msra.gmra.mrb[12].mxu1 %v6778_v9  ;;  %v290_v9 = vadd.f32 %v6378_v41, %v8735_v42 }
 0xb91   :  { %v7890_v55 = vpop.f32.mrb[12].mxu1 }
 0xb92   :  { %v6252_v39 = vpop.f32.mrb[13].mxu1 }
 0xb93   :  { %v7891_v56 = vpop.f32.mrb[14].mxu1 }
 0xb94   :  { %v6280_v15 = vadd.f32 %v7891_v56, %v7890_v55  ;;  %v6255_v61 = vpop.f32.mrb[15].mxu1 }
 0xb95   :  { %v6273_v50 = vadd.f32 %v6255_v61, %v6252_v39 }
 0xb96   :  { %v6281_v24 = vrot.slane %v6280_v15, 4 }
 0xb97   :  { %v6274_v33 = vrot.slane %v6273_v50, 4 }
 0xb98   :  { %v6282_v35 = vadd.f32 %v6281_v24, %v6280_v15 }
 0xb99   :  { %v6275_v62 = vadd.f32 %v6274_v33, %v6273_v50 }
 0xb9a   :  { %v6283_v26 = vrot.slane %v6282_v35, 2 }
 0xb9b   :  { %v6276_v44 = vrot.slane %v6275_v62, 2 }
 0xb9c   :  { %v6284_v2 = vadd.f32 %v6283_v26, %v6282_v35 }
 0xb9d   :  { %v6277_v6 = vadd.f32 %v6276_v44, %v6275_v62 }
 0xb9e   :  { %v6285_v28 = vrot.slane %v6284_v2, 1 }
 0xb9f   :  { %v6278_v40 = vrot.slane %v6277_v6, 1 }
 0xba0   :  { %v6286_v32 = vadd.f32 %v6285_v28, %v6284_v2 }
 0xba1   :  { %v6279_v36 = vadd.f32 %v6278_v40, %v6277_v6 }
 0xba3   :  { %v6287_v14 = vadd.f32 %v6286_v32, %v6279_v36 }
 0xba5   :  { %v6288_v20 = vmul.f32 0.03125, %v6287_v14 }
 0xba7   :  { %v6289_v37 = vsub.f32 %v6252_v39, %v6288_v20  ;;  %v6290_v3 = vsub.f32 %v6255_v61, %v6288_v20  ;;  %v6291_v31 = vsub.f32 %v7890_v55, %v6288_v20  ;;  %v6292_v17 = vsub.f32 %v7891_v56, %v6288_v20 }
 0xba9   :  { %v6293_v63 = vmul.f32 %v6289_v37, %v6289_v37  ;;  %v6294_v18 = vmul.f32 %v6290_v3, %v6290_v3  ;;  %v6295_v54 = vmul.f32 %v6291_v31, %v6291_v31  ;;  %v6296_v7 = vmul.f32 %v6292_v17, %v6292_v17 }
 0xbab   :  { %v6297_v11 = vadd.f32 %v6294_v18, %v6293_v63  ;;  %v6304_v47 = vadd.f32 %v6296_v7, %v6295_v54 }
 0xbad   :  { %v6298_v59 = vrot.slane %v6297_v11, 4  ;;  %v6305_v52 = vrot.slane %v6304_v47, 4 }
 0xbaf   :  { %v6299_v34 = vadd.f32 %v6298_v59, %v6297_v11  ;;  %v6306_v23 = vadd.f32 %v6305_v52, %v6304_v47 }
 0xbb1   :  { %v6300_v25 = vrot.slane %v6299_v34, 2  ;;  %v6307_v53 = vrot.slane %v6306_v23, 2 }
 0xbb3   :  { %v6301_v1 = vadd.f32 %v6300_v25, %v6299_v34  ;;  %v6308_v58 = vadd.f32 %v6307_v53, %v6306_v23 }
 0xbb5   :  { %v6302_v29 = vrot.slane %v6301_v1, 1  ;;  %v6309_v46 = vrot.slane %v6308_v58, 1 }
 0xbb7   :  { %v6303_v60 = vadd.f32 %v6302_v29, %v6301_v1  ;;  %v6310_v38 = vadd.f32 %v6309_v46, %v6308_v58 }
 0xbb9   :  { %v6311_v27 = vadd.f32 %v6310_v38, %v6303_v60 }
 0xbbb   :  { %v6312_v51 = vmul.f32 0.03125, %v6311_v27 }
 0xbbd   :  { %v6313_v21 = vadd.f32 1e-05, %v6312_v51 }
 0xbbf   :  { %8329 = vrsqrt.f32 %v6313_v21 }
 0xbc9   :  { %v8330_v12 = vpop.eup %8329 }
 0xbca   :  { %v6315_v57 = vmul.f32 %v8330_v12, %v6271_v22 }
 0xbcc   :  { %v6319_v19 = vrot.slane %v6315_v57, %v8726_v0 }
 0xbce   :  { %v6320_v30 = vmul.f32 %v6319_v19, %v6289_v37  ;;  %v6321_v10 = vmul.f32 %v6319_v19, %v6290_v3  ;;  %v6322_v16 = vmul.f32 %v6319_v19, %v6291_v31  ;;  %v6323_v8 = vmul.f32 %v6319_v19, %v6292_v17 }
 0xbd0   :  { %v6328_v55 = vadd.f32 %v6787_v43, %v6320_v30  ;;  %v6329_v39 = vadd.f32 %v6787_v43, %v6321_v10  ;;  %v6330_v56 = vadd.f32 %v6787_v43, %v6322_v16  ;;  %v6331_v0 = vadd.f32 %v6787_v43, %v6323_v8 }
 0xbd2   :  { %v6336_v15 = vadd.f32 %v6328_v55, %v287_v13  ;;  %v6337_v61 = vadd.f32 %v6329_v39, %v288_v48  ;;  %v6338_v50 = vadd.f32 %v6330_v56, %v289_v49  ;;  %v6339_v24 = vadd.f32 %v6331_v0, %v290_v9 }
 0xbd4   :  { %v6340_v33 = vmax.f32 %v6336_v15, 0.0  ;;  %v6341_v35 = vmax.f32 %v6337_v61, 0.0  ;;  %v6342_v62 = vmax.f32 %v6338_v50, 0.0  ;;  %v6343_v5 = vmax.f32 %v6339_v24, 0.0 }
 0xbd6   :  { %6345 = vst [vmem:[#allocation10 + $0x8] sm:$0xff] %v6341_v35  ;;  %6344 = vst [vmem:[#allocation10] sm:$0xff] %v6340_v33 }
 0xbd7   :  { %6346 = vst [vmem:[#allocation10 + $0x10] sm:$0xff] %v6342_v62  ;;  %6347 = vst [vmem:[#allocation10 + $0x18] sm:$0xff] %v6343_v5 }
 0xbd8   :  { %8408 = shalt.err (!%p8405_p0)
}
 0xbd9   :  { %s8409_s12 = scalar_lea.hbm %s9334_s8, 512 }
 0xbda   :  { %p8410_p1 = scmp.ne.s32.totalorder %s9334_s8, %s8409_s12  ;;  %p8413_p2 = scmp.lt.u32.totalorder %s8409_s12, %s9334_s8 }
 0xbdc   :  { %p8415_p3 = pnand %p8413_p2, %p8410_p1 }
 0xbde   :  { %8418 = shalt.err (!%p8415_p3)
}
 0xbdf   :  { %s8432_s19 = smov 128   ;;  %s8433_s20 = smov 8  }
 0xbe0   :  { %6359 = dma.vmem_to_hbm [thread:$0]  %s6354_s7, 512, %s9334_s8, [#allocation6], %s8432_s19, %s8432_s19, %s8433_s20  }
 0xbe1   :  { %8423 = dma.done.wait [#allocation6], 512  }
 0xbe2   :  { %8424 = vsyncadd [#allocation6], 4294966784 }
 0xbe3   :  { %6363 = vsyncpa [#allocation5], 1 }
 0xbe4   :  { %6364 = vsyncpa [#allocation8], 1 }
 0xbe5   :  { %6365 = vsyncpa [#allocation6], 1 }

</bundles_post_ra>
